<compile_context>
chip_gen: v7x
topology: tpu7x:2x2x1
jax: 0.10.0
libtpu: 0.0.40
codegen_flags: <defaults>
</compile_context>

<pallas_src>
import numpy as np
import jax
import jax.numpy as jnp
from jax import lax
from jax.experimental import pallas as pl
from jax.experimental.pallas import tpu as pltpu

C = 176            # channels (fixed by the module's conv weights)
H = 14
W = 14
HW = H * W         # 196
GUARD = 16         # left zero guard (>= W + 1 = 15)
SLAB = 256         # lane-aligned slab width: GUARD + HW + right guard
RGUARD = SLAB - GUARD - HW   # 44 (>= W + 1 = 15 needed)
N = 1
EPS = 1e-5


def _col_masks():
    """(2, HW) float32 column-validity masks for the flattened 14-wide rows.

    Row 0: valid positions for taps with dw-1 == -1 (source col = c-1 >= 0).
    Row 1: valid positions for taps with dw-1 == +1 (source col = c+1 <  W).
    Row (top/bottom) out-of-bounds reads land in the zero guard bands, so no
    row masks are needed.
    """
    col = np.arange(HW) % W
    left = (col >= 1).astype(np.float32)
    right = (col <= W - 2).astype(np.float32)
    return np.stack([left, right])


def _fused_kernel(x_ref, wdw_ref, wf_ref, bias_ref, mask_ref, o_ref, slab_ref):
    # x_ref:    (1, C, HW)  flattened NCHW input for one image
    # wdw_ref:  (C, 9)      depthwise 3x3 taps, k = dh*3 + dw
    # wf_ref:   (C, C)      1x1 conv weight with BN scale folded in (Cout, Cin)
    # bias_ref: (C, 1)      Wpw @ bn_shift
    # mask_ref: (2, HW)     left / right column-wrap masks
    # o_ref:    (1, C, HW)  output
    # slab_ref: (C, SLAB)   zero-guarded lane-dense working slab (VMEM scratch)

    # Guards MUST be zero: out-of-row taps read them, masked column-wrap taps
    # multiply whatever sits there by 0.0, so no NaN/Inf garbage allowed.
    # Only the guard bands are zeroed; the data region is overwritten below.
    slab_ref[:, pl.ds(0, GUARD)] = jnp.zeros((C, GUARD), jnp.float32)
    slab_ref[:, pl.ds(GUARD + HW, RGUARD)] = jnp.zeros((C, RGUARD), jnp.float32)

    # ReLU fused into the pack.
    slab_ref[:, pl.ds(GUARD, HW)] = jnp.maximum(x_ref[0], 0.0)

    wdw = wdw_ref[...]              # (C, 9)
    mask_l = mask_ref[0:1, :]       # (1, HW)
    mask_r = mask_ref[1:2, :]       # (1, HW)

    # Depthwise 3x3 conv: 9 statically-offset lane windows of the slab, scaled
    # by the per-channel tap weight (VPU MACs).  Taps are grouped by column
    # offset so only two boundary-mask multiplies are needed.
    acc = jnp.zeros((C, HW), jnp.float32)
    for dw in range(3):
        part = jnp.zeros((C, HW), jnp.float32)
        for dh in range(3):
            k = dh * 3 + dw
            off = (dh - 1) * W + (dw - 1)
            shifted = slab_ref[:, pl.ds(GUARD + off, HW)]   # (C, HW)
            part = part + shifted * wdw[:, k:k + 1]
        if dw == 0:
            part = part * mask_l
        elif dw == 2:
            part = part * mask_r
        acc = acc + part

    # BN folded into wf / bias; 1x1 conv == channel matmul on the MXU.
    out = jnp.dot(wf_ref[...], acc, preferred_element_type=jnp.float32)
    o_ref[0] = (out + bias_ref[...]).astype(o_ref.dtype)


def fused_forward(x_nchw, wdw_torch, gamma, beta, rmean, rvar, wpw_torch):
    """x_nchw: (N, C, H, W) float32. Returns (N, C, H, W) float32."""
    n, c, h, w = x_nchw.shape
    assert (c, h, w) == (C, H, W)

    # Free reshape only -- no transpose, no pad (padding handled in-kernel).
    x_flat = x_nchw.reshape(n, C, HW)

    # Parameter folding (tiny tensors, done once outside the kernel).
    scale = gamma * lax.rsqrt(rvar + EPS)                 # (C,)
    shift = beta - rmean * scale                          # (C,)
    wpw = wpw_torch[:, :, 0, 0]                           # (Cout, Cin)
    wf = wpw * scale[None, :]                             # BN scale folded into 1x1 weight
    bias = (wpw @ shift).reshape(C, 1)                    # BN shift folded into a bias
    wdw = wdw_torch.reshape(C, 9)                         # depthwise taps, channel-major
    masks = jnp.asarray(_col_masks())                     # (2, HW) constant

    out_flat = pl.pallas_call(
        _fused_kernel,
        out_shape=jax.ShapeDtypeStruct((n, C, HW), jnp.float32),
        grid_spec=pltpu.PrefetchScalarGridSpec(
            num_scalar_prefetch=0,
            grid=(n,),
            in_specs=[
                pl.BlockSpec((1, C, HW), lambda i: (i, 0, 0)),
                pl.BlockSpec((C, 9), lambda i: (0, 0)),
                pl.BlockSpec((C, C), lambda i: (0, 0)),
                pl.BlockSpec((C, 1), lambda i: (0, 0)),
                pl.BlockSpec((2, HW), lambda i: (0, 0)),
            ],
            out_specs=pl.BlockSpec((1, C, HW), lambda i: (i, 0, 0)),
            scratch_shapes=[pltpu.VMEM((C, SLAB), jnp.float32)],
        ),
        compiler_params=pltpu.CompilerParams(
            dimension_semantics=("parallel",)),
    )(x_flat, wdw, wf, bias, masks)

    return out_flat.reshape(n, C, H, W)


def reference_forward(x_nchw, wdw_torch, gamma, beta, rmean, rvar, wpw_torch):
    """Plain-JAX reference in NCHW, mirroring the PyTorch module (eval-mode BN)."""
    x = jnp.maximum(x_nchw, 0.0)
    y = lax.conv_general_dilated(
        x, wdw_torch, window_strides=(1, 1), padding=((1, 1), (1, 1)),
        feature_group_count=C, dimension_numbers=("NCHW", "OIHW", "NCHW"))
    scale = gamma / jnp.sqrt(rvar + EPS)
    shift = beta - rmean * scale
    z = y * scale[None, :, None, None] + shift[None, :, None, None]
    out = lax.conv_general_dilated(
        z, wpw_torch, window_strides=(1, 1), padding=((0, 0), (0, 0)),
        dimension_numbers=("NCHW", "OIHW", "NCHW"))
    return out


if __name__ == "__main__":
    key = jax.random.PRNGKey(0)
    k_x, k_dw, k_pw, k_g, k_b, k_m, k_v = jax.random.split(key, 7)

    # deterministic "parameters" matching the module's shapes
    x145 = jax.random.normal(k_x, (N, C, H, W), dtype=jnp.float32)
    wdw_torch = jax.random.normal(k_dw, (C, 1, 3, 3), dtype=jnp.float32) * 0.2   # depthwise (OIHW, I=1)
    wpw_torch = jax.random.normal(k_pw, (C, C, 1, 1), dtype=jnp.float32) * 0.05  # pointwise
    gamma = 1.0 + 0.1 * jax.random.normal(k_g, (C,), dtype=jnp.float32)
    beta = 0.1 * jax.random.normal(k_b, (C,), dtype=jnp.float32)
    rmean = 0.1 * jax.random.normal(k_m, (C,), dtype=jnp.float32)
    rvar = jnp.abs(jax.random.normal(k_v, (C,), dtype=jnp.float32)) + 0.5

    out = fused_forward(x145, wdw_torch, gamma, beta, rmean, rvar, wpw_torch)
    out = jax.block_until_ready(out)

    ref = reference_forward(x145, wdw_torch, gamma, beta, rmean, rvar, wpw_torch)
    ref = jax.block_until_ready(ref)

    assert out.shape == (N, C, H, W)
    assert jnp.allclose(out, ref, atol=1e-3, rtol=1e-3), (
        float(jnp.max(jnp.abs(out - ref))))

    print("KERNEL_OK")
</pallas_src>

<mosaic_0001>
module attributes {stable_mosaic.version = 11 : i64} {
  func.func @_fused_kernel(%arg0: i32, %arg1: memref<1x176x196xf32, #tpu.memory_space<vmem>>, %arg2: memref<176x9xf32, #tpu.memory_space<vmem>>, %arg3: memref<176x176xf32, #tpu.memory_space<vmem>>, %arg4: memref<176x1xf32, #tpu.memory_space<vmem>>, %arg5: memref<2x196xf32, #tpu.memory_space<vmem>>, %arg6: memref<1x176x196xf32, #tpu.memory_space<vmem>>, %arg7: memref<176x256xf32, #tpu.memory_space<vmem>>) attributes {dimension_semantics = [#tpu.dimension_semantics<parallel>], iteration_bounds = array<i64: 1>, scalar_prefetch = 0 : i64, scratch_operands = 1 : i64, tpu.core_type = #tpu.core_type<tc>, window_params = [{transform_indices = @transform_0, window_bounds = array<i64: 1, 176, 196>}, {pipeline_mode = #tpu.pipeline_mode<synchronous>, transform_indices = @transform_1, window_bounds = array<i64: 176, 9>}, {pipeline_mode = #tpu.pipeline_mode<synchronous>, transform_indices = @transform_2, window_bounds = array<i64: 176, 176>}, {pipeline_mode = #tpu.pipeline_mode<synchronous>, transform_indices = @transform_3, window_bounds = array<i64: 176, 1>}, {pipeline_mode = #tpu.pipeline_mode<synchronous>, transform_indices = @transform_4, window_bounds = array<i64: 2, 196>}, {transform_indices = @transform_5, window_bounds = array<i64: 1, 176, 196>}]} {
    %cst = arith.constant 0.000000e+00 : f32
    %0 = vector.broadcast %cst : f32 to vector<176x16xf32>
    %c0 = arith.constant 0 : index
    %c0_0 = arith.constant 0 : index
    %1 = vector.load %arg7[%c0, %c0_0] : memref<176x256xf32, #tpu.memory_space<vmem>>, vector<176x16xf32>
    tpu.vector_store %arg7[%c0, %c0_0], %0 {strides = array<i32>} : memref<176x256xf32, #tpu.memory_space<vmem>>, vector<176x16xf32>,
    %cst_1 = arith.constant 0.000000e+00 : f32
    %2 = vector.broadcast %cst_1 : f32 to vector<176x44xf32>
    %c0_2 = arith.constant 0 : index
    %c212 = arith.constant 212 : index
    %3 = vector.load %arg7[%c0_2, %c212] : memref<176x256xf32, #tpu.memory_space<vmem>>, vector<176x44xf32>
    tpu.vector_store %arg7[%c0_2, %c212], %2 {strides = array<i32>} : memref<176x256xf32, #tpu.memory_space<vmem>>, vector<176x44xf32>,
    %c0_3 = arith.constant 0 : index
    %c0_4 = arith.constant 0 : index
    %c0_5 = arith.constant 0 : index
    %4 = vector.load %arg1[%c0_3, %c0_4, %c0_5] : memref<1x176x196xf32, #tpu.memory_space<vmem>>, vector<1x176x196xf32>
    %5 = vector.shape_cast %4 : vector<1x176x196xf32> to vector<176x196xf32>
    %cst_6 = arith.constant 0.000000e+00 : f32
    %6 = vector.broadcast %cst_6 : f32 to vector<176x196xf32>
    %7 = arith.maximumf %5, %6 : vector<176x196xf32>
    %c0_7 = arith.constant 0 : index
    %c16 = arith.constant 16 : index
    %8 = vector.load %arg7[%c0_7, %c16] : memref<176x256xf32, #tpu.memory_space<vmem>>, vector<176x196xf32>
    tpu.vector_store %arg7[%c0_7, %c16], %7 {strides = array<i32>} : memref<176x256xf32, #tpu.memory_space<vmem>>, vector<176x196xf32>,
    %c0_8 = arith.constant 0 : index
    %c0_9 = arith.constant 0 : index
    %9 = vector.load %arg2[%c0_8, %c0_9] : memref<176x9xf32, #tpu.memory_space<vmem>>, vector<176x9xf32>
    %c0_10 = arith.constant 0 : index
    %c0_11 = arith.constant 0 : index
    %10 = vector.load %arg5[%c0_10, %c0_11] : memref<2x196xf32, #tpu.memory_space<vmem>>, vector<1x196xf32>
    %c1 = arith.constant 1 : index
    %c0_12 = arith.constant 0 : index
    %11 = vector.load %arg5[%c1, %c0_12] : memref<2x196xf32, #tpu.memory_space<vmem>>, vector<1x196xf32>
    %cst_13 = arith.constant 0.000000e+00 : f32
    %12 = vector.broadcast %cst_13 : f32 to vector<176x196xf32>
    %cst_14 = arith.constant 0.000000e+00 : f32
    %13 = vector.broadcast %cst_14 : f32 to vector<176x196xf32>
    %c0_15 = arith.constant 0 : index
    %c1_16 = arith.constant 1 : index
    %14 = vector.load %arg7[%c0_15, %c1_16] : memref<176x256xf32, #tpu.memory_space<vmem>>, vector<176x196xf32>
    %15 = vector.extract_strided_slice %9 {offsets = [0, 0], sizes = [176, 1], strides = [1, 1]} : vector<176x9xf32> to vector<176x1xf32>
    %16 = vector.broadcast %15 : vector<176x1xf32> to vector<176x196xf32>
    %17 = arith.mulf %14, %16 : vector<176x196xf32>
    %18 = arith.addf %13, %17 : vector<176x196xf32>
    %c0_17 = arith.constant 0 : index
    %c15 = arith.constant 15 : index
    %19 = vector.load %arg7[%c0_17, %c15] : memref<176x256xf32, #tpu.memory_space<vmem>>, vector<176x196xf32>
    %20 = vector.extract_strided_slice %9 {offsets = [0, 3], sizes = [176, 1], strides = [1, 1]} : vector<176x9xf32> to vector<176x1xf32>
    %21 = vector.broadcast %20 : vector<176x1xf32> to vector<176x196xf32>
    %22 = arith.mulf %19, %21 : vector<176x196xf32>
    %23 = arith.addf %18, %22 : vector<176x196xf32>
    %c0_18 = arith.constant 0 : index
    %c29 = arith.constant 29 : index
    %24 = vector.load %arg7[%c0_18, %c29] : memref<176x256xf32, #tpu.memory_space<vmem>>, vector<176x196xf32>
    %25 = vector.extract_strided_slice %9 {offsets = [0, 6], sizes = [176, 1], strides = [1, 1]} : vector<176x9xf32> to vector<176x1xf32>
    %26 = vector.broadcast %25 : vector<176x1xf32> to vector<176x196xf32>
    %27 = arith.mulf %24, %26 : vector<176x196xf32>
    %28 = arith.addf %23, %27 : vector<176x196xf32>
    %29 = vector.broadcast %10 : vector<1x196xf32> to vector<176x196xf32>
    %30 = arith.mulf %28, %29 : vector<176x196xf32>
    %31 = arith.addf %12, %30 : vector<176x196xf32>
    %cst_19 = arith.constant 0.000000e+00 : f32
    %32 = vector.broadcast %cst_19 : f32 to vector<176x196xf32>
    %c0_20 = arith.constant 0 : index
    %c2 = arith.constant 2 : index
    %33 = vector.load %arg7[%c0_20, %c2] : memref<176x256xf32, #tpu.memory_space<vmem>>, vector<176x196xf32>
    %34 = vector.extract_strided_slice %9 {offsets = [0, 1], sizes = [176, 1], strides = [1, 1]} : vector<176x9xf32> to vector<176x1xf32>
    %35 = vector.broadcast %34 : vector<176x1xf32> to vector<176x196xf32>
    %36 = arith.mulf %33, %35 : vector<176x196xf32>
    %37 = arith.addf %32, %36 : vector<176x196xf32>
    %c0_21 = arith.constant 0 : index
    %c16_22 = arith.constant 16 : index
    %38 = vector.load %arg7[%c0_21, %c16_22] : memref<176x256xf32, #tpu.memory_space<vmem>>, vector<176x196xf32>
    %39 = vector.extract_strided_slice %9 {offsets = [0, 4], sizes = [176, 1], strides = [1, 1]} : vector<176x9xf32> to vector<176x1xf32>
    %40 = vector.broadcast %39 : vector<176x1xf32> to vector<176x196xf32>
    %41 = arith.mulf %38, %40 : vector<176x196xf32>
    %42 = arith.addf %37, %41 : vector<176x196xf32>
    %c0_23 = arith.constant 0 : index
    %c30 = arith.constant 30 : index
    %43 = vector.load %arg7[%c0_23, %c30] : memref<176x256xf32, #tpu.memory_space<vmem>>, vector<176x196xf32>
    %44 = vector.extract_strided_slice %9 {offsets = [0, 7], sizes = [176, 1], strides = [1, 1]} : vector<176x9xf32> to vector<176x1xf32>
    %45 = vector.broadcast %44 : vector<176x1xf32> to vector<176x196xf32>
    %46 = arith.mulf %43, %45 : vector<176x196xf32>
    %47 = arith.addf %42, %46 : vector<176x196xf32>
    %48 = arith.addf %31, %47 : vector<176x196xf32>
    %cst_24 = arith.constant 0.000000e+00 : f32
    %49 = vector.broadcast %cst_24 : f32 to vector<176x196xf32>
    %c0_25 = arith.constant 0 : index
    %c3 = arith.constant 3 : index
    %50 = vector.load %arg7[%c0_25, %c3] : memref<176x256xf32, #tpu.memory_space<vmem>>, vector<176x196xf32>
    %51 = vector.extract_strided_slice %9 {offsets = [0, 2], sizes = [176, 1], strides = [1, 1]} : vector<176x9xf32> to vector<176x1xf32>
    %52 = vector.broadcast %51 : vector<176x1xf32> to vector<176x196xf32>
    %53 = arith.mulf %50, %52 : vector<176x196xf32>
    %54 = arith.addf %49, %53 : vector<176x196xf32>
    %c0_26 = arith.constant 0 : index
    %c17 = arith.constant 17 : index
    %55 = vector.load %arg7[%c0_26, %c17] : memref<176x256xf32, #tpu.memory_space<vmem>>, vector<176x196xf32>
    %56 = vector.extract_strided_slice %9 {offsets = [0, 5], sizes = [176, 1], strides = [1, 1]} : vector<176x9xf32> to vector<176x1xf32>
    %57 = vector.broadcast %56 : vector<176x1xf32> to vector<176x196xf32>
    %58 = arith.mulf %55, %57 : vector<176x196xf32>
    %59 = arith.addf %54, %58 : vector<176x196xf32>
    %c0_27 = arith.constant 0 : index
    %c31 = arith.constant 31 : index
    %60 = vector.load %arg7[%c0_27, %c31] : memref<176x256xf32, #tpu.memory_space<vmem>>, vector<176x196xf32>
    %61 = vector.extract_strided_slice %9 {offsets = [0, 8], sizes = [176, 1], strides = [1, 1]} : vector<176x9xf32> to vector<176x1xf32>
    %62 = vector.broadcast %61 : vector<176x1xf32> to vector<176x196xf32>
    %63 = arith.mulf %60, %62 : vector<176x196xf32>
    %64 = arith.addf %59, %63 : vector<176x196xf32>
    %65 = vector.broadcast %11 : vector<1x196xf32> to vector<176x196xf32>
    %66 = arith.mulf %64, %65 : vector<176x196xf32>
    %67 = arith.addf %48, %66 : vector<176x196xf32>
    %c0_28 = arith.constant 0 : index
    %c0_29 = arith.constant 0 : index
    %68 = vector.load %arg3[%c0_28, %c0_29] : memref<176x176xf32, #tpu.memory_space<vmem>>, vector<176x176xf32>
    %cst_30 = arith.constant dense<0.000000e+00> : vector<176x196xf32>
    %69 = tpu.matmul %68, %67, %cst_30 {dimension_numbers = #tpu.dot_dimension_numbers<[1], [0], [0], [1], [0, 0, 1, 1], [], []>} : vector<176x176xf32>, vector<176x196xf32>, vector<176x196xf32> -> vector<176x196xf32>
    %c0_31 = arith.constant 0 : index
    %c0_32 = arith.constant 0 : index
    %70 = vector.load %arg4[%c0_31, %c0_32] : memref<176x1xf32, #tpu.memory_space<vmem>>, vector<176x1xf32>
    %71 = vector.broadcast %70 : vector<176x1xf32> to vector<176x196xf32>
    %72 = arith.addf %69, %71 : vector<176x196xf32>
    %c0_33 = arith.constant 0 : index
    %c0_34 = arith.constant 0 : index
    %c0_35 = arith.constant 0 : index
    %73 = vector.load %arg6[%c0_33, %c0_34, %c0_35] : memref<1x176x196xf32, #tpu.memory_space<vmem>>, vector<1x176x196xf32>
    %74 = vector.shape_cast %73 : vector<1x176x196xf32> to vector<176x196xf32>
    %75 = vector.shape_cast %72 : vector<176x196xf32> to vector<1x176x196xf32>
    tpu.vector_store %arg6[%c0_33, %c0_34, %c0_35], %75 {strides = array<i32>} : memref<1x176x196xf32, #tpu.memory_space<vmem>>, vector<1x176x196xf32>,
    return
  }
  func.func @transform_0(%arg0: i32) -> (i32, i32, i32) {
    %c0_i32 = arith.constant 0 : i32
    %c0_i32_0 = arith.constant 0 : i32
    %c0_i32_1 = arith.constant 0 : i32
    return %arg0, %c0_i32, %c0_i32_0 : i32, i32, i32
  }
  func.func @transform_1(%arg0: i32) -> (i32, i32) {
    %c0_i32 = arith.constant 0 : i32
    %c0_i32_0 = arith.constant 0 : i32
    %c0_i32_1 = arith.constant 0 : i32
    return %c0_i32, %c0_i32_0 : i32, i32
  }
  func.func @transform_2(%arg0: i32) -> (i32, i32) {
    %c0_i32 = arith.constant 0 : i32
    %c0_i32_0 = arith.constant 0 : i32
    %c0_i32_1 = arith.constant 0 : i32
    return %c0_i32, %c0_i32_0 : i32, i32
  }
  func.func @transform_3(%arg0: i32) -> (i32, i32) {
    %c0_i32 = arith.constant 0 : i32
    %c0_i32_0 = arith.constant 0 : i32
    %c0_i32_1 = arith.constant 0 : i32
    return %c0_i32, %c0_i32_0 : i32, i32
  }
  func.func @transform_4(%arg0: i32) -> (i32, i32) {
    %c0_i32 = arith.constant 0 : i32
    %c0_i32_0 = arith.constant 0 : i32
    %c0_i32_1 = arith.constant 0 : i32
    return %c0_i32, %c0_i32_0 : i32, i32
  }
  func.func @transform_5(%arg0: i32) -> (i32, i32, i32) {
    %c0_i32 = arith.constant 0 : i32
    %c0_i32_0 = arith.constant 0 : i32
    %c0_i32_1 = arith.constant 0 : i32
    return %arg0, %c0_i32, %c0_i32_0 : i32, i32, i32
  }
}

</mosaic_0001>

<bundles_post_ra>
// kernel: tpu_custom_call.1
= control target key start
LH: loop header
LB: loop body
LE: loop exit
PB: predicated region body
PF: predicated region fallthrough
CT: control target
= control target key end

     0   :  { %10 = vsyncpa [#allocation4], 0  ;;  %s8560_s0 = inlined_call_operand.vmem [shape: f32[1,176,196], index: 0, kind: input, shape index: {}]   ;;  %s8561_s1 = inlined_call_operand.vmem [shape: f32[176,9], index: 1, kind: input, shape index: {}]   ;;  %s8562_s2 = inlined_call_operand.hbm [shape: f32[176,176], index: 2, kind: input, shape index: {}]   ;;  %s8563_s3 = inlined_call_operand.vmem [shape: f32[176,1], index: 3, kind: input, shape index: {}]   ;;  %s8564_s4 = inlined_call_operand.vmem [shape: f32[2,196], index: 4, kind: input, shape index: {}]   ;;  %s8565_s5 = inlined_call_operand.hbm [shape: f32[1,176,196], index: 5, kind: output, shape index: {}]  }
   0x1   :  { %11 = vsyncpa [#allocation5], 0  ;;  %s5088_s18 = smov [#allocation3]   ;;  %s5040_s22 = scalar_lea.hbm %s8562_s2, 5632 }
   0x2   :  { %s21_s19 = sshll.u32 %s5088_s18, 4  ;;  %p5041_p0 = scmp.ne.s32.totalorder %s8562_s2, %s5040_s22  ;;  %s22_s19 = int_to_ptr.vmem [resolvable:$true] %s21_s19 }
   0x3   :  { %p5044_p1 = scmp.lt.u32.totalorder %s5040_s22, %s8562_s2 }
   0x5   :  { %p5046_p2 = pnand %p5044_p1, %p5041_p0 }
   0x7   :  { %5049 = shalt.err (!%p5046_p2)
}
   0x8   :  { %s5050_s27 = scalar_lea.vmem %s22_s19, 5632  ;;  %p5055_p4 = scmp.lt.s32.totalorder %s22_s19, %s22_s19 }
   0x9   :  { %p5051_p3 = scmp.ne.s32.totalorder %s22_s19, %s5050_s27  ;;  %p5056_p5 = scmp.lt.s32.totalorder %s5050_s27, %s5050_s27 }
   0xb   :  { %p5057_p6 = por %p5056_p5, %p5055_p4 }
   0xd   :  { %p5058_p7 = pnand %p5057_p6, %p5051_p3 }
   0xf   :  { %5061 = shalt.err (!%p5058_p7)
}
  0x10   :  { %s5089_s28 = smov 256   ;;  %s5090_s29 = smov 16  }
  0x11   :  { %27 = dma.hbm_to_vmem [thread:$0]  %s8562_s2, 5632, %s22_s19, [#allocation4], %s5089_s28, %s5089_s28, %s5090_s29  }
  0x12   :  { %5084 = dma.done.wait [#allocation4], 5632  }
  0x13   :  { %5085 = vsyncadd [#allocation4], 4294961664  ;;  %vm35_vm0 = vcmask 130048   ;;  %v5091_v0 = vmov 3   ;;  %v8566_v1 = vmov 0   ;;  %v5093_v2 = vmov 0.0  }
  0x14   :  { %4741 = vset.pattern.permute.xlu0 %v5091_v0  ;;  %4739 = vset.pattern.permute.xlu1 %v8566_v1  ;;  %37 = vst.msk [vmem:[#allocation2 + $0x10] sm:$0xff] %vm35_vm0, %v5093_v2  ;;  %36 = vst.msk [vmem:[#allocation2] sm:$0xff] %vm35_vm0, %v5093_v2  ;;  %vm58_vm1 = vcmask 1048224   ;;  %v83_v3 = vld [vmem:[%s8560_s0 + $0x10] sm:$0xff]  ;;  %v81_v4 = vld [vmem:[%s8560_s0] sm:$0xff]  ;;  %vm367_vm2 = vcmask 1047680  }
  0x15   :  { %38 = vst.msk [vmem:[#allocation2 + $0x20] sm:$0xff] %vm35_vm0, %v5093_v2  ;;  %39 = vst.msk [vmem:[#allocation2 + $0x30] sm:$0xff] %vm35_vm0, %v5093_v2  ;;  %v84_v5 = vld [vmem:[%s8560_s0 + $0x18] sm:$0xff]  ;;  %v127_v6 = vmax.f32 %v83_v3, 0.0  ;;  %v125_v7 = vmax.f32 %v81_v4, 0.0  ;;  %v82_v8 = vld [vmem:[%s8560_s0 + $0x8] sm:$0xff] }
  0x16   :  { %40 = vst.msk [vmem:[#allocation2 + $0x40] sm:$0xff] %vm35_vm0, %v5093_v2  ;;  %41 = vst.msk [vmem:[#allocation2 + $0x50] sm:$0xff] %vm35_vm0, %v5093_v2  ;;  %v128_v9 = vmax.f32 %v84_v5, 0.0  ;;  %v126_v10 = vmax.f32 %v82_v8, 0.0  ;;  %v86_v11 = vld [vmem:[%s8560_s0 + $0x28] sm:$0xff]  ;;  %v85_v12 = vld [vmem:[%s8560_s0 + $0x20] sm:$0xff] }
  0x17   :  { %42 = vst.msk [vmem:[#allocation2 + $0x60] sm:$0xff] %vm35_vm0, %v5093_v2  ;;  %43 = vst.msk [vmem:[#allocation2 + $0x70] sm:$0xff] %vm35_vm0, %v5093_v2  ;;  %217 = vrot.lane.b32.xlu1 %v127_v6, %s5090_s29  ;;  %213 = vrot.lane.b32.xlu0 %v125_v7, %s5090_s29  ;;  %v130_v13 = vmax.f32 %v86_v11, 0.0  ;;  %v129_v14 = vmax.f32 %v85_v12, 0.0  ;;  %v88_v15 = vld [vmem:[%s8560_s0 + $0x38] sm:$0xff]  ;;  %v87_v16 = vld [vmem:[%s8560_s0 + $0x30] sm:$0xff] }
  0x18   :  { %44 = vst.msk [vmem:[#allocation2 + $0x80] sm:$0xff] %vm35_vm0, %v5093_v2  ;;  %45 = vst.msk [vmem:[#allocation2 + $0x90] sm:$0xff] %vm35_vm0, %v5093_v2  ;;  %v132_v17 = vmax.f32 %v88_v15, 0.0  ;;  %v131_v18 = vmax.f32 %v87_v16, 0.0  ;;  %v90_v19 = vld [vmem:[%s8560_s0 + $0x48] sm:$0xff]  ;;  %v89_v20 = vld [vmem:[%s8560_s0 + $0x40] sm:$0xff] }
  0x19   :  { %46 = vst.msk [vmem:[#allocation2 + $0xa0] sm:$0xff] %vm35_vm0, %v5093_v2  ;;  %47 = vst.msk [vmem:[#allocation2 + $0xb0] sm:$0xff] %vm35_vm0, %v5093_v2  ;;  %v134_v21 = vmax.f32 %v90_v19, 0.0  ;;  %v133_v22 = vmax.f32 %v89_v20, 0.0  ;;  %v92_v23 = vld [vmem:[%s8560_s0 + $0x58] sm:$0xff]  ;;  %v91_v24 = vld [vmem:[%s8560_s0 + $0x50] sm:$0xff] }
  0x1a   :  { %48 = vst.msk [vmem:[#allocation2 + $0xc0] sm:$0xff] %vm35_vm0, %v5093_v2  ;;  %49 = vst.msk [vmem:[#allocation2 + $0xd0] sm:$0xff] %vm35_vm0, %v5093_v2  ;;  %v136_v25 = vmax.f32 %v92_v23, 0.0  ;;  %v135_v26 = vmax.f32 %v91_v24, 0.0  ;;  %v94_v27 = vld [vmem:[%s8560_s0 + $0x68] sm:$0xff]  ;;  %v93_v28 = vld [vmem:[%s8560_s0 + $0x60] sm:$0xff] }
  0x1b   :  { %50 = vst.msk [vmem:[#allocation2 + $0xe0] sm:$0xff] %vm35_vm0, %v5093_v2  ;;  %51 = vst.msk [vmem:[#allocation2 + $0xf0] sm:$0xff] %vm35_vm0, %v5093_v2  ;;  %219 = vrot.lane.b32.xlu1 %v128_v9, %s5090_s29  ;;  %215 = vrot.lane.b32.xlu0 %v126_v10, %s5090_s29  ;;  %v138_v29 = vmax.f32 %v94_v27, 0.0  ;;  %v137_v30 = vmax.f32 %v93_v28, 0.0  ;;  %v96_v31 = vld [vmem:[%s8560_s0 + $0x78] sm:$0xff]  ;;  %v95_v32 = vld [vmem:[%s8560_s0 + $0x70] sm:$0xff] }
  0x1c   :  { %52 = vst.msk [vmem:[#allocation2 + $0x100] sm:$0xff] %vm35_vm0, %v5093_v2  ;;  %53 = vst.msk [vmem:[#allocation2 + $0x110] sm:$0xff] %vm35_vm0, %v5093_v2  ;;  %v140_v33 = vmax.f32 %v96_v31, 0.0  ;;  %v139_v34 = vmax.f32 %v95_v32, 0.0  ;;  %v98_v35 = vld [vmem:[%s8560_s0 + $0x88] sm:$0xff]  ;;  %v97_v36 = vld [vmem:[%s8560_s0 + $0x80] sm:$0xff] }
  0x1d   :  { %54 = vst.msk [vmem:[#allocation2 + $0x120] sm:$0xff] %vm35_vm0, %v5093_v2  ;;  %55 = vst.msk [vmem:[#allocation2 + $0x130] sm:$0xff] %vm35_vm0, %v5093_v2  ;;  %v142_v37 = vmax.f32 %v98_v35, 0.0  ;;  %v141_v38 = vmax.f32 %v97_v36, 0.0  ;;  %v100_v39 = vld [vmem:[%s8560_s0 + $0x98] sm:$0xff]  ;;  %v99_v40 = vld [vmem:[%s8560_s0 + $0x90] sm:$0xff] }
  0x1e   :  { %56 = vst.msk [vmem:[#allocation2 + $0x140] sm:$0xff] %vm35_vm0, %v5093_v2  ;;  %57 = vst.msk [vmem:[#allocation2 + $0x150] sm:$0xff] %vm35_vm0, %v5093_v2  ;;  %v144_v41 = vmax.f32 %v100_v39, 0.0  ;;  %v143_v42 = vmax.f32 %v99_v40, 0.0  ;;  %v102_v43 = vld [vmem:[%s8560_s0 + $0xa8] sm:$0xff]  ;;  %v101_v44 = vld [vmem:[%s8560_s0 + $0xa0] sm:$0xff] }
  0x1f   :  { %60 = vst.msk [vmem:[#allocation2 + $0x18] sm:$0xff] %vm58_vm1, %v5093_v2  ;;  %59 = vst.msk [vmem:[#allocation2 + $0x8] sm:$0xff] %vm58_vm1, %v5093_v2  ;;  %223 = vrot.lane.b32.xlu1 %v130_v13, %s5090_s29  ;;  %221 = vrot.lane.b32.xlu0 %v129_v14, %s5090_s29  ;;  %v146_v45 = vmax.f32 %v102_v43, 0.0  ;;  %v145_v46 = vmax.f32 %v101_v44, 0.0  ;;  %v104_v47 = vld [vmem:[%s8560_s0 + $0xb8] sm:$0xff]  ;;  %v103_v48 = vld [vmem:[%s8560_s0 + $0xb0] sm:$0xff] }
  0x20   :  { %61 = vst.msk [vmem:[#allocation2 + $0x28] sm:$0xff] %vm58_vm1, %v5093_v2  ;;  %62 = vst.msk [vmem:[#allocation2 + $0x38] sm:$0xff] %vm58_vm1, %v5093_v2  ;;  %v148_v49 = vmax.f32 %v104_v47, 0.0  ;;  %v147_v50 = vmax.f32 %v103_v48, 0.0  ;;  %v106_v51 = vld [vmem:[%s8560_s0 + $0xc8] sm:$0xff]  ;;  %v105_v52 = vld [vmem:[%s8560_s0 + $0xc0] sm:$0xff] }
  0x21   :  { %63 = vst.msk [vmem:[#allocation2 + $0x48] sm:$0xff] %vm58_vm1, %v5093_v2  ;;  %64 = vst.msk [vmem:[#allocation2 + $0x58] sm:$0xff] %vm58_vm1, %v5093_v2  ;;  %v150_v53 = vmax.f32 %v106_v51, 0.0  ;;  %v149_v54 = vmax.f32 %v105_v52, 0.0  ;;  %v108_v55 = vld [vmem:[%s8560_s0 + $0xd8] sm:$0xff]  ;;  %v107_v56 = vld [vmem:[%s8560_s0 + $0xd0] sm:$0xff] }
  0x22   :  { %65 = vst.msk [vmem:[#allocation2 + $0x68] sm:$0xff] %vm58_vm1, %v5093_v2  ;;  %66 = vst.msk [vmem:[#allocation2 + $0x78] sm:$0xff] %vm58_vm1, %v5093_v2  ;;  %v152_v57 = vmax.f32 %v108_v55, 0.0  ;;  %v151_v58 = vmax.f32 %v107_v56, 0.0  ;;  %v110_v59 = vld [vmem:[%s8560_s0 + $0xe8] sm:$0xff]  ;;  %v109_v60 = vld [vmem:[%s8560_s0 + $0xe0] sm:$0xff] }
  0x23   :  { %67 = vst.msk [vmem:[#allocation2 + $0x88] sm:$0xff] %vm58_vm1, %v5093_v2  ;;  %68 = vst.msk [vmem:[#allocation2 + $0x98] sm:$0xff] %vm58_vm1, %v5093_v2  ;;  %227 = vrot.lane.b32.xlu1 %v132_v17, %s5090_s29  ;;  %225 = vrot.lane.b32.xlu0 %v131_v18, %s5090_s29  ;;  %v154_v61 = vmax.f32 %v110_v59, 0.0  ;;  %v153_v62 = vmax.f32 %v109_v60, 0.0  ;;  %v112_v63 = vld [vmem:[%s8560_s0 + $0xf8] sm:$0xff]  ;;  %v114_v5 = vld [vmem:[%s8560_s0 + $0x108] sm:$0xff] }
  0x24   :  { %69 = vst.msk [vmem:[#allocation2 + $0xa8] sm:$0xff] %vm58_vm1, %v5093_v2  ;;  %70 = vst.msk [vmem:[#allocation2 + $0xb8] sm:$0xff] %vm58_vm1, %v5093_v2  ;;  %v156_v3 = vmax.f32 %v112_v63, 0.0  ;;  %v113_v6 = vld [vmem:[%s8560_s0 + $0x100] sm:$0xff]  ;;  %v158_v7 = vmax.f32 %v114_v5, 0.0  ;;  %v116_v9 = vld [vmem:[%s8560_s0 + $0x118] sm:$0xff] }
  0x25   :  { %71 = vst.msk [vmem:[#allocation2 + $0xc8] sm:$0xff] %vm58_vm1, %v5093_v2  ;;  %72 = vst.msk [vmem:[#allocation2 + $0xd8] sm:$0xff] %vm58_vm1, %v5093_v2  ;;  %v157_v8 = vmax.f32 %v113_v6, 0.0  ;;  %v115_v10 = vld [vmem:[%s8560_s0 + $0x110] sm:$0xff]  ;;  %v160_v11 = vmax.f32 %v116_v9, 0.0  ;;  %v118_v13 = vld [vmem:[%s8560_s0 + $0x128] sm:$0xff] }
  0x26   :  { %73 = vst.msk [vmem:[#allocation2 + $0xe8] sm:$0xff] %vm58_vm1, %v5093_v2  ;;  %74 = vst.msk [vmem:[#allocation2 + $0xf8] sm:$0xff] %vm58_vm1, %v5093_v2  ;;  %v159_v12 = vmax.f32 %v115_v10, 0.0  ;;  %v117_v14 = vld [vmem:[%s8560_s0 + $0x120] sm:$0xff]  ;;  %v162_v15 = vmax.f32 %v118_v13, 0.0  ;;  %v120_v17 = vld [vmem:[%s8560_s0 + $0x138] sm:$0xff] }
  0x27   :  { %75 = vst.msk [vmem:[#allocation2 + $0x108] sm:$0xff] %vm58_vm1, %v5093_v2  ;;  %76 = vst.msk [vmem:[#allocation2 + $0x118] sm:$0xff] %vm58_vm1, %v5093_v2  ;;  %231 = vrot.lane.b32.xlu1 %v134_v21, %s5090_s29  ;;  %229 = vrot.lane.b32.xlu0 %v133_v22, %s5090_s29  ;;  %v161_v16 = vmax.f32 %v117_v14, 0.0  ;;  %v119_v18 = vld [vmem:[%s8560_s0 + $0x130] sm:$0xff]  ;;  %v164_v19 = vmax.f32 %v120_v17, 0.0  ;;  %v122_v21 = vld [vmem:[%s8560_s0 + $0x148] sm:$0xff] }
  0x28   :  { %77 = vst.msk [vmem:[#allocation2 + $0x128] sm:$0xff] %vm58_vm1, %v5093_v2  ;;  %78 = vst.msk [vmem:[#allocation2 + $0x138] sm:$0xff] %vm58_vm1, %v5093_v2  ;;  %v163_v20 = vmax.f32 %v119_v18, 0.0  ;;  %v121_v22 = vld [vmem:[%s8560_s0 + $0x140] sm:$0xff]  ;;  %v166_v23 = vmax.f32 %v122_v21, 0.0  ;;  %v5397_v32 = vld [vmem:[%s8561_s1 + $0x30] sm:$0xff] }
  0x29   :  { %79 = vst.msk [vmem:[#allocation2 + $0x148] sm:$0xff] %vm58_vm1, %v5093_v2  ;;  %80 = vst.msk [vmem:[#allocation2 + $0x158] sm:$0xff] %vm58_vm1, %v5093_v2  ;;  %v111_v2 = vld [vmem:[%s8560_s0 + $0xf0] sm:$0xff]  ;;  %v165_v24 = vmax.f32 %v121_v22, 0.0  ;;  %v5390_v31 = vld [vmem:[%s8561_s1 + $0x20] sm:$0xff]  ;;  %vm369_vm3 = vcmask 687104  }
  0x2a   :  { %v155_v4 = vmax.f32 %v111_v2, 0.0  ;;  %v5418_v35 = vld [vmem:[%s8561_s1 + $0x60] sm:$0xff]  ;;  %v5425_v36 = vld [vmem:[%s8561_s1 + $0x70] sm:$0xff]  ;;  %v5489_v2 = vld [vmem:[%s8561_s1 + $0x28] sm:$0xff]  ;;  %s5095_s16 = smov 114   ;;  %s5097_s17 = smov 100  }
  0x2b   :  { %235 = vrot.lane.b32.xlu1 %v136_v25, %s5090_s29  ;;  %233 = vrot.lane.b32.xlu0 %v135_v26, %s5090_s29  ;;  %v124_v25 = vld [vmem:[%s8560_s0 + $0x158] sm:$0xff]  ;;  %v123_v26 = vld [vmem:[%s8560_s0 + $0x150] sm:$0xff]  ;;  %s5098_s20 = smov 1   ;;  %vm944_vm4 = vcmask 932864   ;;  %vm1319_vm5 = vcmask 818176   ;;  %s5102_s19 = smov 127  }
  0x2c   :  { %v168_v27 = vmax.f32 %v124_v25, 0.0  ;;  %v167_v28 = vmax.f32 %v123_v26, 0.0  ;;  %v5441_v40 = vld [vmem:[%s8561_s1 + $0x90] sm:$0xff]  ;;  %v5498_v6 = vld [vmem:[%s8561_s1 + $0x38] sm:$0xff]  ;;  %v5507_v10 = vld [vmem:[%s8561_s1 + $0x48] sm:$0xff]  ;;  %vm3639_vm6 = vcmask 23552  }
  0x2d   :  { %v5516_v14 = vld [vmem:[%s8561_s1 + $0x58] sm:$0xff]  ;;  %v5525_v18 = vld [vmem:[%s8561_s1 + $0x68] sm:$0xff]  ;;  %vm1443_vm7 = vcmask 7168   ;;  %vm2591_vm8 = vcmask 1039360   ;;  %vm3819_vm9 = vcmask 1031168   ;;  %vm4304_vm10 = vcmask 392192  }
  0x2e   :  { %v5534_v22 = vld [vmem:[%s8561_s1 + $0x78] sm:$0xff]  ;;  %v5543_v26 = vld [vmem:[%s8561_s1 + $0x88] sm:$0xff]  ;;  %vm4569_vm11 = vcmask 556032  }
  0x2f   :  { %239 = vrot.lane.b32.xlu1 %v138_v29, %s5090_s29  ;;  %237 = vrot.lane.b32.xlu0 %v137_v30, %s5090_s29  ;;  %v5378_v29 = vld [vmem:[%s8561_s1 + $0x8] sm:$0xff]  ;;  %v5385_v30 = vld [vmem:[%s8561_s1 + $0x10] sm:$0xff] }
  0x33   :  { %243 = vrot.lane.b32.xlu1 %v140_v33, %s5090_s29  ;;  %241 = vrot.lane.b32.xlu0 %v139_v34, %s5090_s29  ;;  %v5404_v33 = vld [vmem:[%s8561_s1 + $0x40] sm:$0xff]  ;;  %v5411_v34 = vld [vmem:[%s8561_s1 + $0x50] sm:$0xff] }
  0x37   :  { %247 = vrot.lane.b32.xlu1 %v142_v37, %s5090_s29  ;;  %245 = vrot.lane.b32.xlu0 %v141_v38, %s5090_s29  ;;  %v5432_v37 = vld [vmem:[%s8561_s1 + $0x80] sm:$0xff] }
  0x3b   :  { %251 = vrot.lane.b32.xlu1 %v144_v41, %s5090_s29  ;;  %249 = vrot.lane.b32.xlu0 %v143_v42, %s5090_s29 }
  0x3f   :  { %255 = vrot.lane.b32.xlu1 %v146_v45, %s5090_s29  ;;  %253 = vrot.lane.b32.xlu0 %v145_v46, %s5090_s29  ;;  %v5452_v45 = vld [vmem:[%s8561_s1 + $0xa0] sm:$0xff] }
  0x43   :  { %259 = vrot.lane.b32.xlu1 %v148_v49, %s5090_s29  ;;  %257 = vrot.lane.b32.xlu0 %v147_v50, %s5090_s29 }
  0x47   :  { %263 = vrot.lane.b32.xlu1 %v150_v53, %s5090_s29  ;;  %261 = vrot.lane.b32.xlu0 %v149_v54, %s5090_s29  ;;  %v5466_v54 = vld [vmem:[%s8561_s1] sm:$0xff] }
  0x4b   :  { %267 = vrot.lane.b32.xlu1 %v152_v57, %s5090_s29  ;;  %265 = vrot.lane.b32.xlu0 %v151_v58, %s5090_s29 }
  0x4f   :  { %271 = vrot.lane.b32.xlu1 %v154_v61, %s5090_s29  ;;  %269 = vrot.lane.b32.xlu0 %v153_v62, %s5090_s29  ;;  %v5480_v61 = vld [vmem:[%s8561_s1 + $0x18] sm:$0xff] }
  0x53   :  { %275 = vrot.lane.b32.xlu1 %v156_v3, %s5090_s29  ;;  %273 = vrot.lane.b32.xlu0 %v155_v4, %s5090_s29 }
  0x57   :  { %279 = vrot.lane.b32.xlu1 %v158_v7, %s5090_s29  ;;  %277 = vrot.lane.b32.xlu0 %v157_v8, %s5090_s29 }
  0x5b   :  { %283 = vrot.lane.b32.xlu1 %v160_v11, %s5090_s29  ;;  %281 = vrot.lane.b32.xlu0 %v159_v12, %s5090_s29 }
  0x5f   :  { %287 = vrot.lane.b32.xlu1 %v162_v15, %s5090_s29  ;;  %285 = vrot.lane.b32.xlu0 %v161_v16, %s5090_s29 }
  0x63   :  { %291 = vrot.lane.b32.xlu1 %v164_v19, %s5090_s29  ;;  %289 = vrot.lane.b32.xlu0 %v163_v20, %s5090_s29 }
  0x67   :  { %295 = vrot.lane.b32.xlu1 %v166_v23, %s5090_s29  ;;  %293 = vrot.lane.b32.xlu0 %v165_v24, %s5090_s29 }
  0x6b   :  { %299 = vrot.lane.b32.xlu1 %v168_v27, %s5090_s29  ;;  %297 = vrot.lane.b32.xlu0 %v167_v28, %s5090_s29 }
  0x6f   :  { %489 = vperm.xlu1 %4739, %v5378_v29   ;;  %685 = vperm.xlu0 %4741, %v5378_v29  }
  0x73   :  { %494 = vperm.xlu1 %4739, %v5385_v30   ;;  %697 = vperm.xlu0 %4741, %v5390_v31  }
  0x77   :  { %504 = vperm.xlu1 %4739, %v5390_v31   ;;  %705 = vperm.xlu0 %4741, %v5397_v32  }
  0x7b   :  { %514 = vperm.xlu1 %4739, %v5397_v32   ;;  %713 = vperm.xlu0 %4741, %v5404_v33  }
  0x7f   :  { %524 = vperm.xlu1 %4739, %v5404_v33   ;;  %721 = vperm.xlu0 %4741, %v5411_v34  }
  0x83   :  { %534 = vperm.xlu1 %4739, %v5411_v34   ;;  %729 = vperm.xlu0 %4741, %v5418_v35  }
  0x87   :  { %544 = vperm.xlu1 %4739, %v5418_v35   ;;  %737 = vperm.xlu0 %4741, %v5425_v36  }
  0x89   :  { %v218_v38 = vpop.permute.xlu1 %217  ;;  %v214_v39 = vpop.permute.xlu0 %213 }
  0x8a   :  { %371 = vst.msk [vmem:[#allocation2 + $0x10] sm:$0xff] %vm367_vm2, %v218_v38  ;;  %368 = vst.msk [vmem:[#allocation2] sm:$0xff] %vm367_vm2, %v214_v39 }
  0x8b   :  { %554 = vperm.xlu1 %4739, %v5425_v36   ;;  %745 = vperm.xlu0 %4741, %v5432_v37  }
  0x8d   :  { %v220_v41 = vpop.permute.xlu1 %219  ;;  %v216_v42 = vpop.permute.xlu0 %215 }
  0x8e   :  { %v302_v43 = vsel %vm35_vm0, %v218_v38, %v220_v41  ;;  %v301_v44 = vsel %vm35_vm0, %v214_v39, %v216_v42  ;;  %v5552_v39 = vld [vmem:[%s8561_s1 + $0x98] sm:$0xff] }
  0x8f   :  { %372 = vst.msk [vmem:[#allocation2 + $0x18] sm:$0xff] %vm369_vm3, %v302_v43  ;;  %370 = vst.msk [vmem:[#allocation2 + $0x8] sm:$0xff] %vm369_vm3, %v301_v44  ;;  %564 = vperm.xlu1 %4739, %v5432_v37   ;;  %753 = vperm.xlu0 %4741, %v5441_v40   ;;  %v5561_v44 = vld [vmem:[%s8561_s1 + $0xa8] sm:$0xff] }
  0x91   :  { %v224_v46 = vpop.permute.xlu1 %223  ;;  %v222_v47 = vpop.permute.xlu0 %221 }
  0x92   :  { %v303_v48 = vsel %vm35_vm0, %v222_v47, %v224_v46  ;;  %373 = vst.msk [vmem:[#allocation2 + $0x20] sm:$0xff] %vm367_vm2, %v222_v47 }
  0x93   :  { %374 = vst.msk [vmem:[#allocation2 + $0x28] sm:$0xff] %vm369_vm3, %v303_v48  ;;  %574 = vperm.xlu1 %4739, %v5441_v40   ;;  %761 = vperm.xlu0 %4741, %v5452_v45  }
  0x95   :  { %v228_v49 = vpop.permute.xlu1 %227  ;;  %v226_v50 = vpop.permute.xlu0 %225 }
  0x96   :  { %v304_v51 = vsel %vm35_vm0, %v226_v50, %v228_v49  ;;  %375 = vst.msk [vmem:[#allocation2 + $0x30] sm:$0xff] %vm367_vm2, %v226_v50 }
  0x97   :  { %376 = vst.msk [vmem:[#allocation2 + $0x38] sm:$0xff] %vm369_vm3, %v304_v51  ;;  %584 = vperm.xlu1 %4739, %v5452_v45  }
  0x99   :  { %v232_v52 = vpop.permute.xlu1 %231  ;;  %v230_v53 = vpop.permute.xlu0 %229 }
  0x9a   :  { %v305_v55 = vsel %vm35_vm0, %v230_v53, %v232_v52  ;;  %377 = vst.msk [vmem:[#allocation2 + $0x40] sm:$0xff] %vm367_vm2, %v230_v53 }
  0x9b   :  { %378 = vst.msk [vmem:[#allocation2 + $0x48] sm:$0xff] %vm369_vm3, %v305_v55  ;;  %4740 = vset.pattern.permute.xlu1 %v5091_v0 }
  0x9c   :  { %681 = vperm.xlu1 %4740, %v5466_v54  }
  0x9d   :  { %v236_v56 = vpop.permute.xlu1 %235  ;;  %v234_v57 = vpop.permute.xlu0 %233 }
  0x9e   :  { %v306_v58 = vsel %vm35_vm0, %v234_v57, %v236_v56  ;;  %379 = vst.msk [vmem:[#allocation2 + $0x50] sm:$0xff] %vm367_vm2, %v234_v57 }
  0x9f   :  { %380 = vst.msk [vmem:[#allocation2 + $0x58] sm:$0xff] %vm369_vm3, %v306_v58 }
  0xa0   :  { %689 = vperm.xlu1 %4740, %v5385_v30  }
  0xa1   :  { %v240_v59 = vpop.permute.xlu1 %239  ;;  %v238_v60 = vpop.permute.xlu0 %237 }
  0xa2   :  { %v307_v0 = vsel %vm35_vm0, %v238_v60, %v240_v59  ;;  %381 = vst.msk [vmem:[#allocation2 + $0x60] sm:$0xff] %vm367_vm2, %v238_v60 }
  0xa3   :  { %382 = vst.msk [vmem:[#allocation2 + $0x68] sm:$0xff] %vm369_vm3, %v307_v0 }
  0xa4   :  { %693 = vperm.xlu1 %4740, %v5480_v61  }
  0xa5   :  { %v244_v62 = vpop.permute.xlu1 %243  ;;  %v242_v63 = vpop.permute.xlu0 %241 }
  0xa6   :  { %v308_v3 = vsel %vm35_vm0, %v242_v63, %v244_v62  ;;  %383 = vst.msk [vmem:[#allocation2 + $0x70] sm:$0xff] %vm367_vm2, %v242_v63 }
  0xa7   :  { %384 = vst.msk [vmem:[#allocation2 + $0x78] sm:$0xff] %vm369_vm3, %v308_v3 }
  0xa8   :  { %701 = vperm.xlu1 %4740, %v5489_v2  }
  0xa9   :  { %v248_v4 = vpop.permute.xlu1 %247  ;;  %v246_v5 = vpop.permute.xlu0 %245 }
  0xaa   :  { %v309_v7 = vsel %vm35_vm0, %v246_v5, %v248_v4  ;;  %385 = vst.msk [vmem:[#allocation2 + $0x80] sm:$0xff] %vm367_vm2, %v246_v5 }
  0xab   :  { %386 = vst.msk [vmem:[#allocation2 + $0x88] sm:$0xff] %vm369_vm3, %v309_v7 }
  0xac   :  { %709 = vperm.xlu1 %4740, %v5498_v6  }
  0xad   :  { %v252_v8 = vpop.permute.xlu1 %251  ;;  %v250_v9 = vpop.permute.xlu0 %249 }
  0xae   :  { %v310_v11 = vsel %vm35_vm0, %v250_v9, %v252_v8  ;;  %387 = vst.msk [vmem:[#allocation2 + $0x90] sm:$0xff] %vm367_vm2, %v250_v9  ;;  %v5094_v8 = vmov 6  }
  0xaf   :  { %388 = vst.msk [vmem:[#allocation2 + $0x98] sm:$0xff] %vm369_vm3, %v310_v11  ;;  %4742 = vset.pattern.permute.xlu0 %v5094_v8 }
  0xb0   :  { %717 = vperm.xlu1 %4740, %v5507_v10  }
  0xb1   :  { %v256_v12 = vpop.permute.xlu1 %255  ;;  %v254_v13 = vpop.permute.xlu0 %253 }
  0xb2   :  { %v311_v15 = vsel %vm35_vm0, %v254_v13, %v256_v12  ;;  %389 = vst.msk [vmem:[#allocation2 + $0xa0] sm:$0xff] %vm367_vm2, %v254_v13 }
  0xb3   :  { %390 = vst.msk [vmem:[#allocation2 + $0xa8] sm:$0xff] %vm369_vm3, %v311_v15 }
  0xb4   :  { %725 = vperm.xlu1 %4740, %v5516_v14  }
  0xb5   :  { %v260_v16 = vpop.permute.xlu1 %259  ;;  %v258_v17 = vpop.permute.xlu0 %257 }
  0xb6   :  { %v312_v19 = vsel %vm35_vm0, %v258_v17, %v260_v16  ;;  %391 = vst.msk [vmem:[#allocation2 + $0xb0] sm:$0xff] %vm367_vm2, %v258_v17 }
  0xb7   :  { %392 = vst.msk [vmem:[#allocation2 + $0xb8] sm:$0xff] %vm369_vm3, %v312_v19 }
  0xb8   :  { %733 = vperm.xlu1 %4740, %v5525_v18  }
  0xb9   :  { %v264_v20 = vpop.permute.xlu1 %263  ;;  %v262_v21 = vpop.permute.xlu0 %261 }
  0xba   :  { %v313_v23 = vsel %vm35_vm0, %v262_v21, %v264_v20  ;;  %393 = vst.msk [vmem:[#allocation2 + $0xc0] sm:$0xff] %vm367_vm2, %v262_v21 }
  0xbb   :  { %394 = vst.msk [vmem:[#allocation2 + $0xc8] sm:$0xff] %vm369_vm3, %v313_v23  ;;  %v5607_v23 = vld [vmem:[#allocation2] sm:$0xff] }
  0xbc   :  { %741 = vperm.xlu1 %4740, %v5534_v22  }
  0xbd   :  { %v268_v24 = vpop.permute.xlu1 %267  ;;  %v266_v25 = vpop.permute.xlu0 %265 }
  0xbe   :  { %v314_v27 = vsel %vm35_vm0, %v266_v25, %v268_v24  ;;  %395 = vst.msk [vmem:[#allocation2 + $0xd0] sm:$0xff] %vm367_vm2, %v266_v25  ;;  %v5609_v24 = vld [vmem:[#allocation2 + $0x8] sm:$0xff] }
  0xbf   :  { %396 = vst.msk [vmem:[#allocation2 + $0xd8] sm:$0xff] %vm369_vm3, %v314_v27 }
  0xc0   :  { %749 = vperm.xlu1 %4740, %v5543_v26  }
  0xc1   :  { %v272_v28 = vpop.permute.xlu1 %271  ;;  %v270_v38 = vpop.permute.xlu0 %269 }
  0xc2   :  { %v315_v41 = vsel %vm35_vm0, %v270_v38, %v272_v28  ;;  %397 = vst.msk [vmem:[#allocation2 + $0xe0] sm:$0xff] %vm367_vm2, %v270_v38  ;;  %v5615_v38 = vld [vmem:[#allocation2 + $0x10] sm:$0xff] }
  0xc3   :  { %398 = vst.msk [vmem:[#allocation2 + $0xe8] sm:$0xff] %vm369_vm3, %v315_v41  ;;  %v5617_v41 = vld [vmem:[#allocation2 + $0x18] sm:$0xff] }
  0xc4   :  { %757 = vperm.xlu1 %4740, %v5552_v39  }
  0xc5   :  { %v276_v42 = vpop.permute.xlu1 %275  ;;  %v274_v43 = vpop.permute.xlu0 %273 }
  0xc6   :  { %v316_v46 = vsel %vm35_vm0, %v274_v43, %v276_v42  ;;  %399 = vst.msk [vmem:[#allocation2 + $0xf0] sm:$0xff] %vm367_vm2, %v274_v43 }
  0xc7   :  { %400 = vst.msk [vmem:[#allocation2 + $0xf8] sm:$0xff] %vm369_vm3, %v316_v46 }
  0xc8   :  { %765 = vperm.xlu1 %4740, %v5561_v44  }
  0xc9   :  { %v280_v47 = vpop.permute.xlu1 %279  ;;  %v278_v48 = vpop.permute.xlu0 %277 }
  0xca   :  { %v317_v49 = vsel %vm35_vm0, %v278_v48, %v280_v47  ;;  %401 = vst.msk [vmem:[#allocation2 + $0x100] sm:$0xff] %vm367_vm2, %v278_v48  ;;  %v5623_v47 = vld [vmem:[#allocation2 + $0x20] sm:$0xff]  ;;  %v5625_v48 = vld [vmem:[#allocation2 + $0x28] sm:$0xff] }
  0xcb   :  { %402 = vst.msk [vmem:[#allocation2 + $0x108] sm:$0xff] %vm369_vm3, %v317_v49 }
  0xcc   :  { %4743 = vset.pattern.permute.xlu1 %v5094_v8 }
  0xcd   :  { %v284_v50 = vpop.permute.xlu1 %283  ;;  %v282_v51 = vpop.permute.xlu0 %281 }
  0xce   :  { %v318_v52 = vsel %vm35_vm0, %v282_v51, %v284_v50  ;;  %403 = vst.msk [vmem:[#allocation2 + $0x110] sm:$0xff] %vm367_vm2, %v282_v51 }
  0xcf   :  { %404 = vst.msk [vmem:[#allocation2 + $0x118] sm:$0xff] %vm369_vm3, %v318_v52  ;;  %v5631_v52 = vld [vmem:[#allocation2 + $0x30] sm:$0xff] }
  0xd1   :  { %v288_v53 = vpop.permute.xlu1 %287  ;;  %v286_v55 = vpop.permute.xlu0 %285 }
  0xd2   :  { %v319_v56 = vsel %vm35_vm0, %v286_v55, %v288_v53  ;;  %405 = vst.msk [vmem:[#allocation2 + $0x120] sm:$0xff] %vm367_vm2, %v286_v55  ;;  %v5633_v53 = vld [vmem:[#allocation2 + $0x38] sm:$0xff] }
  0xd3   :  { %406 = vst.msk [vmem:[#allocation2 + $0x128] sm:$0xff] %vm369_vm3, %v319_v56 }
  0xd5   :  { %v292_v57 = vpop.permute.xlu1 %291  ;;  %v290_v58 = vpop.permute.xlu0 %289 }
  0xd6   :  { %v320_v59 = vsel %vm35_vm0, %v290_v58, %v292_v57  ;;  %407 = vst.msk [vmem:[#allocation2 + $0x130] sm:$0xff] %vm367_vm2, %v290_v58  ;;  %v5639_v58 = vld [vmem:[#allocation2 + $0x40] sm:$0xff] }
  0xd7   :  { %408 = vst.msk [vmem:[#allocation2 + $0x138] sm:$0xff] %vm369_vm3, %v320_v59  ;;  %v5641_v59 = vld [vmem:[#allocation2 + $0x48] sm:$0xff] }
  0xd9   :  { %v296_v60 = vpop.permute.xlu1 %295  ;;  %v294_v0 = vpop.permute.xlu0 %293 }
  0xda   :  { %v321_v62 = vsel %vm35_vm0, %v294_v0, %v296_v60  ;;  %409 = vst.msk [vmem:[#allocation2 + $0x140] sm:$0xff] %vm367_vm2, %v294_v0 }
  0xdb   :  { %410 = vst.msk [vmem:[#allocation2 + $0x148] sm:$0xff] %vm369_vm3, %v321_v62 }
  0xdd   :  { %v300_v63 = vpop.permute.xlu1 %299  ;;  %v298_v3 = vpop.permute.xlu0 %297 }
  0xde   :  { %v322_v4 = vsel %vm35_vm0, %v298_v3, %v300_v63  ;;  %411 = vst.msk [vmem:[#allocation2 + $0x150] sm:$0xff] %vm367_vm2, %v298_v3  ;;  %v5647_v63 = vld [vmem:[#allocation2 + $0x50] sm:$0xff]  ;;  %v5649_v3 = vld [vmem:[#allocation2 + $0x58] sm:$0xff] }
  0xdf   :  { %412 = vst.msk [vmem:[#allocation2 + $0x158] sm:$0xff] %vm369_vm3, %v322_v4 }
  0xee   :  { %v5585_v5 = vpop.permute.xlu1 %489  ;;  %v686_v28 = vpop.permute.xlu0 %685 }
  0xef   :  { %8796 = vst [vmem:[#allocation9_spill] sm:$0xff] %v5585_v5  ;;  %v770_v43 = vmul.f32 %v686_v28, %v5615_v38  ;;  %v771_v46 = vmul.f32 %v686_v28, %v5617_v41  ;;  %v5743_v5 = vld [vmem:[#allocation2 + $0x110] sm:$0xff] }
  0xf0   :  { %8811 = vst [vmem:[#allocation24_spill] sm:$0xff] %v5743_v5 }
  0xf2   :  { %v5587_v7 = vpop.permute.xlu1 %494  ;;  %v698_v57 = vpop.permute.xlu0 %697 }
  0xf3   :  { %8797 = vst [vmem:[#allocation10_spill] sm:$0xff] %v5587_v7  ;;  %v776_v60 = vmul.f32 %v698_v57, %v5639_v58  ;;  %v777_v0 = vmul.f32 %v698_v57, %v5641_v59  ;;  %v5673_v57 = vld [vmem:[#allocation2 + $0x88] sm:$0xff] }
  0xf6   :  { %v5589_v9 = vpop.permute.xlu1 %504 }
  0xf7   :  { %8798 = vst [vmem:[#allocation11_spill] sm:$0xff] %v5589_v9  ;;  %v5735_v9 = vld [vmem:[#allocation2 + $0x100] sm:$0xff] }
  0xf8   :  { %8809 = vst [vmem:[#allocation22_spill] sm:$0xff] %v5735_v9 }
  0xfa   :  { %v5591_v11 = vpop.permute.xlu1 %514 }
  0xfb   :  { %8799 = vst [vmem:[#allocation12_spill] sm:$0xff] %v5591_v11 }
  0xfe   :  { %v5593_v12 = vpop.permute.xlu1 %524 }
  0xff   :  { %8800 = vst [vmem:[#allocation13_spill] sm:$0xff] %v5593_v12  ;;  %v5727_v12 = vld [vmem:[#allocation2 + $0xf0] sm:$0xff] }
 0x100   :  { %8807 = vst [vmem:[#allocation20_spill] sm:$0xff] %v5727_v12 }
 0x102   :  { %v5595_v13 = vpop.permute.xlu1 %534 }
 0x103   :  { %8801 = vst [vmem:[#allocation14_spill] sm:$0xff] %v5595_v13 }
 0x106   :  { %v5597_v15 = vpop.permute.xlu1 %544 }
 0x107   :  { %8802 = vst [vmem:[#allocation15_spill] sm:$0xff] %v5597_v15  ;;  %v5719_v15 = vld [vmem:[#allocation2 + $0xe0] sm:$0xff] }
 0x10a   :  { %v5599_v16 = vpop.permute.xlu1 %554 }
 0x10b   :  { %8803 = vst [vmem:[#allocation16_spill] sm:$0xff] %v5599_v16 }
 0x10e   :  { %v5601_v17 = vpop.permute.xlu1 %564 }
 0x10f   :  { %8804 = vst [vmem:[#allocation17_spill] sm:$0xff] %v5601_v17  ;;  %v5711_v17 = vld [vmem:[#allocation2 + $0xd0] sm:$0xff] }
 0x112   :  { %v5603_v19 = vpop.permute.xlu1 %574 }
 0x113   :  { %8805 = vst [vmem:[#allocation18_spill] sm:$0xff] %v5603_v19 }
 0x116   :  { %v5605_v20 = vpop.permute.xlu1 %584 }
 0x117   :  { %8806 = vst [vmem:[#allocation19_spill] sm:$0xff] %v5605_v20  ;;  %v5703_v20 = vld [vmem:[#allocation2 + $0xc0] sm:$0xff] }
 0x11b   :  { %v682_v21 = vpop.permute.xlu1 %681 }
 0x11c   :  { %v768_v25 = vmul.f32 %v682_v21, %v5607_v23  ;;  %v769_v27 = vmul.f32 %v682_v21, %v5609_v24  ;;  %v706_v21 = vpop.permute.xlu0 %705 }
 0x11e   :  { %858 = vrot.lane.b32.xlu1 %v769_v27, %s5095_s16  ;;  %856 = vrot.lane.b32.xlu0 %v768_v25, %s5095_s16  ;;  %v5655_v25 = vld [vmem:[#allocation2 + $0x60] sm:$0xff]  ;;  %v5657_v27 = vld [vmem:[#allocation2 + $0x68] sm:$0xff] }
 0x11f   :  { %v690_v42 = vpop.permute.xlu1 %689  ;;  %v780_v28 = vmul.f32 %v706_v21, %v5655_v25 }
 0x120   :  { %v772_v49 = vmul.f32 %v690_v42, %v5623_v47  ;;  %v773_v50 = vmul.f32 %v690_v42, %v5625_v48  ;;  %v781_v42 = vmul.f32 %v706_v21, %v5657_v27 }
 0x122   :  { %862 = vrot.lane.b32.xlu1 %v771_v46, %s5095_s16  ;;  %860 = vrot.lane.b32.xlu0 %v770_v43, %s5095_s16  ;;  %v5663_v46 = vld [vmem:[#allocation2 + $0x70] sm:$0xff] }
 0x123   :  { %v694_v51 = vpop.permute.xlu1 %693 }
 0x124   :  { %v774_v55 = vmul.f32 %v694_v51, %v5631_v52  ;;  %v775_v56 = vmul.f32 %v694_v51, %v5633_v53 }
 0x126   :  { %866 = vrot.lane.b32.xlu1 %v773_v50, %s5095_s16  ;;  %864 = vrot.lane.b32.xlu0 %v772_v49, %s5095_s16  ;;  %v5665_v49 = vld [vmem:[#allocation2 + $0x78] sm:$0xff] }
 0x127   :  { %v702_v62 = vpop.permute.xlu1 %701 }
 0x128   :  { %v778_v4 = vmul.f32 %v702_v62, %v5647_v63  ;;  %v779_v8 = vmul.f32 %v702_v62, %v5649_v3 }
 0x12a   :  { %870 = vrot.lane.b32.xlu1 %v775_v56, %s5095_s16  ;;  %868 = vrot.lane.b32.xlu0 %v774_v55, %s5095_s16  ;;  %v714_v55 = vpop.permute.xlu0 %713  ;;  %v5671_v56 = vld [vmem:[#allocation2 + $0x80] sm:$0xff] }
 0x12b   :  { %v710_v43 = vpop.permute.xlu1 %709 }
 0x12c   :  { %v782_v50 = vmul.f32 %v710_v43, %v5663_v46  ;;  %v783_v51 = vmul.f32 %v710_v43, %v5665_v49  ;;  %v5687_v43 = vld [vmem:[#allocation2 + $0xa0] sm:$0xff] }
 0x12e   :  { %874 = vrot.lane.b32.xlu1 %v777_v0, %s5095_s16  ;;  %872 = vrot.lane.b32.xlu0 %v776_v60, %s5095_s16  ;;  %v784_v60 = vmul.f32 %v714_v55, %v5671_v56  ;;  %v785_v0 = vmul.f32 %v714_v55, %v5673_v57 }
 0x12f   :  { %v718_v62 = vpop.permute.xlu1 %717 }
 0x132   :  { %878 = vrot.lane.b32.xlu1 %v779_v8, %s5095_s16  ;;  %876 = vrot.lane.b32.xlu0 %v778_v4, %s5095_s16  ;;  %v5679_v4 = vld [vmem:[#allocation2 + $0x90] sm:$0xff]  ;;  %v5681_v8 = vld [vmem:[#allocation2 + $0x98] sm:$0xff] }
 0x133   :  { %v786_v21 = vmul.f32 %v718_v62, %v5679_v4 }
 0x136   :  { %882 = vrot.lane.b32.xlu1 %v781_v42, %s5095_s16  ;;  %880 = vrot.lane.b32.xlu0 %v780_v28, %s5095_s16  ;;  %v787_v28 = vmul.f32 %v718_v62, %v5681_v8  ;;  %v722_v42 = vpop.permute.xlu0 %721  ;;  %v5697_v62 = vld [vmem:[#allocation2 + $0xb8] sm:$0xff] }
 0x13a   :  { %886 = vrot.lane.b32.xlu1 %v783_v51, %s5095_s16  ;;  %884 = vrot.lane.b32.xlu0 %v782_v50, %s5095_s16  ;;  %v5689_v50 = vld [vmem:[#allocation2 + $0xa8] sm:$0xff]  ;;  %v788_v51 = vmul.f32 %v722_v42, %v5687_v43  ;;  %v730_v1 = vpop.permute.xlu0 %729 }
 0x13b   :  { %v789_v55 = vmul.f32 %v722_v42, %v5689_v50  ;;  %v5705_v42 = vld [vmem:[#allocation2 + $0xc8] sm:$0xff] }
 0x13e   :  { %890 = vrot.lane.b32.xlu1 %v785_v0, %s5095_s16  ;;  %888 = vrot.lane.b32.xlu0 %v784_v60, %s5095_s16  ;;  %v726_v60 = vpop.permute.xlu1 %725  ;;  %v5695_v0 = vld [vmem:[#allocation2 + $0xb0] sm:$0xff]  ;;  %v738_v16 = vpop.permute.xlu0 %737 }
 0x142   :  { %894 = vrot.lane.b32.xlu1 %v787_v28, %s5095_s16  ;;  %892 = vrot.lane.b32.xlu0 %v786_v21, %s5095_s16  ;;  %v790_v28 = vmul.f32 %v726_v60, %v5695_v0  ;;  %v791_v21 = vmul.f32 %v726_v60, %v5697_v62  ;;  %v734_v19 = vpop.permute.xlu1 %733  ;;  %v5713_v60 = vld [vmem:[#allocation2 + $0xd8] sm:$0xff]  ;;  %v746_v11 = vpop.permute.xlu0 %745 }
 0x146   :  { %898 = vrot.lane.b32.xlu1 %v789_v55, %s5095_s16  ;;  %896 = vrot.lane.b32.xlu0 %v788_v51, %s5095_s16  ;;  %v792_v55 = vmul.f32 %v730_v1, %v5703_v20  ;;  %v793_v51 = vmul.f32 %v730_v1, %v5705_v42  ;;  %v5721_v1 = vld [vmem:[#allocation2 + $0xe8] sm:$0xff]  ;;  %v742_v13 = vpop.permute.xlu1 %741 }
 0x14a   :  { %902 = vrot.lane.b32.xlu1 %v791_v21, %s5095_s16  ;;  %900 = vrot.lane.b32.xlu0 %v790_v28, %s5095_s16  ;;  %v794_v21 = vmul.f32 %v734_v19, %v5711_v17  ;;  %v795_v28 = vmul.f32 %v734_v19, %v5713_v60  ;;  %v5729_v19 = vld [vmem:[#allocation2 + $0xf8] sm:$0xff]  ;;  %v750_v7 = vpop.permute.xlu1 %749 }
 0x14b   :  { %8808 = vst [vmem:[#allocation21_spill] sm:$0xff] %v5729_v19 }
 0x14e   :  { %906 = vrot.lane.b32.xlu1 %v793_v51, %s5095_s16  ;;  %904 = vrot.lane.b32.xlu0 %v792_v55, %s5095_s16  ;;  %v796_v51 = vmul.f32 %v738_v16, %v5719_v15  ;;  %v797_v55 = vmul.f32 %v738_v16, %v5721_v1  ;;  %v5737_v16 = vld [vmem:[#allocation2 + $0x108] sm:$0xff] }
 0x14f   :  { %8810 = vst [vmem:[#allocation23_spill] sm:$0xff] %v5737_v16 }
 0x152   :  { %910 = vrot.lane.b32.xlu1 %v795_v28, %s5095_s16  ;;  %908 = vrot.lane.b32.xlu0 %v794_v21, %s5095_s16  ;;  %v798_v28 = vmul.f32 %v742_v13, %v5727_v12  ;;  %v799_v21 = vmul.f32 %v742_v13, %v5729_v19  ;;  %v5745_v13 = vld [vmem:[#allocation2 + $0x118] sm:$0xff]  ;;  %v754_v19 = vpop.permute.xlu0 %753  ;;  %v5765_v12 = vld [vmem:[#allocation2 + $0x140] sm:$0xff] }
 0x153   :  { %8812 = vst [vmem:[#allocation25_spill] sm:$0xff] %v5745_v13  ;;  %8817 = vst [vmem:[#allocation30_spill] sm:$0xff] %v5765_v12 }
 0x156   :  { %914 = vrot.lane.b32.xlu1 %v797_v55, %s5095_s16  ;;  %912 = vrot.lane.b32.xlu0 %v796_v51, %s5095_s16  ;;  %v800_v55 = vmul.f32 %v746_v11, %v5735_v9  ;;  %v801_v51 = vmul.f32 %v746_v11, %v5737_v16  ;;  %v5751_v9 = vld [vmem:[#allocation2 + $0x120] sm:$0xff]  ;;  %v5753_v11 = vld [vmem:[#allocation2 + $0x128] sm:$0xff]  ;;  %v758_v16 = vpop.permute.xlu1 %757 }
 0x157   :  { %8813 = vst [vmem:[#allocation26_spill] sm:$0xff] %v5751_v9  ;;  %8814 = vst [vmem:[#allocation27_spill] sm:$0xff] %v5753_v11 }
 0x15a   :  { %918 = vrot.lane.b32.xlu1 %v799_v21, %s5095_s16  ;;  %916 = vrot.lane.b32.xlu0 %v798_v28, %s5095_s16  ;;  %v802_v21 = vmul.f32 %v750_v7, %v5743_v5  ;;  %v803_v28 = vmul.f32 %v750_v7, %v5745_v13  ;;  %v5759_v5 = vld [vmem:[#allocation2 + $0x130] sm:$0xff]  ;;  %v5761_v7 = vld [vmem:[#allocation2 + $0x138] sm:$0xff]  ;;  %v762_v13 = vpop.permute.xlu0 %761 }
 0x15b   :  { %8815 = vst [vmem:[#allocation28_spill] sm:$0xff] %v5759_v5  ;;  %8816 = vst [vmem:[#allocation29_spill] sm:$0xff] %v5761_v7 }
 0x15e   :  { %922 = vrot.lane.b32.xlu1 %v801_v51, %s5095_s16  ;;  %920 = vrot.lane.b32.xlu0 %v800_v55, %s5095_s16  ;;  %v804_v51 = vmul.f32 %v754_v19, %v5751_v9  ;;  %v805_v55 = vmul.f32 %v754_v19, %v5753_v11  ;;  %v5769_v19 = vld [vmem:[#allocation2 + $0x148] sm:$0xff]  ;;  %v766_v11 = vpop.permute.xlu1 %765 }
 0x15f   :  { %8818 = vst [vmem:[#allocation31_spill] sm:$0xff] %v5769_v19 }
 0x162   :  { %926 = vrot.lane.b32.xlu1 %v803_v28, %s5095_s16  ;;  %924 = vrot.lane.b32.xlu0 %v802_v21, %s5095_s16  ;;  %v806_v28 = vmul.f32 %v758_v16, %v5759_v5  ;;  %v807_v21 = vmul.f32 %v758_v16, %v5761_v7  ;;  %v5775_v5 = vld [vmem:[#allocation2 + $0x150] sm:$0xff]  ;;  %v5777_v16 = vld [vmem:[#allocation2 + $0x158] sm:$0xff] }
 0x163   :  { %8819 = vst [vmem:[#allocation32_spill] sm:$0xff] %v5775_v5  ;;  %8820 = vst [vmem:[#allocation33_spill] sm:$0xff] %v5777_v16  ;;  %v810_v7 = vmul.f32 %v766_v11, %v5775_v5 }
 0x166   :  { %930 = vrot.lane.b32.xlu1 %v805_v55, %s5095_s16  ;;  %928 = vrot.lane.b32.xlu0 %v804_v51, %s5095_s16  ;;  %v808_v55 = vmul.f32 %v762_v13, %v5765_v12  ;;  %v809_v51 = vmul.f32 %v762_v13, %v5769_v19 }
 0x16a   :  { %934 = vrot.lane.b32.xlu1 %v807_v21, %s5095_s16  ;;  %932 = vrot.lane.b32.xlu0 %v806_v28, %s5095_s16  ;;  %v811_v21 = vmul.f32 %v766_v11, %v5777_v16 }
 0x16e   :  { %938 = vrot.lane.b32.xlu1 %v809_v51, %s5095_s16  ;;  %936 = vrot.lane.b32.xlu0 %v808_v55, %s5095_s16 }
 0x172   :  { %942 = vrot.lane.b32.xlu1 %v811_v21, %s5095_s16  ;;  %940 = vrot.lane.b32.xlu0 %v810_v7, %s5095_s16 }
 0x176   :  { %1060 = vperm.xlu1 %4743, %v5378_v29   ;;  %1056 = vperm.xlu0 %4742, %v5466_v54  }
 0x17a   :  { %1064 = vperm.xlu1 %4743, %v5385_v30   ;;  %1068 = vperm.xlu0 %4742, %v5480_v61  }
 0x17e   :  { %1072 = vperm.xlu1 %4743, %v5390_v31   ;;  %1076 = vperm.xlu0 %4742, %v5489_v2  }
 0x182   :  { %1080 = vperm.xlu1 %4743, %v5397_v32   ;;  %1084 = vperm.xlu0 %4742, %v5498_v6  }
 0x186   :  { %1088 = vperm.xlu1 %4743, %v5404_v33   ;;  %1092 = vperm.xlu0 %4742, %v5507_v10  }
 0x18a   :  { %1096 = vperm.xlu1 %4743, %v5411_v34   ;;  %1100 = vperm.xlu0 %4742, %v5516_v14  }
 0x18e   :  { %1104 = vperm.xlu1 %4743, %v5418_v35   ;;  %1108 = vperm.xlu0 %4742, %v5525_v18  }
 0x190   :  { %v5797_v29 = vpop.permute.xlu1 %858  ;;  %v5799_v30 = vpop.permute.xlu0 %856 }
 0x191   :  { %8821 = vst [vmem:[#allocation34_spill] sm:$0xff] %v5797_v29  ;;  %8822 = vst [vmem:[#allocation35_spill] sm:$0xff] %v5799_v30 }
 0x192   :  { %1112 = vperm.xlu1 %4743, %v5425_v36   ;;  %1116 = vperm.xlu0 %4742, %v5534_v22  }
 0x194   :  { %v5803_v31 = vpop.permute.xlu1 %862  ;;  %v5805_v32 = vpop.permute.xlu0 %860 }
 0x195   :  { %8823 = vst [vmem:[#allocation36_spill] sm:$0xff] %v5803_v31  ;;  %8824 = vst [vmem:[#allocation37_spill] sm:$0xff] %v5805_v32  ;;  %v8873_v31 = vld [vmem:[#allocation29_spill] sm:$0xff] }
 0x196   :  { %1120 = vperm.xlu1 %4743, %v5432_v37   ;;  %1124 = vperm.xlu0 %4742, %v5543_v26  }
 0x198   :  { %v5809_v33 = vpop.permute.xlu1 %866  ;;  %v5811_v34 = vpop.permute.xlu0 %864 }
 0x199   :  { %8825 = vst [vmem:[#allocation38_spill] sm:$0xff] %v5809_v33  ;;  %8826 = vst [vmem:[#allocation39_spill] sm:$0xff] %v5811_v34 }
 0x19a   :  { %1128 = vperm.xlu1 %4743, %v5441_v40   ;;  %1132 = vperm.xlu0 %4742, %v5552_v39  }
 0x19c   :  { %v5815_v35 = vpop.permute.xlu1 %870  ;;  %v5817_v36 = vpop.permute.xlu0 %868 }
 0x19d   :  { %8827 = vst [vmem:[#allocation40_spill] sm:$0xff] %v5815_v35  ;;  %8828 = vst [vmem:[#allocation41_spill] sm:$0xff] %v5817_v36 }
 0x19e   :  { %1136 = vperm.xlu1 %4743, %v5452_v45   ;;  %1140 = vperm.xlu0 %4742, %v5561_v44  }
 0x1a0   :  { %v5821_v13 = vpop.permute.xlu1 %874  ;;  %v5823_v37 = vpop.permute.xlu0 %872 }
 0x1a1   :  { %8829 = vst [vmem:[#allocation42_spill] sm:$0xff] %v5821_v13  ;;  %8830 = vst [vmem:[#allocation43_spill] sm:$0xff] %v5823_v37 }
 0x1a4   :  { %v5825_v11 = vpop.permute.xlu1 %878  ;;  %v5827_v7 = vpop.permute.xlu0 %876 }
 0x1a5   :  { %8831 = vst [vmem:[#allocation44_spill] sm:$0xff] %v5825_v11  ;;  %8832 = vst [vmem:[#allocation45_spill] sm:$0xff] %v5827_v7 }
 0x1a8   :  { %v5829_v28 = vpop.permute.xlu1 %882  ;;  %v5831_v40 = vpop.permute.xlu0 %880 }
 0x1a9   :  { %8833 = vst [vmem:[#allocation46_spill] sm:$0xff] %v5829_v28  ;;  %8834 = vst [vmem:[#allocation47_spill] sm:$0xff] %v5831_v40 }
 0x1ac   :  { %v5833_v55 = vpop.permute.xlu1 %886  ;;  %v5835_v51 = vpop.permute.xlu0 %884 }
 0x1ad   :  { %8835 = vst [vmem:[#allocation48_spill] sm:$0xff] %v5833_v55  ;;  %8836 = vst [vmem:[#allocation49_spill] sm:$0xff] %v5835_v51 }
 0x1b0   :  { %v5837_v21 = vpop.permute.xlu1 %890  ;;  %v5839_v45 = vpop.permute.xlu0 %888 }
 0x1b1   :  { %8837 = vst [vmem:[#allocation50_spill] sm:$0xff] %v5837_v21  ;;  %8838 = vst [vmem:[#allocation51_spill] sm:$0xff] %v5839_v45 }
 0x1b4   :  { %v5841_v36 = vpop.permute.xlu1 %894  ;;  %v5843_v13 = vpop.permute.xlu0 %892 }
 0x1b5   :  { %8839 = vst [vmem:[#allocation52_spill] sm:$0xff] %v5841_v36  ;;  %8840 = vst [vmem:[#allocation53_spill] sm:$0xff] %v5843_v13 }
 0x1b8   :  { %v5845_v37 = vpop.permute.xlu1 %898  ;;  %v5847_v11 = vpop.permute.xlu0 %896 }
 0x1b9   :  { %8841 = vst [vmem:[#allocation54_spill] sm:$0xff] %v5845_v37  ;;  %8842 = vst [vmem:[#allocation55_spill] sm:$0xff] %v5847_v11  ;;  %v5096_v11 = vmov 1  }
 0x1ba   :  { %4744 = vset.pattern.permute.xlu1 %v5096_v11  ;;  %4745 = vset.pattern.permute.xlu0 %v5096_v11 }
 0x1bc   :  { %v5849_v7 = vpop.permute.xlu1 %902  ;;  %v5851_v28 = vpop.permute.xlu0 %900 }
 0x1bd   :  { %8843 = vst [vmem:[#allocation56_spill] sm:$0xff] %v5849_v7  ;;  %8844 = vst [vmem:[#allocation57_spill] sm:$0xff] %v5851_v28 }
 0x1c0   :  { %v5853_v40 = vpop.permute.xlu1 %906  ;;  %v5855_v55 = vpop.permute.xlu0 %904 }
 0x1c1   :  { %8845 = vst [vmem:[#allocation58_spill] sm:$0xff] %v5853_v40  ;;  %8846 = vst [vmem:[#allocation59_spill] sm:$0xff] %v5855_v55 }
 0x1c4   :  { %v5857_v51 = vpop.permute.xlu1 %910  ;;  %v5859_v21 = vpop.permute.xlu0 %908 }
 0x1c5   :  { %8847 = vst [vmem:[#allocation60_spill] sm:$0xff] %v5857_v51  ;;  %8848 = vst [vmem:[#allocation61_spill] sm:$0xff] %v5859_v21 }
 0x1c8   :  { %v5861_v45 = vpop.permute.xlu1 %914  ;;  %v5863_v36 = vpop.permute.xlu0 %912 }
 0x1c9   :  { %8849 = vst [vmem:[#allocation62_spill] sm:$0xff] %v5861_v45  ;;  %8850 = vst [vmem:[#allocation63_spill] sm:$0xff] %v5863_v36 }
 0x1cc   :  { %v5865_v13 = vpop.permute.xlu1 %918  ;;  %v5867_v37 = vpop.permute.xlu0 %916 }
 0x1cd   :  { %8851 = vst [vmem:[#allocation64_spill] sm:$0xff] %v5865_v13  ;;  %8852 = vst [vmem:[#allocation65_spill] sm:$0xff] %v5867_v37 }
 0x1d0   :  { %v5869_v28 = vpop.permute.xlu1 %922  ;;  %v5871_v40 = vpop.permute.xlu0 %920 }
 0x1d1   :  { %8853 = vst [vmem:[#allocation66_spill] sm:$0xff] %v5869_v28  ;;  %8854 = vst [vmem:[#allocation67_spill] sm:$0xff] %v5871_v40 }
 0x1d4   :  { %v5873_v55 = vpop.permute.xlu1 %926  ;;  %v5875_v51 = vpop.permute.xlu0 %924 }
 0x1d5   :  { %8855 = vst [vmem:[#allocation68_spill] sm:$0xff] %v5873_v55  ;;  %8856 = vst [vmem:[#allocation69_spill] sm:$0xff] %v5875_v51 }
 0x1d8   :  { %v5877_v21 = vpop.permute.xlu1 %930  ;;  %v5879_v45 = vpop.permute.xlu0 %928 }
 0x1d9   :  { %8857 = vst [vmem:[#allocation70_spill] sm:$0xff] %v5877_v21  ;;  %8858 = vst [vmem:[#allocation71_spill] sm:$0xff] %v5879_v45 }
 0x1dc   :  { %v5881_v36 = vpop.permute.xlu1 %934  ;;  %v5883_v13 = vpop.permute.xlu0 %932 }
 0x1dd   :  { %8859 = vst [vmem:[#allocation72_spill] sm:$0xff] %v5881_v36  ;;  %8860 = vst [vmem:[#allocation73_spill] sm:$0xff] %v5883_v13 }
 0x1e0   :  { %v5885_v37 = vpop.permute.xlu1 %938  ;;  %v5887_v7 = vpop.permute.xlu0 %936 }
 0x1e1   :  { %8861 = vst [vmem:[#allocation74_spill] sm:$0xff] %v5885_v37  ;;  %8862 = vst [vmem:[#allocation75_spill] sm:$0xff] %v5887_v7 }
 0x1e4   :  { %v5889_v11 = vpop.permute.xlu1 %942  ;;  %v5891_v28 = vpop.permute.xlu0 %940 }
 0x1e5   :  { %8863 = vst [vmem:[#allocation76_spill] sm:$0xff] %v5889_v11  ;;  %8864 = vst [vmem:[#allocation77_spill] sm:$0xff] %v5891_v28 }
 0x1f5   :  { %v1061_v40 = vpop.permute.xlu1 %1060  ;;  %v1057_v55 = vpop.permute.xlu0 %1056 }
 0x1f6   :  { %v1143_v51 = vmul.f32 %v1057_v55, %v5607_v23  ;;  %v1144_v21 = vmul.f32 %v1057_v55, %v5609_v24  ;;  %v1145_v13 = vmul.f32 %v1061_v40, %v5615_v38  ;;  %v1146_v37 = vmul.f32 %v1061_v40, %v5617_v41 }
 0x1f8   :  { %1233 = vrot.lane.b32.xlu0 %v1144_v21, %s5097_s17  ;;  %1231 = vrot.lane.b32.xlu1 %v1143_v51, %s5097_s17 }
 0x1f9   :  { %v1065_v7 = vpop.permute.xlu1 %1064  ;;  %v1069_v36 = vpop.permute.xlu0 %1068 }
 0x1fa   :  { %v1147_v28 = vmul.f32 %v1065_v7, %v5623_v47  ;;  %v1148_v11 = vmul.f32 %v1065_v7, %v5625_v48  ;;  %v1149_v55 = vmul.f32 %v1069_v36, %v5631_v52  ;;  %v1150_v51 = vmul.f32 %v1069_v36, %v5633_v53 }
 0x1fc   :  { %1237 = vrot.lane.b32.xlu0 %v1146_v37, %s5097_s17  ;;  %1235 = vrot.lane.b32.xlu1 %v1145_v13, %s5097_s17 }
 0x1fd   :  { %v1073_v21 = vpop.permute.xlu1 %1072  ;;  %v1077_v40 = vpop.permute.xlu0 %1076 }
 0x1fe   :  { %v1151_v13 = vmul.f32 %v1073_v21, %v5639_v58  ;;  %v1152_v37 = vmul.f32 %v1073_v21, %v5641_v59  ;;  %v1153_v7 = vmul.f32 %v1077_v40, %v5647_v63 }
 0x200   :  { %1241 = vrot.lane.b32.xlu0 %v1148_v11, %s5097_s17  ;;  %1239 = vrot.lane.b32.xlu1 %v1147_v28, %s5097_s17  ;;  %v1154_v28 = vmul.f32 %v1077_v40, %v5649_v3 }
 0x201   :  { %v1081_v11 = vpop.permute.xlu1 %1080 }
 0x202   :  { %v1155_v36 = vmul.f32 %v1081_v11, %v5655_v25 }
 0x204   :  { %1245 = vrot.lane.b32.xlu0 %v1150_v51, %s5097_s17  ;;  %1243 = vrot.lane.b32.xlu1 %v1149_v55, %s5097_s17  ;;  %v1156_v55 = vmul.f32 %v1081_v11, %v5657_v27  ;;  %v1085_v51 = vpop.permute.xlu0 %1084 }
 0x205   :  { %v1157_v21 = vmul.f32 %v1085_v51, %v5663_v46 }
 0x208   :  { %1249 = vrot.lane.b32.xlu0 %v1152_v37, %s5097_s17  ;;  %1247 = vrot.lane.b32.xlu1 %v1151_v13, %s5097_s17  ;;  %v1158_v13 = vmul.f32 %v1085_v51, %v5665_v49  ;;  %v1089_v37 = vpop.permute.xlu1 %1088 }
 0x209   :  { %v1159_v40 = vmul.f32 %v1089_v37, %v5671_v56 }
 0x20c   :  { %1253 = vrot.lane.b32.xlu0 %v1154_v28, %s5097_s17  ;;  %1251 = vrot.lane.b32.xlu1 %v1153_v7, %s5097_s17  ;;  %v1160_v7 = vmul.f32 %v1089_v37, %v5673_v57  ;;  %v1093_v28 = vpop.permute.xlu0 %1092 }
 0x20d   :  { %v1161_v11 = vmul.f32 %v1093_v28, %v5679_v4 }
 0x210   :  { %1257 = vrot.lane.b32.xlu0 %v1156_v55, %s5097_s17  ;;  %1255 = vrot.lane.b32.xlu1 %v1155_v36, %s5097_s17  ;;  %v1162_v36 = vmul.f32 %v1093_v28, %v5681_v8  ;;  %v1097_v55 = vpop.permute.xlu1 %1096 }
 0x211   :  { %v1163_v51 = vmul.f32 %v1097_v55, %v5687_v43 }
 0x214   :  { %1261 = vrot.lane.b32.xlu0 %v1158_v13, %s5097_s17  ;;  %1259 = vrot.lane.b32.xlu1 %v1157_v21, %s5097_s17  ;;  %v1164_v21 = vmul.f32 %v1097_v55, %v5689_v50  ;;  %v1101_v13 = vpop.permute.xlu0 %1100 }
 0x215   :  { %v1165_v37 = vmul.f32 %v1101_v13, %v5695_v0 }
 0x218   :  { %1265 = vrot.lane.b32.xlu0 %v1160_v7, %s5097_s17  ;;  %1263 = vrot.lane.b32.xlu1 %v1159_v40, %s5097_s17  ;;  %v1166_v40 = vmul.f32 %v1101_v13, %v5697_v62  ;;  %v1105_v7 = vpop.permute.xlu1 %1104 }
 0x219   :  { %v1167_v28 = vmul.f32 %v1105_v7, %v5703_v20 }
 0x21c   :  { %1269 = vrot.lane.b32.xlu0 %v1162_v36, %s5097_s17  ;;  %1267 = vrot.lane.b32.xlu1 %v1161_v11, %s5097_s17  ;;  %v1168_v11 = vmul.f32 %v1105_v7, %v5705_v42  ;;  %v1109_v36 = vpop.permute.xlu0 %1108  ;;  %v8865_v7 = vld [vmem:[#allocation20_spill] sm:$0xff] }
 0x21d   :  { %v1169_v55 = vmul.f32 %v1109_v36, %v5711_v17 }
 0x220   :  { %1273 = vrot.lane.b32.xlu0 %v1164_v21, %s5097_s17  ;;  %1271 = vrot.lane.b32.xlu1 %v1163_v51, %s5097_s17  ;;  %v1170_v51 = vmul.f32 %v1109_v36, %v5713_v60  ;;  %v1113_v21 = vpop.permute.xlu1 %1112  ;;  %v8867_v36 = vld [vmem:[#allocation22_spill] sm:$0xff] }
 0x221   :  { %v1171_v13 = vmul.f32 %v1113_v21, %v5719_v15 }
 0x224   :  { %1277 = vrot.lane.b32.xlu0 %v1166_v40, %s5097_s17  ;;  %1275 = vrot.lane.b32.xlu1 %v1165_v37, %s5097_s17  ;;  %v1172_v37 = vmul.f32 %v1113_v21, %v5721_v1  ;;  %v1117_v40 = vpop.permute.xlu0 %1116  ;;  %v1121_v35 = vpop.permute.xlu1 %1120  ;;  %v8869_v21 = vld [vmem:[#allocation24_spill] sm:$0xff] }
 0x228   :  { %1281 = vrot.lane.b32.xlu0 %v1168_v11, %s5097_s17  ;;  %1279 = vrot.lane.b32.xlu1 %v1167_v28, %s5097_s17  ;;  %v1173_v28 = vmul.f32 %v1117_v40, %v8865_v7  ;;  %v8866_v11 = vld [vmem:[#allocation21_spill] sm:$0xff]  ;;  %v1125_v33 = vpop.permute.xlu0 %1124  ;;  %v1129_v29 = vpop.permute.xlu1 %1128 }
 0x229   :  { %v1174_v45 = vmul.f32 %v1117_v40, %v8866_v11  ;;  %v8871_v40 = vld [vmem:[#allocation27_spill] sm:$0xff] }
 0x22c   :  { %1285 = vrot.lane.b32.xlu0 %v1170_v51, %s5097_s17  ;;  %1283 = vrot.lane.b32.xlu1 %v1169_v55, %s5097_s17  ;;  %v1175_v55 = vmul.f32 %v1121_v35, %v8867_v36  ;;  %v8868_v51 = vld [vmem:[#allocation23_spill] sm:$0xff]  ;;  %v1133_v32 = vpop.permute.xlu0 %1132 }
 0x22d   :  { %v1176_v34 = vmul.f32 %v1121_v35, %v8868_v51  ;;  %v8872_v35 = vld [vmem:[#allocation28_spill] sm:$0xff] }
 0x230   :  { %1289 = vrot.lane.b32.xlu0 %v1172_v37, %s5097_s17  ;;  %1287 = vrot.lane.b32.xlu1 %v1171_v13, %s5097_s17  ;;  %v1177_v13 = vmul.f32 %v1125_v33, %v8869_v21  ;;  %v8870_v37 = vld [vmem:[#allocation25_spill] sm:$0xff]  ;;  %v1182_v21 = vmul.f32 %v1133_v32, %v8873_v31  ;;  %v5099_v31 = vmov 4  }
 0x231   :  { %v1178_v30 = vmul.f32 %v1125_v33, %v8870_v37  ;;  %v1137_v33 = vpop.permute.xlu1 %1136 }
 0x234   :  { %1293 = vrot.lane.b32.xlu0 %v1174_v45, %s5097_s17  ;;  %1291 = vrot.lane.b32.xlu1 %v1173_v28, %s5097_s17  ;;  %v1179_v45 = vmul.f32 %v1129_v29, %v5751_v9  ;;  %v1180_v28 = vmul.f32 %v1129_v29, %v8871_v40  ;;  %v1184_v29 = vmul.f32 %v1137_v33, %v5769_v19  ;;  %v1141_v40 = vpop.permute.xlu0 %1140  ;;  %v6068_v19 = vld [vmem:[%s8561_s1 + $0x90] sm:$0xff] }
 0x238   :  { %1297 = vrot.lane.b32.xlu0 %v1176_v34, %s5097_s17  ;;  %1295 = vrot.lane.b32.xlu1 %v1175_v55, %s5097_s17  ;;  %v1431_v34 = vlaneseq  ;;  %v1181_v55 = vmul.f32 %v1133_v32, %v8872_v35 }
 0x23c   :  { %1301 = vrot.lane.b32.xlu0 %v1178_v30, %s5097_s17  ;;  %1299 = vrot.lane.b32.xlu1 %v1177_v13, %s5097_s17  ;;  %v5973_v30 = vshrl.u32 %v1431_v34, 7  ;;  %v1183_v13 = vmul.f32 %v1137_v33, %v5765_v12  ;;  %v1186_v34 = vmul.f32 %v1141_v40, %v5777_v16  ;;  %v6079_v12 = vld [vmem:[%s8561_s1 + $0xa0] sm:$0xff] }
 0x23e   :  { %8874 = vst [vmem:[#allocation20_spill] sm:$0xff] %v5973_v30  ;;  %v8619_v32 = vsub.s32 0, %v5973_v30 }
 0x240   :  { %1305 = vrot.lane.b32.xlu0 %v1180_v28, %s5097_s17  ;;  %1303 = vrot.lane.b32.xlu1 %v1179_v45, %s5097_s17  ;;  %v8620_v45 = vsub.s32 1, %v5973_v30  ;;  %v1185_v28 = vmul.f32 %v1141_v40, %v5775_v5  ;;  %v6002_v40 = vld [vmem:[%s8561_s1 + $0x20] sm:$0xff] }
 0x241   :  { %v6057_v5 = vld [vmem:[%s8561_s1 + $0x80] sm:$0xff] }
 0x244   :  { %1309 = vrot.lane.b32.xlu0 %v1182_v21, %s5097_s17  ;;  %1307 = vrot.lane.b32.xlu1 %v1181_v55, %s5097_s17  ;;  %v435_v21 = vld [vmem:[%s8564_s4] ss:$2 sm:$0x3] }
 0x245   :  { %v1438_v55 = vrot.slane %v435_v21, %v8620_v45  ;;  %v1434_v33 = vrot.slane %v435_v21, %v8619_v32  ;;  %v6014_v21 = vld [vmem:[%s8561_s1 + $0x30] sm:$0xff] }
 0x246   :  { %v6046_v45 = vld [vmem:[%s8561_s1 + $0x70] sm:$0xff] }
 0x248   :  { %1313 = vrot.lane.b32.xlu0 %v1184_v29, %s5097_s17  ;;  %1311 = vrot.lane.b32.xlu1 %v1183_v13, %s5097_s17  ;;  %v5995_v13 = vld [vmem:[%s8561_s1 + $0x8] sm:$0xff]  ;;  %v6008_v29 = vld [vmem:[%s8561_s1 + $0x10] sm:$0xff] }
 0x24c   :  { %1317 = vrot.lane.b32.xlu0 %v1186_v34, %s5097_s17  ;;  %1315 = vrot.lane.b32.xlu1 %v1185_v28, %s5097_s17  ;;  %v6021_v28 = vld [vmem:[%s8561_s1 + $0x40] sm:$0xff]  ;;  %v6028_v34 = vld [vmem:[%s8561_s1 + $0x50] sm:$0xff] }
 0x250   :  { %1441 = vrot.lane.b32.xlu0 %v1438_v55, %s5098_s20  ;;  %1439 = vrot.lane.b32.xlu1 %v1434_v33, %s5098_s20  ;;  %v6035_v55 = vld [vmem:[%s8561_s1 + $0x60] sm:$0xff] }
 0x254   :  { %1540 = vperm.xlu0 %4745, %v5995_v13   ;;  %1536 = vperm.xlu1 %4744, %v5466_v54  }
 0x258   :  { %1552 = vperm.xlu0 %4745, %v6002_v40   ;;  %1544 = vperm.xlu1 %4744, %v6008_v29  }
 0x25c   :  { %1560 = vperm.xlu0 %4745, %v6014_v21   ;;  %1548 = vperm.xlu1 %4744, %v5480_v61  }
 0x260   :  { %1568 = vperm.xlu0 %4745, %v6021_v28   ;;  %1556 = vperm.xlu1 %4744, %v5489_v2  }
 0x264   :  { %1576 = vperm.xlu0 %4745, %v6028_v34   ;;  %1564 = vperm.xlu1 %4744, %v5498_v6  }
 0x268   :  { %1584 = vperm.xlu0 %4745, %v6035_v55   ;;  %1572 = vperm.xlu1 %4744, %v5507_v10  }
 0x26a   :  { %v6039_v33 = vpop.permute.xlu1 %1231  ;;  %v6041_v32 = vpop.permute.xlu0 %1233 }
 0x26b   :  { %8875 = vst [vmem:[#allocation21_spill] sm:$0xff] %v6039_v33  ;;  %8876 = vst [vmem:[#allocation22_spill] sm:$0xff] %v6041_v32 }
 0x26c   :  { %1592 = vperm.xlu0 %4745, %v6046_v45   ;;  %1580 = vperm.xlu1 %4744, %v5516_v14  }
 0x26e   :  { %v6050_v30 = vpop.permute.xlu1 %1235  ;;  %v6052_v16 = vpop.permute.xlu0 %1237 }
 0x26f   :  { %8877 = vst [vmem:[#allocation23_spill] sm:$0xff] %v6050_v30  ;;  %8878 = vst [vmem:[#allocation25_spill] sm:$0xff] %v6052_v16 }
 0x270   :  { %1600 = vperm.xlu0 %4745, %v6057_v5   ;;  %1588 = vperm.xlu1 %4744, %v5525_v18  }
 0x272   :  { %v6061_v33 = vpop.permute.xlu1 %1239  ;;  %v6063_v32 = vpop.permute.xlu0 %1241 }
 0x273   :  { %8879 = vst [vmem:[#allocation78_spill] sm:$0xff] %v6061_v33  ;;  %8880 = vst [vmem:[#allocation79_spill] sm:$0xff] %v6063_v32 }
 0x274   :  { %1608 = vperm.xlu0 %4745, %v6068_v19   ;;  %1596 = vperm.xlu1 %4744, %v5534_v22  }
 0x276   :  { %v6072_v30 = vpop.permute.xlu1 %1243  ;;  %v6074_v16 = vpop.permute.xlu0 %1245 }
 0x277   :  { %8881 = vst [vmem:[#allocation80_spill] sm:$0xff] %v6072_v30  ;;  %8882 = vst [vmem:[#allocation81_spill] sm:$0xff] %v6074_v16 }
 0x278   :  { %1616 = vperm.xlu0 %4745, %v6079_v12   ;;  %1604 = vperm.xlu1 %4744, %v5543_v26  }
 0x27a   :  { %v6083_v33 = vpop.permute.xlu1 %1247  ;;  %v6085_v32 = vpop.permute.xlu0 %1249 }
 0x27b   :  { %8883 = vst [vmem:[#allocation82_spill] sm:$0xff] %v6083_v33  ;;  %8884 = vst [vmem:[#allocation83_spill] sm:$0xff] %v6085_v32 }
 0x27c   :  { %4746 = vset.pattern.permute.xlu0 %v5099_v31  ;;  %1612 = vperm.xlu1 %4744, %v5552_v39  }
 0x27d   :  { %1712 = vperm.xlu0 %4746, %v5466_v54  }
 0x27e   :  { %v6089_v30 = vpop.permute.xlu1 %1251  ;;  %v6091_v16 = vpop.permute.xlu0 %1253 }
 0x27f   :  { %8885 = vst [vmem:[#allocation84_spill] sm:$0xff] %v6089_v30  ;;  %8886 = vst [vmem:[#allocation85_spill] sm:$0xff] %v6091_v16 }
 0x280   :  { %1620 = vperm.xlu1 %4744, %v5561_v44  }
 0x281   :  { %1724 = vperm.xlu0 %4746, %v5480_v61  }
 0x282   :  { %v6095_v35 = vpop.permute.xlu1 %1255  ;;  %v6097_v9 = vpop.permute.xlu0 %1257 }
 0x283   :  { %8887 = vst [vmem:[#allocation86_spill] sm:$0xff] %v6095_v35  ;;  %8888 = vst [vmem:[#allocation87_spill] sm:$0xff] %v6097_v9 }
 0x284   :  { %4747 = vset.pattern.permute.xlu1 %v5099_v31 }
 0x285   :  { %1732 = vperm.xlu0 %4746, %v5489_v2   ;;  %1716 = vperm.xlu1 %4747, %v5995_v13  }
 0x286   :  { %v6101_v33 = vpop.permute.xlu1 %1259  ;;  %v6103_v54 = vpop.permute.xlu0 %1261 }
 0x287   :  { %8889 = vst [vmem:[#allocation88_spill] sm:$0xff] %v6101_v33  ;;  %8890 = vst [vmem:[#allocation89_spill] sm:$0xff] %v6103_v54 }
 0x289   :  { %1740 = vperm.xlu0 %4746, %v5498_v6   ;;  %1720 = vperm.xlu1 %4747, %v6008_v29  }
 0x28a   :  { %v6107_v30 = vpop.permute.xlu1 %1263  ;;  %v6109_v61 = vpop.permute.xlu0 %1265 }
 0x28b   :  { %8891 = vst [vmem:[#allocation90_spill] sm:$0xff] %v6107_v30  ;;  %8892 = vst [vmem:[#allocation91_spill] sm:$0xff] %v6109_v61 }
 0x28d   :  { %1748 = vperm.xlu0 %4746, %v5507_v10   ;;  %1728 = vperm.xlu1 %4747, %v6002_v40  }
 0x28e   :  { %v6113_v31 = vpop.permute.xlu1 %1267  ;;  %v6115_v2 = vpop.permute.xlu0 %1269 }
 0x28f   :  { %8893 = vst [vmem:[#allocation92_spill] sm:$0xff] %v6113_v31  ;;  %8894 = vst [vmem:[#allocation93_spill] sm:$0xff] %v6115_v2 }
 0x291   :  { %1756 = vperm.xlu0 %4746, %v5516_v14   ;;  %1736 = vperm.xlu1 %4747, %v6014_v21  }
 0x292   :  { %v6119_v33 = vpop.permute.xlu1 %1271  ;;  %v6121_v6 = vpop.permute.xlu0 %1273 }
 0x293   :  { %8895 = vst [vmem:[#allocation94_spill] sm:$0xff] %v6119_v33  ;;  %8896 = vst [vmem:[#allocation95_spill] sm:$0xff] %v6121_v6 }
 0x295   :  { %1764 = vperm.xlu0 %4746, %v5525_v18   ;;  %1744 = vperm.xlu1 %4747, %v6021_v28  }
 0x296   :  { %v6125_v30 = vpop.permute.xlu1 %1275  ;;  %v6127_v10 = vpop.permute.xlu0 %1277 }
 0x297   :  { %8897 = vst [vmem:[#allocation96_spill] sm:$0xff] %v6125_v30  ;;  %8898 = vst [vmem:[#allocation97_spill] sm:$0xff] %v6127_v10 }
 0x299   :  { %1772 = vperm.xlu0 %4746, %v5534_v22   ;;  %1752 = vperm.xlu1 %4747, %v6028_v34  }
 0x29a   :  { %v6131_v31 = vpop.permute.xlu1 %1279  ;;  %v6133_v14 = vpop.permute.xlu0 %1281 }
 0x29b   :  { %8899 = vst [vmem:[#allocation98_spill] sm:$0xff] %v6131_v31  ;;  %8900 = vst [vmem:[#allocation99_spill] sm:$0xff] %v6133_v14 }
 0x29d   :  { %1780 = vperm.xlu0 %4746, %v5543_v26   ;;  %1760 = vperm.xlu1 %4747, %v6035_v55  }
 0x29e   :  { %v6137_v33 = vpop.permute.xlu1 %1283  ;;  %v6139_v18 = vpop.permute.xlu0 %1285 }
 0x29f   :  { %8901 = vst [vmem:[#allocation100_spill] sm:$0xff] %v6137_v33  ;;  %8902 = vst [vmem:[#allocation101_spill] sm:$0xff] %v6139_v18 }
 0x2a1   :  { %1788 = vperm.xlu0 %4746, %v5552_v39   ;;  %1768 = vperm.xlu1 %4747, %v6046_v45  }
 0x2a2   :  { %v6143_v30 = vpop.permute.xlu1 %1287  ;;  %v6145_v22 = vpop.permute.xlu0 %1289 }
 0x2a3   :  { %8903 = vst [vmem:[#allocation102_spill] sm:$0xff] %v6143_v30  ;;  %8904 = vst [vmem:[#allocation103_spill] sm:$0xff] %v6145_v22 }
 0x2a5   :  { %1796 = vperm.xlu0 %4746, %v5561_v44   ;;  %1776 = vperm.xlu1 %4747, %v6057_v5  }
 0x2a6   :  { %v6149_v31 = vpop.permute.xlu1 %1291  ;;  %v6151_v26 = vpop.permute.xlu0 %1293 }
 0x2a7   :  { %8905 = vst [vmem:[#allocation104_spill] sm:$0xff] %v6149_v31  ;;  %8906 = vst [vmem:[#allocation105_spill] sm:$0xff] %v6151_v26 }
 0x2a9   :  { %1784 = vperm.xlu1 %4747, %v6068_v19  }
 0x2aa   :  { %v6154_v33 = vpop.permute.xlu1 %1295  ;;  %v6156_v18 = vpop.permute.xlu0 %1297 }
 0x2ab   :  { %8907 = vst [vmem:[#allocation106_spill] sm:$0xff] %v6154_v33  ;;  %8908 = vst [vmem:[#allocation107_spill] sm:$0xff] %v6156_v18 }
 0x2ad   :  { %1792 = vperm.xlu1 %4747, %v6079_v12  }
 0x2ae   :  { %v6159_v39 = vpop.permute.xlu1 %1299  ;;  %v6161_v30 = vpop.permute.xlu0 %1301 }
 0x2af   :  { %8909 = vst [vmem:[#allocation108_spill] sm:$0xff] %v6159_v39  ;;  %8910 = vst [vmem:[#allocation109_spill] sm:$0xff] %v6161_v30 }
 0x2b2   :  { %v6163_v22 = vpop.permute.xlu1 %1303  ;;  %v6165_v44 = vpop.permute.xlu0 %1305 }
 0x2b3   :  { %8911 = vst [vmem:[#allocation110_spill] sm:$0xff] %v6163_v22  ;;  %8912 = vst [vmem:[#allocation111_spill] sm:$0xff] %v6165_v44 }
 0x2b6   :  { %v6167_v14 = vpop.permute.xlu1 %1307  ;;  %v6169_v31 = vpop.permute.xlu0 %1309 }
 0x2b7   :  { %8913 = vst [vmem:[#allocation112_spill] sm:$0xff] %v6167_v14  ;;  %8914 = vst [vmem:[#allocation113_spill] sm:$0xff] %v6169_v31  ;;  %v5100_v31 = vmov 7  }
 0x2b8   :  { %4749 = vset.pattern.permute.xlu0 %v5100_v31  ;;  %4748 = vset.pattern.permute.xlu1 %v5100_v31 }
 0x2ba   :  { %v6171_v26 = vpop.permute.xlu1 %1311  ;;  %v6173_v10 = vpop.permute.xlu0 %1313 }
 0x2bb   :  { %8915 = vst [vmem:[#allocation114_spill] sm:$0xff] %v6171_v26  ;;  %8916 = vst [vmem:[#allocation115_spill] sm:$0xff] %v6173_v10 }
 0x2be   :  { %v6175_v33 = vpop.permute.xlu1 %1315  ;;  %v6177_v18 = vpop.permute.xlu0 %1317 }
 0x2bf   :  { %8917 = vst [vmem:[#allocation116_spill] sm:$0xff] %v6175_v33  ;;  %8918 = vst [vmem:[#allocation117_spill] sm:$0xff] %v6177_v18 }
 0x2c2   :  { %v6179_v6 = vpop.permute.xlu1 %1439  ;;  %v6181_v39 = vpop.permute.xlu0 %1441 }
 0x2c3   :  { %8919 = vst [vmem:[#allocation118_spill] sm:$0xff] %v6179_v6  ;;  %8920 = vst [vmem:[#allocation119_spill] sm:$0xff] %v6181_v39 }
 0x2d3   :  { %v6183_v30 = vpop.permute.xlu1 %1536  ;;  %v6185_v22 = vpop.permute.xlu0 %1540 }
 0x2d7   :  { %v6187_v44 = vpop.permute.xlu1 %1544  ;;  %v6189_v14 = vpop.permute.xlu0 %1552 }
 0x2db   :  { %v6191_v26 = vpop.permute.xlu1 %1548  ;;  %v6193_v33 = vpop.permute.xlu0 %1560 }
 0x2df   :  { %v6195_v18 = vpop.permute.xlu1 %1556  ;;  %v6197_v10 = vpop.permute.xlu0 %1568 }
 0x2e0   :  { %8921 = vst [vmem:[#allocation120_spill] sm:$0xff] %v6197_v10 }
 0x2e3   :  { %v6199_v2 = vpop.permute.xlu1 %1564  ;;  %v6201_v61 = vpop.permute.xlu0 %1576 }
 0x2e4   :  { %8922 = vst [vmem:[#allocation121_spill] sm:$0xff] %v6199_v2  ;;  %8923 = vst [vmem:[#allocation122_spill] sm:$0xff] %v6201_v61 }
 0x2e7   :  { %v6203_v54 = vpop.permute.xlu1 %1572  ;;  %v6205_v35 = vpop.permute.xlu0 %1584 }
 0x2e8   :  { %8924 = vst [vmem:[#allocation123_spill] sm:$0xff] %v6203_v54  ;;  %8925 = vst [vmem:[#allocation124_spill] sm:$0xff] %v6205_v35 }
 0x2eb   :  { %v6207_v9 = vpop.permute.xlu1 %1580  ;;  %v6209_v16 = vpop.permute.xlu0 %1592 }
 0x2ec   :  { %8926 = vst [vmem:[#allocation125_spill] sm:$0xff] %v6207_v9  ;;  %8927 = vst [vmem:[#allocation126_spill] sm:$0xff] %v6209_v16 }
 0x2ef   :  { %v6211_v31 = vpop.permute.xlu1 %1588  ;;  %v6213_v32 = vpop.permute.xlu0 %1600 }
 0x2f0   :  { %8928 = vst [vmem:[#allocation127_spill] sm:$0xff] %v6211_v31  ;;  %8929 = vst [vmem:[#allocation128_spill] sm:$0xff] %v6213_v32 }
 0x2f3   :  { %v6215_v6 = vpop.permute.xlu1 %1596  ;;  %v6217_v39 = vpop.permute.xlu0 %1608 }
 0x2f4   :  { %8930 = vst [vmem:[#allocation129_spill] sm:$0xff] %v6215_v6  ;;  %8931 = vst [vmem:[#allocation130_spill] sm:$0xff] %v6217_v39  ;;  %v6552_v6 = vld [vmem:[#allocation2 + $0x90] sm:$0xff] }
 0x2f7   :  { %v6219_v10 = vpop.permute.xlu1 %1604  ;;  %v6221_v2 = vpop.permute.xlu0 %1616 }
 0x2f8   :  { %8932 = vst [vmem:[#allocation131_spill] sm:$0xff] %v6219_v10  ;;  %8933 = vst [vmem:[#allocation132_spill] sm:$0xff] %v6221_v2 }
 0x2fb   :  { %v6223_v61 = vpop.permute.xlu1 %1612 }
 0x2fc   :  { %8934 = vst [vmem:[#allocation133_spill] sm:$0xff] %v6223_v61  ;;  %v1713_v54 = vpop.permute.xlu0 %1712 }
 0x2fd   :  { %v1799_v35 = vmul.f32 %v1713_v54, %v5607_v23  ;;  %v1800_v9 = vmul.f32 %v1713_v54, %v5609_v24 }
 0x2ff   :  { %v6227_v16 = vpop.permute.xlu1 %1620  ;;  %1889 = vrot.lane.b32.xlu0 %v1800_v9, %s5095_s16  ;;  %1887 = vrot.lane.b32.xlu1 %v1799_v35, %s5095_s16 }
 0x300   :  { %8935 = vst [vmem:[#allocation134_spill] sm:$0xff] %v6227_v16  ;;  %v1725_v54 = vpop.permute.xlu0 %1724  ;;  %v6496_v16 = vld [vmem:[#allocation2 + $0x20] sm:$0xff] }
 0x301   :  { %v1805_v9 = vmul.f32 %v1725_v54, %v5631_v52 }
 0x304   :  { %v1717_v32 = vpop.permute.xlu1 %1716 }
 0x305   :  { %v1801_v39 = vmul.f32 %v1717_v32, %v5615_v38  ;;  %v1802_v10 = vmul.f32 %v1717_v32, %v5617_v41  ;;  %v1806_v38 = vmul.f32 %v1725_v54, %v5633_v53  ;;  %v1733_v32 = vpop.permute.xlu0 %1732 }
 0x306   :  { %v1810_v52 = vmul.f32 %v1733_v32, %v5649_v3 }
 0x307   :  { %1893 = vrot.lane.b32.xlu0 %v1802_v10, %s5095_s16  ;;  %1891 = vrot.lane.b32.xlu1 %v1801_v39, %s5095_s16 }
 0x308   :  { %v1721_v2 = vpop.permute.xlu1 %1720 }
 0x309   :  { %v1803_v23 = vmul.f32 %v1721_v2, %v5623_v47  ;;  %v1804_v24 = vmul.f32 %v1721_v2, %v5625_v48  ;;  %v1809_v48 = vmul.f32 %v1733_v32, %v5647_v63  ;;  %v1741_v10 = vpop.permute.xlu0 %1740 }
 0x30a   :  { %v1814_v63 = vmul.f32 %v1741_v10, %v5665_v49 }
 0x30b   :  { %1897 = vrot.lane.b32.xlu0 %v1804_v24, %s5095_s16  ;;  %1895 = vrot.lane.b32.xlu1 %v1803_v23, %s5095_s16 }
 0x30c   :  { %v1729_v35 = vpop.permute.xlu1 %1728 }
 0x30d   :  { %v1807_v41 = vmul.f32 %v1729_v35, %v5639_v58  ;;  %v1808_v47 = vmul.f32 %v1729_v35, %v5641_v59  ;;  %v1813_v59 = vmul.f32 %v1741_v10, %v5663_v46  ;;  %v1749_v23 = vpop.permute.xlu0 %1748 }
 0x30e   :  { %v1818_v46 = vmul.f32 %v1749_v23, %v5681_v8 }
 0x30f   :  { %1901 = vrot.lane.b32.xlu0 %v1806_v38, %s5095_s16  ;;  %1899 = vrot.lane.b32.xlu1 %v1805_v9, %s5095_s16 }
 0x310   :  { %v1737_v2 = vpop.permute.xlu1 %1736 }
 0x311   :  { %v1811_v53 = vmul.f32 %v1737_v2, %v5655_v25  ;;  %v1812_v58 = vmul.f32 %v1737_v2, %v5657_v27  ;;  %v1817_v27 = vmul.f32 %v1749_v23, %v5679_v4  ;;  %v1757_v54 = vpop.permute.xlu0 %1756 }
 0x312   :  { %v1822_v4 = vmul.f32 %v1757_v54, %v5697_v62 }
 0x313   :  { %1905 = vrot.lane.b32.xlu0 %v1808_v47, %s5095_s16  ;;  %1903 = vrot.lane.b32.xlu1 %v1807_v41, %s5095_s16 }
 0x314   :  { %v1745_v39 = vpop.permute.xlu1 %1744 }
 0x315   :  { %v1815_v3 = vmul.f32 %v1745_v39, %v5671_v56  ;;  %v1816_v25 = vmul.f32 %v1745_v39, %v5673_v57  ;;  %v1821_v57 = vmul.f32 %v1757_v54, %v5695_v0  ;;  %v1765_v38 = vpop.permute.xlu0 %1764  ;;  %v6319_v54 = vld [vmem:[%s8561_s1] sm:$0xff] }
 0x316   :  { %v1826_v0 = vmul.f32 %v1765_v38, %v5713_v60 }
 0x317   :  { %1909 = vrot.lane.b32.xlu0 %v1810_v52, %s5095_s16  ;;  %1907 = vrot.lane.b32.xlu1 %v1809_v48, %s5095_s16 }
 0x318   :  { %v1753_v24 = vpop.permute.xlu1 %1752 }
 0x319   :  { %v1819_v49 = vmul.f32 %v1753_v24, %v5687_v43  ;;  %v1820_v56 = vmul.f32 %v1753_v24, %v5689_v50  ;;  %v1825_v50 = vmul.f32 %v1765_v38, %v5711_v17  ;;  %v1773_v41 = vpop.permute.xlu0 %1772 }
 0x31a   :  { %v1830_v17 = vmul.f32 %v1773_v41, %v8866_v11  ;;  %v8937_v11 = vld [vmem:[#allocation26_spill] sm:$0xff] }
 0x31b   :  { %1913 = vrot.lane.b32.xlu0 %v1812_v58, %s5095_s16  ;;  %1911 = vrot.lane.b32.xlu1 %v1811_v53, %s5095_s16  ;;  %v8938_v53 = vld [vmem:[#allocation27_spill] sm:$0xff] }
 0x31c   :  { %v1761_v9 = vpop.permute.xlu1 %1760 }
 0x31d   :  { %v1823_v8 = vmul.f32 %v1761_v9, %v5703_v20  ;;  %v1824_v43 = vmul.f32 %v1761_v9, %v5705_v42  ;;  %v1829_v42 = vmul.f32 %v1773_v41, %v8865_v7  ;;  %v1781_v32 = vpop.permute.xlu0 %1780  ;;  %v6378_v9 = vld [vmem:[%s8561_s1 + $0x78] sm:$0xff] }
 0x31e   :  { %v1834_v7 = vmul.f32 %v1781_v32, %v8870_v37  ;;  %v8941_v37 = vld [vmem:[#allocation30_spill] sm:$0xff] }
 0x31f   :  { %1917 = vrot.lane.b32.xlu0 %v1814_v63, %s5095_s16  ;;  %1915 = vrot.lane.b32.xlu1 %v1813_v59, %s5095_s16  ;;  %v8940_v59 = vld [vmem:[#allocation29_spill] sm:$0xff] }
 0x320   :  { %v1769_v35 = vpop.permute.xlu1 %1768 }
 0x321   :  { %v1827_v62 = vmul.f32 %v1769_v35, %v5719_v15  ;;  %v1828_v20 = vmul.f32 %v1769_v35, %v5721_v1  ;;  %v8936_v1 = vld [vmem:[#allocation24_spill] sm:$0xff]  ;;  %v1789_v58 = vpop.permute.xlu0 %1788  ;;  %v6409_v35 = vld [vmem:[%s8561_s1 + $0xa8] sm:$0xff] }
 0x322   :  { %v1833_v48 = vmul.f32 %v1781_v32, %v8936_v1  ;;  %v1838_v63 = vmul.f32 %v1789_v58, %v8940_v59  ;;  %8945 = vst [vmem:[#allocation24_spill] sm:$0xff] %v6319_v54  ;;  %8955 = vst [vmem:[#allocation136_spill] sm:$0xff] %v6409_v35 }
 0x323   :  { %1921 = vrot.lane.b32.xlu0 %v1816_v25, %s5095_s16  ;;  %1919 = vrot.lane.b32.xlu1 %v1815_v3, %s5095_s16  ;;  %v8942_v25 = vld [vmem:[#allocation31_spill] sm:$0xff] }
 0x324   :  { %v1777_v47 = vpop.permute.xlu1 %1776 }
 0x325   :  { %v1831_v60 = vmul.f32 %v1777_v47, %v8867_v36  ;;  %v1832_v15 = vmul.f32 %v1777_v47, %v8868_v51  ;;  %v8939_v51 = vld [vmem:[#allocation28_spill] sm:$0xff] }
 0x326   :  { %v1837_v10 = vmul.f32 %v1789_v58, %v8939_v51 }
 0x327   :  { %1925 = vrot.lane.b32.xlu0 %v1818_v46, %s5095_s16  ;;  %1923 = vrot.lane.b32.xlu1 %v1817_v27, %s5095_s16  ;;  %v1797_v27 = vpop.permute.xlu0 %1796  ;;  %v8943_v46 = vld [vmem:[#allocation32_spill] sm:$0xff] }
 0x328   :  { %v1785_v52 = vpop.permute.xlu1 %1784  ;;  %v1841_v24 = vmul.f32 %v1797_v27, %v8943_v46  ;;  %8952 = vst [vmem:[#allocation32_spill] sm:$0xff] %v6378_v9 }
 0x329   :  { %v1835_v2 = vmul.f32 %v1785_v52, %v8937_v11  ;;  %v1836_v36 = vmul.f32 %v1785_v52, %v8938_v53 }
 0x32b   :  { %1929 = vrot.lane.b32.xlu0 %v1820_v56, %s5095_s16  ;;  %1927 = vrot.lane.b32.xlu1 %v1819_v49, %s5095_s16  ;;  %v8944_v49 = vld [vmem:[#allocation33_spill] sm:$0xff] }
 0x32c   :  { %v1793_v39 = vpop.permute.xlu1 %1792  ;;  %v1842_v56 = vmul.f32 %v1797_v27, %v8944_v49 }
 0x32d   :  { %v1839_v3 = vmul.f32 %v1793_v39, %v8941_v37  ;;  %v1840_v23 = vmul.f32 %v1793_v39, %v8942_v25 }
 0x32f   :  { %1933 = vrot.lane.b32.xlu0 %v1822_v4, %s5095_s16  ;;  %1931 = vrot.lane.b32.xlu1 %v1821_v57, %s5095_s16  ;;  %v6328_v57 = vld [vmem:[%s8561_s1 + $0x18] sm:$0xff] }
 0x330   :  { %8946 = vst [vmem:[#allocation26_spill] sm:$0xff] %v6328_v57 }
 0x333   :  { %1937 = vrot.lane.b32.xlu0 %v1824_v43, %s5095_s16  ;;  %1935 = vrot.lane.b32.xlu1 %v1823_v8, %s5095_s16  ;;  %v6389_v43 = vld [vmem:[%s8561_s1 + $0x88] sm:$0xff] }
 0x334   :  { %8953 = vst [vmem:[#allocation33_spill] sm:$0xff] %v6389_v43 }
 0x337   :  { %1941 = vrot.lane.b32.xlu0 %v1826_v0, %s5095_s16  ;;  %1939 = vrot.lane.b32.xlu1 %v1825_v50, %s5095_s16  ;;  %v6399_v50 = vld [vmem:[%s8561_s1 + $0x98] sm:$0xff] }
 0x338   :  { %8954 = vst [vmem:[#allocation135_spill] sm:$0xff] %v6399_v50 }
 0x33b   :  { %1945 = vrot.lane.b32.xlu0 %v1828_v20, %s5095_s16  ;;  %1943 = vrot.lane.b32.xlu1 %v1827_v62, %s5095_s16 }
 0x33f   :  { %1949 = vrot.lane.b32.xlu0 %v1830_v17, %s5095_s16  ;;  %1947 = vrot.lane.b32.xlu1 %v1829_v42, %s5095_s16 }
 0x343   :  { %1953 = vrot.lane.b32.xlu0 %v1832_v15, %s5095_s16  ;;  %1951 = vrot.lane.b32.xlu1 %v1831_v60, %s5095_s16 }
 0x347   :  { %1957 = vrot.lane.b32.xlu0 %v1834_v7, %s5095_s16  ;;  %1955 = vrot.lane.b32.xlu1 %v1833_v48, %s5095_s16 }
 0x34b   :  { %1961 = vrot.lane.b32.xlu0 %v1836_v36, %s5095_s16  ;;  %1959 = vrot.lane.b32.xlu1 %v1835_v2, %s5095_s16 }
 0x34f   :  { %1965 = vrot.lane.b32.xlu0 %v1838_v63, %s5095_s16  ;;  %1963 = vrot.lane.b32.xlu1 %v1837_v10, %s5095_s16 }
 0x353   :  { %1969 = vrot.lane.b32.xlu0 %v1840_v23, %s5095_s16  ;;  %1967 = vrot.lane.b32.xlu1 %v1839_v3, %s5095_s16 }
 0x357   :  { %1973 = vrot.lane.b32.xlu0 %v1842_v56, %s5095_s16  ;;  %1971 = vrot.lane.b32.xlu1 %v1841_v24, %s5095_s16 }
 0x35b   :  { %2090 = vperm.xlu0 %4749, %v5995_v13   ;;  %2086 = vperm.xlu1 %4748, %v6319_v54   ;;  %v6335_v13 = vld [vmem:[%s8561_s1 + $0x28] sm:$0xff] }
 0x35c   :  { %8947 = vst [vmem:[#allocation27_spill] sm:$0xff] %v6335_v13 }
 0x35f   :  { %2102 = vperm.xlu0 %4749, %v6002_v40   ;;  %2094 = vperm.xlu1 %4748, %v6008_v29   ;;  %v6342_v40 = vld [vmem:[%s8561_s1 + $0x38] sm:$0xff]  ;;  %v6349_v29 = vld [vmem:[%s8561_s1 + $0x48] sm:$0xff] }
 0x360   :  { %8948 = vst [vmem:[#allocation28_spill] sm:$0xff] %v6342_v40  ;;  %8949 = vst [vmem:[#allocation29_spill] sm:$0xff] %v6349_v29 }
 0x363   :  { %2110 = vperm.xlu0 %4749, %v6014_v21   ;;  %2098 = vperm.xlu1 %4748, %v6328_v57   ;;  %v6356_v21 = vld [vmem:[%s8561_s1 + $0x58] sm:$0xff]  ;;  %v6488_v57 = vld [vmem:[#allocation2 + $0x10] sm:$0xff] }
 0x364   :  { %8950 = vst [vmem:[#allocation30_spill] sm:$0xff] %v6356_v21 }
 0x367   :  { %2118 = vperm.xlu0 %4749, %v6021_v28   ;;  %2106 = vperm.xlu1 %4748, %v6335_v13  }
 0x36b   :  { %2126 = vperm.xlu0 %4749, %v6028_v34   ;;  %2114 = vperm.xlu1 %4748, %v6342_v40  }
 0x36f   :  { %2134 = vperm.xlu0 %4749, %v6035_v55   ;;  %2122 = vperm.xlu1 %4748, %v6349_v29   ;;  %v6367_v55 = vld [vmem:[%s8561_s1 + $0x68] sm:$0xff] }
 0x370   :  { %8951 = vst [vmem:[#allocation31_spill] sm:$0xff] %v6367_v55 }
 0x371   :  { %v6359_v28 = vpop.permute.xlu1 %1887  ;;  %v6361_v34 = vpop.permute.xlu0 %1889 }
 0x373   :  { %2142 = vperm.xlu0 %4749, %v6046_v45   ;;  %2130 = vperm.xlu1 %4748, %v6356_v21   ;;  %v6483_v21 = vld [vmem:[#allocation2 + $0x8] sm:$0xff] }
 0x377   :  { %2150 = vperm.xlu0 %4749, %v6057_v5   ;;  %2138 = vperm.xlu1 %4748, %v6367_v55  }
 0x379   :  { %v6370_v45 = vpop.permute.xlu1 %1891  ;;  %v6372_v4 = vpop.permute.xlu0 %1893 }
 0x37b   :  { %2158 = vperm.xlu0 %4749, %v6068_v19   ;;  %2146 = vperm.xlu1 %4748, %v6378_v9   ;;  %v6480_v9 = vld [vmem:[#allocation2] sm:$0xff] }
 0x37d   :  { %v6381_v5 = vpop.permute.xlu1 %1895  ;;  %v6383_v8 = vpop.permute.xlu0 %1897 }
 0x37f   :  { %2166 = vperm.xlu0 %4749, %v6079_v12   ;;  %2154 = vperm.xlu1 %4748, %v6389_v43  }
 0x381   :  { %v6392_v19 = vpop.permute.xlu1 %1899  ;;  %v6394_v38 = vpop.permute.xlu0 %1901 }
 0x383   :  { %2162 = vperm.xlu1 %4748, %v6399_v50  }
 0x385   :  { %v6402_v0 = vpop.permute.xlu1 %1903  ;;  %v6404_v12 = vpop.permute.xlu0 %1905 }
 0x387   :  { %2170 = vperm.xlu1 %4748, %v6409_v35  }
 0x389   :  { %v6412_v62 = vpop.permute.xlu1 %1907  ;;  %v6414_v20 = vpop.permute.xlu0 %1909 }
 0x38d   :  { %v6416_v41 = vpop.permute.xlu1 %1911  ;;  %v6418_v42 = vpop.permute.xlu0 %1913 }
 0x391   :  { %v6420_v17 = vpop.permute.xlu1 %1915  ;;  %v6422_v47 = vpop.permute.xlu0 %1917 }
 0x395   :  { %v6424_v60 = vpop.permute.xlu1 %1919  ;;  %v6426_v15 = vpop.permute.xlu0 %1921 }
 0x399   :  { %v6428_v32 = vpop.permute.xlu1 %1923  ;;  %v6430_v1 = vpop.permute.xlu0 %1925 }
 0x39d   :  { %v6432_v48 = vpop.permute.xlu1 %1927  ;;  %v6434_v7 = vpop.permute.xlu0 %1929 }
 0x3a1   :  { %v6436_v52 = vpop.permute.xlu1 %1931  ;;  %v6438_v11 = vpop.permute.xlu0 %1933 }
 0x3a2   :  { %8956 = vst [vmem:[#allocation137_spill] sm:$0xff] %v6436_v52  ;;  %8957 = vst [vmem:[#allocation138_spill] sm:$0xff] %v6438_v11  ;;  %v5101_v11 = vmov 2  }
 0x3a3   :  { %4751 = vset.pattern.permute.xlu1 %v5101_v11  ;;  %4750 = vset.pattern.permute.xlu0 %v5101_v11 }
 0x3a5   :  { %v6440_v2 = vpop.permute.xlu1 %1935  ;;  %v6442_v53 = vpop.permute.xlu0 %1937 }
 0x3a6   :  { %8958 = vst [vmem:[#allocation139_spill] sm:$0xff] %v6440_v2  ;;  %8959 = vst [vmem:[#allocation140_spill] sm:$0xff] %v6442_v53  ;;  %v6576_v2 = vld [vmem:[#allocation2 + $0xc0] sm:$0xff] }
 0x3a7   :  { %8979 = vst [vmem:[#allocation160_spill] sm:$0xff] %v6576_v2 }
 0x3a9   :  { %v6444_v36 = vpop.permute.xlu1 %1939  ;;  %v6446_v58 = vpop.permute.xlu0 %1941 }
 0x3aa   :  { %8960 = vst [vmem:[#allocation141_spill] sm:$0xff] %v6444_v36  ;;  %8961 = vst [vmem:[#allocation142_spill] sm:$0xff] %v6446_v58  ;;  %v6568_v58 = vld [vmem:[#allocation2 + $0xb0] sm:$0xff] }
 0x3ab   :  { %8978 = vst [vmem:[#allocation159_spill] sm:$0xff] %v6568_v58 }
 0x3ad   :  { %v6448_v51 = vpop.permute.xlu1 %1943  ;;  %v6450_v10 = vpop.permute.xlu0 %1945 }
 0x3ae   :  { %8962 = vst [vmem:[#allocation143_spill] sm:$0xff] %v6448_v51  ;;  %8963 = vst [vmem:[#allocation144_spill] sm:$0xff] %v6450_v10  ;;  %v6560_v10 = vld [vmem:[#allocation2 + $0xa0] sm:$0xff] }
 0x3b1   :  { %v6452_v59 = vpop.permute.xlu1 %1947  ;;  %v6454_v63 = vpop.permute.xlu0 %1949 }
 0x3b2   :  { %8964 = vst [vmem:[#allocation145_spill] sm:$0xff] %v6452_v59  ;;  %8965 = vst [vmem:[#allocation146_spill] sm:$0xff] %v6454_v63  ;;  %v6544_v59 = vld [vmem:[#allocation2 + $0x80] sm:$0xff] }
 0x3b5   :  { %v6456_v39 = vpop.permute.xlu1 %1951  ;;  %v6458_v37 = vpop.permute.xlu0 %1953 }
 0x3b6   :  { %8966 = vst [vmem:[#allocation147_spill] sm:$0xff] %v6456_v39  ;;  %8967 = vst [vmem:[#allocation148_spill] sm:$0xff] %v6458_v37  ;;  %v6536_v39 = vld [vmem:[#allocation2 + $0x70] sm:$0xff] }
 0x3b9   :  { %v6460_v3 = vpop.permute.xlu1 %1955  ;;  %v6462_v25 = vpop.permute.xlu0 %1957 }
 0x3ba   :  { %8968 = vst [vmem:[#allocation149_spill] sm:$0xff] %v6460_v3  ;;  %8969 = vst [vmem:[#allocation150_spill] sm:$0xff] %v6462_v25  ;;  %v6528_v3 = vld [vmem:[#allocation2 + $0x60] sm:$0xff] }
 0x3bd   :  { %v6464_v23 = vpop.permute.xlu1 %1959  ;;  %v6466_v27 = vpop.permute.xlu0 %1961 }
 0x3be   :  { %8970 = vst [vmem:[#allocation151_spill] sm:$0xff] %v6464_v23  ;;  %8971 = vst [vmem:[#allocation152_spill] sm:$0xff] %v6466_v27  ;;  %v6520_v23 = vld [vmem:[#allocation2 + $0x50] sm:$0xff] }
 0x3c1   :  { %v6468_v46 = vpop.permute.xlu1 %1963  ;;  %v6470_v24 = vpop.permute.xlu0 %1965 }
 0x3c2   :  { %8972 = vst [vmem:[#allocation153_spill] sm:$0xff] %v6468_v46  ;;  %8973 = vst [vmem:[#allocation154_spill] sm:$0xff] %v6470_v24  ;;  %v6512_v24 = vld [vmem:[#allocation2 + $0x40] sm:$0xff] }
 0x3c5   :  { %v6472_v49 = vpop.permute.xlu1 %1967  ;;  %v6474_v56 = vpop.permute.xlu0 %1969 }
 0x3c6   :  { %8974 = vst [vmem:[#allocation155_spill] sm:$0xff] %v6472_v49  ;;  %8975 = vst [vmem:[#allocation156_spill] sm:$0xff] %v6474_v56  ;;  %v6504_v56 = vld [vmem:[#allocation2 + $0x30] sm:$0xff] }
 0x3c9   :  { %v6476_v35 = vpop.permute.xlu1 %1971  ;;  %v6478_v50 = vpop.permute.xlu0 %1973 }
 0x3ca   :  { %8976 = vst [vmem:[#allocation157_spill] sm:$0xff] %v6476_v35  ;;  %8977 = vst [vmem:[#allocation158_spill] sm:$0xff] %v6478_v50  ;;  %v6491_v35 = vld [vmem:[#allocation2 + $0x18] sm:$0xff] }
 0x3da   :  { %v2087_v43 = vpop.permute.xlu1 %2086  ;;  %v2091_v40 = vpop.permute.xlu0 %2090 }
 0x3db   :  { %v2173_v55 = vmul.f32 %v6480_v9, %v2087_v43  ;;  %v2174_v29 = vmul.f32 %v6483_v21, %v2087_v43  ;;  %v2175_v54 = vmul.f32 %v6488_v57, %v2091_v40  ;;  %v2176_v50 = vmul.f32 %v6491_v35, %v2091_v40 }
 0x3dd   :  { %2263 = vrot.lane.b32.xlu1 %v2174_v29, %s5097_s17  ;;  %2261 = vrot.lane.b32.xlu0 %v2173_v55, %s5097_s17  ;;  %v6499_v29 = vld [vmem:[#allocation2 + $0x28] sm:$0xff] }
 0x3de   :  { %v2095_v13 = vpop.permute.xlu1 %2094  ;;  %v2103_v46 = vpop.permute.xlu0 %2102 }
 0x3df   :  { %v2177_v43 = vmul.f32 %v6496_v16, %v2095_v13  ;;  %v2178_v55 = vmul.f32 %v6499_v29, %v2095_v13  ;;  %v2181_v13 = vmul.f32 %v6512_v24, %v2103_v46 }
 0x3e1   :  { %2267 = vrot.lane.b32.xlu1 %v2176_v50, %s5097_s17  ;;  %2265 = vrot.lane.b32.xlu0 %v2175_v54, %s5097_s17  ;;  %v6507_v50 = vld [vmem:[#allocation2 + $0x38] sm:$0xff] }
 0x3e2   :  { %v2099_v49 = vpop.permute.xlu1 %2098  ;;  %v2111_v27 = vpop.permute.xlu0 %2110 }
 0x3e3   :  { %v2179_v40 = vmul.f32 %v6504_v56, %v2099_v49  ;;  %v2180_v54 = vmul.f32 %v6507_v50, %v2099_v49 }
 0x3e5   :  { %2271 = vrot.lane.b32.xlu1 %v2178_v55, %s5097_s17  ;;  %2269 = vrot.lane.b32.xlu0 %v2177_v43, %s5097_s17  ;;  %v6515_v55 = vld [vmem:[#allocation2 + $0x48] sm:$0xff] }
 0x3e6   :  { %v2182_v43 = vmul.f32 %v6515_v55, %v2103_v46  ;;  %v2107_v61 = vpop.permute.xlu1 %2106  ;;  %v2185_v46 = vmul.f32 %v6528_v3, %v2111_v27  ;;  %v2119_v37 = vpop.permute.xlu0 %2118 }
 0x3e7   :  { %v2183_v49 = vmul.f32 %v6520_v23, %v2107_v61 }
 0x3e9   :  { %2275 = vrot.lane.b32.xlu1 %v2180_v54, %s5097_s17  ;;  %2273 = vrot.lane.b32.xlu0 %v2179_v40, %s5097_s17  ;;  %v6523_v54 = vld [vmem:[#allocation2 + $0x58] sm:$0xff] }
 0x3ea   :  { %v2184_v40 = vmul.f32 %v6523_v54, %v2107_v61  ;;  %v2115_v25 = vpop.permute.xlu1 %2114  ;;  %v2127_v51 = vpop.permute.xlu0 %2126 }
 0x3eb   :  { %v2187_v61 = vmul.f32 %v6536_v39, %v2115_v25 }
 0x3ed   :  { %2279 = vrot.lane.b32.xlu1 %v2182_v43, %s5097_s17  ;;  %2277 = vrot.lane.b32.xlu0 %v2181_v13, %s5097_s17  ;;  %v6531_v43 = vld [vmem:[#allocation2 + $0x68] sm:$0xff] }
 0x3ee   :  { %v2186_v13 = vmul.f32 %v6531_v43, %v2111_v27  ;;  %v2189_v27 = vmul.f32 %v6544_v59, %v2119_v37  ;;  %v2123_v63 = vpop.permute.xlu1 %2122  ;;  %v2135_v31 = vpop.permute.xlu0 %2134 }
 0x3f1   :  { %2283 = vrot.lane.b32.xlu1 %v2184_v40, %s5097_s17  ;;  %2281 = vrot.lane.b32.xlu0 %v2183_v49, %s5097_s17  ;;  %v6539_v40 = vld [vmem:[#allocation2 + $0x78] sm:$0xff] }
 0x3f2   :  { %v2188_v49 = vmul.f32 %v6539_v40, %v2115_v25  ;;  %v2191_v25 = vmul.f32 %v6552_v6, %v2123_v63  ;;  %v2131_v36 = vpop.permute.xlu1 %2130  ;;  %v2143_v52 = vpop.permute.xlu0 %2142 }
 0x3f5   :  { %2287 = vrot.lane.b32.xlu1 %v2186_v13, %s5097_s17  ;;  %2285 = vrot.lane.b32.xlu0 %v2185_v46, %s5097_s17  ;;  %v6547_v13 = vld [vmem:[#allocation2 + $0x88] sm:$0xff] }
 0x3f6   :  { %v2190_v46 = vmul.f32 %v6547_v13, %v2119_v37  ;;  %v2193_v37 = vmul.f32 %v6560_v10, %v2127_v51  ;;  %v2139_v53 = vpop.permute.xlu1 %2138 }
 0x3f9   :  { %2291 = vrot.lane.b32.xlu1 %v2188_v49, %s5097_s17  ;;  %2289 = vrot.lane.b32.xlu0 %v2187_v61, %s5097_s17  ;;  %v6555_v49 = vld [vmem:[#allocation2 + $0x98] sm:$0xff] }
 0x3fa   :  { %v2192_v61 = vmul.f32 %v6555_v49, %v2123_v63  ;;  %v2195_v63 = vmul.f32 %v6568_v58, %v2131_v36  ;;  %v6584_v58 = vld [vmem:[#allocation2 + $0xd0] sm:$0xff] }
 0x3fb   :  { %8981 = vst [vmem:[#allocation162_spill] sm:$0xff] %v6584_v58 }
 0x3fd   :  { %2295 = vrot.lane.b32.xlu1 %v2190_v46, %s5097_s17  ;;  %2293 = vrot.lane.b32.xlu0 %v2189_v27, %s5097_s17  ;;  %v6563_v46 = vld [vmem:[#allocation2 + $0xa8] sm:$0xff] }
 0x3fe   :  { %v2194_v27 = vmul.f32 %v6563_v46, %v2127_v51  ;;  %v2197_v51 = vmul.f32 %v6576_v2, %v2135_v31  ;;  %v6592_v2 = vld [vmem:[#allocation2 + $0xe0] sm:$0xff] }
 0x3ff   :  { %8983 = vst [vmem:[#allocation164_spill] sm:$0xff] %v6592_v2 }
 0x401   :  { %2299 = vrot.lane.b32.xlu1 %v2192_v61, %s5097_s17  ;;  %2297 = vrot.lane.b32.xlu0 %v2191_v25, %s5097_s17  ;;  %v6571_v61 = vld [vmem:[#allocation2 + $0xb8] sm:$0xff] }
 0x402   :  { %v2196_v25 = vmul.f32 %v6571_v61, %v2131_v36  ;;  %v2199_v36 = vmul.f32 %v6584_v58, %v2139_v53  ;;  %v6600_v58 = vld [vmem:[#allocation2 + $0xf0] sm:$0xff] }
 0x403   :  { %8985 = vst [vmem:[#allocation166_spill] sm:$0xff] %v6600_v58 }
 0x405   :  { %2303 = vrot.lane.b32.xlu1 %v2194_v27, %s5097_s17  ;;  %2301 = vrot.lane.b32.xlu0 %v2193_v37, %s5097_s17  ;;  %v6579_v27 = vld [vmem:[#allocation2 + $0xc8] sm:$0xff] }
 0x406   :  { %8980 = vst [vmem:[#allocation161_spill] sm:$0xff] %v6579_v27  ;;  %v2198_v37 = vmul.f32 %v6579_v27, %v2135_v31  ;;  %v2201_v31 = vmul.f32 %v6592_v2, %v2143_v52  ;;  %v2147_v27 = vpop.permute.xlu1 %2146  ;;  %v6608_v2 = vld [vmem:[#allocation2 + $0x100] sm:$0xff] }
 0x407   :  { %8987 = vst [vmem:[#allocation168_spill] sm:$0xff] %v6608_v2 }
 0x409   :  { %2307 = vrot.lane.b32.xlu1 %v2196_v25, %s5097_s17  ;;  %2305 = vrot.lane.b32.xlu0 %v2195_v63, %s5097_s17  ;;  %v6587_v25 = vld [vmem:[#allocation2 + $0xd8] sm:$0xff] }
 0x40a   :  { %8982 = vst [vmem:[#allocation163_spill] sm:$0xff] %v6587_v25  ;;  %v2200_v63 = vmul.f32 %v6587_v25, %v2139_v53  ;;  %v2203_v53 = vmul.f32 %v6600_v58, %v2147_v27  ;;  %v2151_v25 = vpop.permute.xlu0 %2150  ;;  %v6616_v58 = vld [vmem:[#allocation2 + $0x110] sm:$0xff] }
 0x40b   :  { %8989 = vst [vmem:[#allocation170_spill] sm:$0xff] %v6616_v58 }
 0x40d   :  { %2311 = vrot.lane.b32.xlu1 %v2198_v37, %s5097_s17  ;;  %2309 = vrot.lane.b32.xlu0 %v2197_v51, %s5097_s17  ;;  %v6595_v37 = vld [vmem:[#allocation2 + $0xe8] sm:$0xff] }
 0x40e   :  { %8984 = vst [vmem:[#allocation165_spill] sm:$0xff] %v6595_v37  ;;  %v2202_v51 = vmul.f32 %v6595_v37, %v2143_v52  ;;  %v2205_v52 = vmul.f32 %v6608_v2, %v2151_v25  ;;  %v2155_v37 = vpop.permute.xlu1 %2154  ;;  %v6624_v2 = vld [vmem:[#allocation2 + $0x120] sm:$0xff] }
 0x40f   :  { %8991 = vst [vmem:[#allocation172_spill] sm:$0xff] %v6624_v2 }
 0x411   :  { %2315 = vrot.lane.b32.xlu1 %v2200_v63, %s5097_s17  ;;  %2313 = vrot.lane.b32.xlu0 %v2199_v36, %s5097_s17  ;;  %v6603_v63 = vld [vmem:[#allocation2 + $0xf8] sm:$0xff] }
 0x412   :  { %8986 = vst [vmem:[#allocation167_spill] sm:$0xff] %v6603_v63  ;;  %v2204_v36 = vmul.f32 %v6603_v63, %v2147_v27  ;;  %v2207_v27 = vmul.f32 %v6616_v58, %v2155_v37  ;;  %v2159_v63 = vpop.permute.xlu0 %2158  ;;  %v6632_v58 = vld [vmem:[#allocation2 + $0x130] sm:$0xff] }
 0x413   :  { %8992 = vst [vmem:[#allocation173_spill] sm:$0xff] %v6632_v58 }
 0x415   :  { %2319 = vrot.lane.b32.xlu1 %v2202_v51, %s5097_s17  ;;  %2317 = vrot.lane.b32.xlu0 %v2201_v31, %s5097_s17  ;;  %v6611_v51 = vld [vmem:[#allocation2 + $0x108] sm:$0xff] }
 0x416   :  { %8988 = vst [vmem:[#allocation169_spill] sm:$0xff] %v6611_v51  ;;  %v2206_v31 = vmul.f32 %v6611_v51, %v2151_v25  ;;  %v2209_v25 = vmul.f32 %v6624_v2, %v2159_v63  ;;  %v2163_v51 = vpop.permute.xlu1 %2162 }
 0x419   :  { %2323 = vrot.lane.b32.xlu1 %v2204_v36, %s5097_s17  ;;  %2321 = vrot.lane.b32.xlu0 %v2203_v53, %s5097_s17  ;;  %v6619_v36 = vld [vmem:[#allocation2 + $0x118] sm:$0xff] }
 0x41a   :  { %8990 = vst [vmem:[#allocation171_spill] sm:$0xff] %v6619_v36  ;;  %v2208_v53 = vmul.f32 %v6619_v36, %v2155_v37  ;;  %v2211_v37 = vmul.f32 %v6632_v58, %v2163_v51  ;;  %v2167_v36 = vpop.permute.xlu0 %2166  ;;  %v2171_v2 = vpop.permute.xlu1 %2170 }
 0x41d   :  { %2327 = vrot.lane.b32.xlu1 %v2206_v31, %s5097_s17  ;;  %2325 = vrot.lane.b32.xlu0 %v2205_v52, %s5097_s17  ;;  %v6627_v31 = vld [vmem:[#allocation2 + $0x128] sm:$0xff] }
 0x41e   :  { %v2210_v52 = vmul.f32 %v6627_v31, %v2159_v63  ;;  %v6640_v63 = vld [vmem:[#allocation2 + $0x140] sm:$0xff] }
 0x41f   :  { %8993 = vst [vmem:[#allocation174_spill] sm:$0xff] %v6640_v63 }
 0x421   :  { %2331 = vrot.lane.b32.xlu1 %v2208_v53, %s5097_s17  ;;  %2329 = vrot.lane.b32.xlu0 %v2207_v27, %s5097_s17  ;;  %v6635_v53 = vld [vmem:[#allocation2 + $0x138] sm:$0xff] }
 0x422   :  { %v2212_v27 = vmul.f32 %v6635_v53, %v2163_v51  ;;  %v6648_v51 = vld [vmem:[#allocation2 + $0x150] sm:$0xff] }
 0x423   :  { %8995 = vst [vmem:[#allocation176_spill] sm:$0xff] %v6648_v51  ;;  %v2215_v11 = vmul.f32 %v6648_v51, %v2171_v2 }
 0x425   :  { %2335 = vrot.lane.b32.xlu1 %v2210_v52, %s5097_s17  ;;  %2333 = vrot.lane.b32.xlu0 %v2209_v25, %s5097_s17  ;;  %v2213_v25 = vmul.f32 %v6640_v63, %v2167_v36  ;;  %v6643_v52 = vld [vmem:[#allocation2 + $0x148] sm:$0xff] }
 0x426   :  { %8994 = vst [vmem:[#allocation175_spill] sm:$0xff] %v6643_v52  ;;  %v2214_v58 = vmul.f32 %v6643_v52, %v2167_v36  ;;  %v1624_v36 = vmul.f32 %v6483_v21, %v6183_v30  ;;  %v1976_v21 = vsel %vm944_vm4, %v6370_v45, %v6372_v4  ;;  %v1628_v45 = vmul.f32 %v6499_v29, %v6187_v44 }
 0x428   :  { %v2042_v51 = vadd.f32 %v6361_v34, %v1624_v36 }
 0x429   :  { %2339 = vrot.lane.b32.xlu1 %v2212_v27, %s5097_s17  ;;  %2337 = vrot.lane.b32.xlu0 %v2211_v37, %s5097_s17  ;;  %v6651_v27 = vld [vmem:[#allocation2 + $0x158] sm:$0xff] }
 0x42a   :  { %8996 = vst [vmem:[#allocation177_spill] sm:$0xff] %v6651_v27  ;;  %v2216_v37 = vmul.f32 %v6651_v27, %v2171_v2 }
 0x42d   :  { %2343 = vrot.lane.b32.xlu1 %v2214_v58, %s5097_s17  ;;  %2341 = vrot.lane.b32.xlu0 %v2213_v25, %s5097_s17  ;;  %v1975_v58 = vsel %vm944_vm4, %v6359_v28, %v6361_v34  ;;  %v1623_v25 = vmul.f32 %v6480_v9, %v6183_v30  ;;  %v1625_v28 = vmul.f32 %v6488_v57, %v6185_v22 }
 0x42e   :  { %v1627_v57 = vmul.f32 %v6496_v16, %v6187_v44  ;;  %v1629_v44 = vmul.f32 %v6504_v56, %v6191_v26 }
 0x42f   :  { %v2041_v63 = vadd.f32 %v1975_v58, %v1623_v25  ;;  %v2043_v9 = vadd.f32 %v1976_v21, %v1625_v28  ;;  %v1630_v25 = vmul.f32 %v6507_v50, %v6191_v26  ;;  %v1632_v28 = vmul.f32 %v6515_v55, %v6189_v14 }
 0x431   :  { %2347 = vrot.lane.b32.xlu1 %v2216_v37, %s5097_s17  ;;  %2345 = vrot.lane.b32.xlu0 %v2215_v11, %s5097_s17  ;;  %v1626_v11 = vmul.f32 %v6491_v35, %v6185_v22 }
 0x433   :  { %v2044_v34 = vadd.f32 %v6372_v4, %v1626_v11  ;;  %v2048_v11 = vadd.f32 %v6394_v38, %v1630_v25 }
 0x44f   :  { %v2264_v2 = vpop.permute.xlu1 %2263  ;;  %v2262_v27 = vpop.permute.xlu0 %2261 }
 0x450   :  { %v2416_v37 = vadd.f32 %v2264_v2, %v2042_v51  ;;  %v2349_v52 = vsel %vm1319_vm5, %v2262_v27, %v2264_v2  ;;  %v1977_v51 = vsel %vm944_vm4, %v6381_v5, %v6383_v8  ;;  %v1978_v5 = vsel %vm944_vm4, %v6392_v19, %v6394_v38 }
 0x451   :  { %v2415_v30 = vadd.f32 %v2349_v52, %v2041_v63  ;;  %v2046_v63 = vadd.f32 %v6383_v8, %v1628_v45  ;;  %v2045_v52 = vadd.f32 %v1977_v51, %v1627_v57  ;;  %v2047_v21 = vadd.f32 %v1978_v5, %v1629_v44 }
 0x452   :  { %2505 = vrot.lane.b32.xlu1 %v2416_v37, %s5102_s19  ;;  %v1979_v19 = vsel %vm944_vm4, %v6402_v0, %v6404_v12  ;;  %v1631_v38 = vmul.f32 %v6512_v24, %v6189_v14  ;;  %v1980_v0 = vsel %vm944_vm4, %v6412_v62, %v6414_v20  ;;  %v1636_v57 = vmul.f32 %v6531_v43, %v6193_v33 }
 0x453   :  { %v2268_v36 = vpop.permute.xlu1 %2267  ;;  %2503 = vrot.lane.b32.xlu0 %v2415_v30, %s5102_s19  ;;  %v2266_v35 = vpop.permute.xlu0 %2265  ;;  %v1981_v62 = vsel %vm944_vm4, %v6416_v41, %v6418_v42  ;;  %v1982_v41 = vsel %vm944_vm4, %v6420_v17, %v6422_v47  ;;  %v1983_v17 = vsel %vm944_vm4, %v6424_v60, %v6426_v15  ;;  %v1984_v60 = vsel %vm944_vm4, %v6428_v32, %v6430_v1 }
 0x454   :  { %v2418_v27 = vadd.f32 %v2268_v36, %v2044_v34  ;;  %v2350_v22 = vsel %vm1319_vm5, %v2266_v35, %v2268_v36  ;;  %v2050_v34 = vadd.f32 %v6404_v12, %v1632_v28  ;;  %v1634_v35 = vmul.f32 %v6523_v54, %v6195_v18 }
 0x455   :  { %v2417_v4 = vadd.f32 %v2350_v22, %v2043_v9  ;;  %v2049_v9 = vadd.f32 %v1979_v19, %v1631_v38  ;;  %v1633_v12 = vmul.f32 %v6520_v23, %v6195_v18  ;;  %v1985_v32 = vsel %vm944_vm4, %v6432_v48, %v6434_v7  ;;  %v9002_v48 = vld [vmem:[#allocation138_spill] sm:$0xff] }
 0x456   :  { %2509 = vrot.lane.b32.xlu1 %v2418_v27, %s5102_s19  ;;  %v2052_v51 = vadd.f32 %v6414_v20, %v1634_v35  ;;  %v1635_v20 = vmul.f32 %v6528_v3, %v6193_v33 }
 0x457   :  { %v2272_v58 = vpop.permute.xlu1 %2271  ;;  %2507 = vrot.lane.b32.xlu0 %v2417_v4, %s5102_s19  ;;  %v2270_v29 = vpop.permute.xlu0 %2269  ;;  %v2051_v27 = vadd.f32 %v1980_v0, %v1633_v12 }
 0x458   :  { %v2420_v2 = vadd.f32 %v2272_v58, %v2046_v63  ;;  %v2351_v16 = vsel %vm1319_vm5, %v2270_v29, %v2272_v58  ;;  %v2054_v63 = vadd.f32 %v6418_v42, %v1636_v57  ;;  %v8997_v29 = vld [vmem:[#allocation121_spill] sm:$0xff] }
 0x459   :  { %v2419_v8 = vadd.f32 %v2351_v16, %v2045_v52  ;;  %v2053_v52 = vadd.f32 %v1981_v62, %v1635_v20  ;;  %v1638_v25 = vmul.f32 %v6539_v40, %v8997_v29  ;;  %v1637_v42 = vmul.f32 %v6536_v39, %v8997_v29  ;;  %v9004_v62 = vld [vmem:[#allocation159_spill] sm:$0xff] }
 0x45a   :  { %2513 = vrot.lane.b32.xlu1 %v2420_v2, %s5102_s19  ;;  %v9008_v29 = vld [vmem:[#allocation139_spill] sm:$0xff] }
 0x45b   :  { %v2276_v37 = vpop.permute.xlu1 %2275  ;;  %2511 = vrot.lane.b32.xlu0 %v2419_v8, %s5102_s19  ;;  %v2274_v50 = vpop.permute.xlu0 %2273  ;;  %v2056_v2 = vadd.f32 %v6422_v47, %v1638_v25  ;;  %v2055_v16 = vadd.f32 %v1982_v41, %v1637_v42  ;;  %v8998_v8 = vld [vmem:[#allocation120_spill] sm:$0xff] }
 0x45c   :  { %v2422_v30 = vadd.f32 %v2276_v37, %v2048_v11  ;;  %v2352_v26 = vsel %vm1319_vm5, %v2274_v50, %v2276_v37  ;;  %v1640_v11 = vmul.f32 %v6547_v13, %v8998_v8  ;;  %v1639_v47 = vmul.f32 %v6544_v59, %v8998_v8  ;;  %v9010_v8 = vld [vmem:[#allocation127_spill] sm:$0xff] }
 0x45d   :  { %v2421_v56 = vadd.f32 %v2352_v26, %v2047_v21 }
 0x45e   :  { %2517 = vrot.lane.b32.xlu1 %v2422_v30, %s5102_s19  ;;  %v2058_v50 = vadd.f32 %v6426_v15, %v1640_v11  ;;  %v2057_v28 = vadd.f32 %v1983_v17, %v1639_v47  ;;  %v8999_v30 = vld [vmem:[#allocation123_spill] sm:$0xff] }
 0x45f   :  { %v2280_v36 = vpop.permute.xlu1 %2279  ;;  %2515 = vrot.lane.b32.xlu0 %v2421_v56, %s5102_s19  ;;  %v2278_v55 = vpop.permute.xlu0 %2277  ;;  %v1642_v26 = vmul.f32 %v6555_v49, %v8999_v30  ;;  %v1641_v15 = vmul.f32 %v6552_v6, %v8999_v30  ;;  %v9011_v11 = vld [vmem:[#allocation163_spill] sm:$0xff] }
 0x460   :  { %v2424_v45 = vadd.f32 %v2280_v36, %v2050_v34  ;;  %v2353_v14 = vsel %vm1319_vm5, %v2278_v55, %v2280_v36  ;;  %v9000_v55 = vld [vmem:[#allocation122_spill] sm:$0xff]  ;;  %v1650_v17 = vmul.f32 %v9011_v11, %v9010_v8 }
 0x461   :  { %v2423_v24 = vadd.f32 %v2353_v14, %v2049_v9  ;;  %v2060_v34 = vadd.f32 %v6430_v1, %v1642_v26  ;;  %v2059_v9 = vadd.f32 %v1984_v60, %v1641_v15  ;;  %v1644_v35 = vmul.f32 %v6563_v46, %v9000_v55  ;;  %v9016_v15 = vld [vmem:[#allocation165_spill] sm:$0xff]  ;;  %v9032_v11 = vld [vmem:[#allocation150_spill] sm:$0xff] }
 0x462   :  { %2521 = vrot.lane.b32.xlu1 %v2424_v45, %s5102_s19  ;;  %v1643_v1 = vmul.f32 %v6560_v10, %v9000_v55 }
 0x463   :  { %v2284_v22 = vpop.permute.xlu1 %2283  ;;  %2519 = vrot.lane.b32.xlu0 %v2423_v24, %s5102_s19  ;;  %v2282_v54 = vpop.permute.xlu0 %2281  ;;  %v2062_v14 = vadd.f32 %v6434_v7, %v1644_v35  ;;  %v9019_v35 = vld [vmem:[#allocation164_spill] sm:$0xff] }
 0x464   :  { %v2426_v4 = vadd.f32 %v2284_v22, %v2052_v51  ;;  %v2354_v18 = vsel %vm1319_vm5, %v2282_v54, %v2284_v22  ;;  %v2061_v12 = vadd.f32 %v1985_v32, %v1643_v1  ;;  %v9001_v51 = vld [vmem:[#allocation125_spill] sm:$0xff] }
 0x465   :  { %v2425_v23 = vadd.f32 %v2354_v18, %v2051_v27  ;;  %v1646_v27 = vmul.f32 %v6571_v61, %v9001_v51  ;;  %v9003_v22 = vld [vmem:[#allocation137_spill] sm:$0xff]  ;;  %v1645_v7 = vmul.f32 %v9004_v62, %v9001_v51  ;;  %v9022_v51 = vld [vmem:[#allocation146_spill] sm:$0xff] }
 0x466   :  { %2525 = vrot.lane.b32.xlu1 %v2426_v4, %s5102_s19  ;;  %v1986_v54 = vsel %vm944_vm4, %v9003_v22, %v9002_v48 }
 0x467   :  { %v2288_v58 = vpop.permute.xlu1 %2287  ;;  %2523 = vrot.lane.b32.xlu0 %v2425_v23, %s5102_s19  ;;  %v2286_v43 = vpop.permute.xlu0 %2285  ;;  %v2064_v18 = vadd.f32 %v9002_v48, %v1646_v27  ;;  %v2063_v20 = vadd.f32 %v1986_v54, %v1645_v7  ;;  %v9023_v27 = vld [vmem:[#allocation145_spill] sm:$0xff] }
 0x468   :  { %v2428_v5 = vadd.f32 %v2288_v58, %v2054_v63  ;;  %v2355_v33 = vsel %vm1319_vm5, %v2286_v43, %v2288_v58  ;;  %v9005_v63 = vld [vmem:[#allocation124_spill] sm:$0xff]  ;;  %v1990_v48 = vsel %vm944_vm4, %v9023_v27, %v9022_v51 }
 0x469   :  { %v2427_v3 = vadd.f32 %v2355_v33, %v2053_v52  ;;  %v9006_v52 = vld [vmem:[#allocation161_spill] sm:$0xff]  ;;  %v9007_v43 = vld [vmem:[#allocation140_spill] sm:$0xff] }
 0x46a   :  { %2529 = vrot.lane.b32.xlu1 %v2428_v5, %s5102_s19  ;;  %v1648_v58 = vmul.f32 %v9006_v52, %v9005_v63  ;;  %v1987_v25 = vsel %vm944_vm4, %v9008_v29, %v9007_v43  ;;  %v9009_v33 = vld [vmem:[#allocation160_spill] sm:$0xff] }
 0x46b   :  { %v2292_v44 = vpop.permute.xlu1 %2291  ;;  %2527 = vrot.lane.b32.xlu0 %v2427_v3, %s5102_s19  ;;  %v2290_v40 = vpop.permute.xlu0 %2289  ;;  %v1647_v42 = vmul.f32 %v9009_v33, %v9005_v63  ;;  %v9027_v52 = vld [vmem:[#allocation148_spill] sm:$0xff] }
 0x46c   :  { %v2430_v21 = vadd.f32 %v2292_v44, %v2056_v2  ;;  %v2356_v39 = vsel %vm1319_vm5, %v2290_v40, %v2292_v44  ;;  %v2066_v2 = vadd.f32 %v9007_v43, %v1648_v58  ;;  %v9028_v58 = vld [vmem:[#allocation147_spill] sm:$0xff] }
 0x46d   :  { %v2429_v37 = vadd.f32 %v2356_v39, %v2055_v16  ;;  %v2065_v16 = vadd.f32 %v1987_v25, %v1647_v42  ;;  %v9013_v39 = vld [vmem:[#allocation141_spill] sm:$0xff]  ;;  %v1991_v43 = vsel %vm944_vm4, %v9028_v58, %v9027_v52 }
 0x46e   :  { %2533 = vrot.lane.b32.xlu1 %v2430_v21, %s5102_s19  ;;  %v9012_v21 = vld [vmem:[#allocation142_spill] sm:$0xff] }
 0x46f   :  { %v2296_v19 = vpop.permute.xlu1 %2295  ;;  %2531 = vrot.lane.b32.xlu0 %v2429_v37, %s5102_s19  ;;  %v2294_v13 = vpop.permute.xlu0 %2293  ;;  %v1988_v47 = vsel %vm944_vm4, %v9013_v39, %v9012_v21  ;;  %v2068_v30 = vadd.f32 %v9012_v21, %v1650_v17  ;;  %v9033_v17 = vld [vmem:[#allocation149_spill] sm:$0xff] }
 0x470   :  { %v2432_v38 = vadd.f32 %v2296_v19, %v2058_v50  ;;  %v2357_v59 = vsel %vm1319_vm5, %v2294_v13, %v2296_v19  ;;  %v1992_v21 = vsel %vm944_vm4, %v9033_v17, %v9032_v11 }
 0x471   :  { %v2431_v56 = vadd.f32 %v2357_v59, %v2057_v28  ;;  %v9014_v28 = vld [vmem:[#allocation162_spill] sm:$0xff] }
 0x472   :  { %2537 = vrot.lane.b32.xlu1 %v2432_v38, %s5102_s19  ;;  %v1649_v19 = vmul.f32 %v9014_v28, %v9010_v8  ;;  %v9015_v59 = vld [vmem:[#allocation126_spill] sm:$0xff] }
 0x473   :  { %v2300_v36 = vpop.permute.xlu1 %2299  ;;  %2535 = vrot.lane.b32.xlu0 %v2431_v56, %s5102_s19  ;;  %v2298_v49 = vpop.permute.xlu0 %2297  ;;  %v1652_v56 = vmul.f32 %v9016_v15, %v9015_v59  ;;  %v1651_v32 = vmul.f32 %v9019_v35, %v9015_v59  ;;  %v9036_v59 = vld [vmem:[#allocation152_spill] sm:$0xff]  ;;  %v9037_v15 = vld [vmem:[#allocation151_spill] sm:$0xff] }
 0x474   :  { %v2434_v0 = vadd.f32 %v2300_v36, %v2060_v34  ;;  %v2358_v6 = vsel %vm1319_vm5, %v2298_v49, %v2300_v36  ;;  %v2067_v26 = vadd.f32 %v1988_v47, %v1649_v19  ;;  %v9017_v34 = vld [vmem:[#allocation144_spill] sm:$0xff] }
 0x475   :  { %v2433_v45 = vadd.f32 %v2358_v6, %v2059_v9  ;;  %v9018_v9 = vld [vmem:[#allocation143_spill] sm:$0xff]  ;;  %v2070_v6 = vadd.f32 %v9017_v34, %v1652_v56  ;;  %v1993_v56 = vsel %vm944_vm4, %v9037_v15, %v9036_v59 }
 0x476   :  { %2541 = vrot.lane.b32.xlu1 %v2434_v0, %s5102_s19  ;;  %v1989_v36 = vsel %vm944_vm4, %v9018_v9, %v9017_v34  ;;  %v6922_v15 = vld [vmem:[%s8561_s1 + $0x30] sm:$0xff] }
 0x477   :  { %v2304_v24 = vpop.permute.xlu1 %2303  ;;  %2539 = vrot.lane.b32.xlu0 %v2433_v45, %s5102_s19  ;;  %v2302_v46 = vpop.permute.xlu0 %2301  ;;  %v2069_v1 = vadd.f32 %v1989_v36, %v1651_v32  ;;  %v9038_v36 = vld [vmem:[#allocation172_spill] sm:$0xff] }
 0x478   :  { %v2436_v57 = vadd.f32 %v2304_v24, %v2062_v14  ;;  %v2359_v10 = vsel %vm1319_vm5, %v2302_v46, %v2304_v24  ;;  %v9021_v24 = vld [vmem:[#allocation167_spill] sm:$0xff] }
 0x479   :  { %v2435_v4 = vadd.f32 %v2359_v10, %v2061_v12  ;;  %v9020_v12 = vld [vmem:[#allocation129_spill] sm:$0xff] }
 0x47a   :  { %2545 = vrot.lane.b32.xlu1 %v2436_v57, %s5102_s19  ;;  %v1654_v46 = vmul.f32 %v9021_v24, %v9020_v12  ;;  %v9024_v57 = vld [vmem:[#allocation166_spill] sm:$0xff] }
 0x47b   :  { %v2308_v23 = vpop.permute.xlu1 %2307  ;;  %2543 = vrot.lane.b32.xlu0 %v2435_v4, %s5102_s19  ;;  %v2306_v61 = vpop.permute.xlu0 %2305  ;;  %v1653_v10 = vmul.f32 %v9024_v57, %v9020_v12 }
 0x47c   :  { %v2438_v41 = vadd.f32 %v2308_v23, %v2064_v18  ;;  %v2360_v5 = vsel %vm1319_vm5, %v2306_v61, %v2308_v23  ;;  %v2072_v7 = vadd.f32 %v9022_v51, %v1654_v46  ;;  %v9025_v23 = vld [vmem:[#allocation128_spill] sm:$0xff]  ;;  %v9026_v61 = vld [vmem:[#allocation169_spill] sm:$0xff] }
 0x47d   :  { %v2437_v3 = vadd.f32 %v2360_v5, %v2063_v20  ;;  %v2071_v4 = vadd.f32 %v1990_v48, %v1653_v10  ;;  %v1656_v63 = vmul.f32 %v9026_v61, %v9025_v23  ;;  %v9042_v51 = vld [vmem:[#allocation173_spill] sm:$0xff]  ;;  %v9043_v10 = vld [vmem:[#allocation132_spill] sm:$0xff] }
 0x47e   :  { %2549 = vrot.lane.b32.xlu1 %v2438_v41, %s5102_s19  ;;  %v9029_v41 = vld [vmem:[#allocation168_spill] sm:$0xff] }
 0x47f   :  { %v2312_v44 = vpop.permute.xlu1 %2311  ;;  %2547 = vrot.lane.b32.xlu0 %v2437_v3, %s5102_s19  ;;  %v2310_v40 = vpop.permute.xlu0 %2309  ;;  %v1655_v5 = vmul.f32 %v9029_v41, %v9025_v23  ;;  %v2074_v42 = vadd.f32 %v9027_v52, %v1656_v63  ;;  %v9047_v63 = vld [vmem:[#allocation174_spill] sm:$0xff] }
 0x480   :  { %v2440_v37 = vadd.f32 %v2312_v44, %v2066_v2  ;;  %v2361_v50 = vsel %vm1319_vm5, %v2310_v40, %v2312_v44  ;;  %v9030_v44 = vld [vmem:[#allocation131_spill] sm:$0xff]  ;;  %v1663_v52 = vmul.f32 %v9047_v63, %v9043_v10 }
 0x481   :  { %v2439_v13 = vadd.f32 %v2361_v50, %v2065_v16  ;;  %v2073_v3 = vadd.f32 %v1991_v43, %v1655_v5  ;;  %v9031_v40 = vld [vmem:[#allocation171_spill] sm:$0xff]  ;;  %v9048_v5 = vld [vmem:[#allocation134_spill] sm:$0xff] }
 0x482   :  { %2553 = vrot.lane.b32.xlu1 %v2440_v37, %s5102_s19  ;;  %v1658_v8 = vmul.f32 %v9031_v40, %v9030_v44  ;;  %v9034_v37 = vld [vmem:[#allocation170_spill] sm:$0xff] }
 0x483   :  { %v2316_v60 = vpop.permute.xlu1 %2315  ;;  %2551 = vrot.lane.b32.xlu0 %v2439_v13, %s5102_s19  ;;  %v2314_v38 = vpop.permute.xlu0 %2313  ;;  %v1657_v50 = vmul.f32 %v9034_v37, %v9030_v44 }
 0x484   :  { %v2442_v49 = vadd.f32 %v2316_v60, %v2068_v30  ;;  %v2362_v55 = vsel %vm1319_vm5, %v2314_v38, %v2316_v60  ;;  %v2076_v19 = vadd.f32 %v9032_v11, %v1658_v8  ;;  %v9035_v60 = vld [vmem:[#allocation130_spill] sm:$0xff]  ;;  %v9052_v8 = vld [vmem:[#allocation176_spill] sm:$0xff] }
 0x485   :  { %v2441_v0 = vadd.f32 %v2362_v55, %v2067_v26  ;;  %v2075_v13 = vadd.f32 %v1992_v21, %v1657_v50  ;;  %v1660_v38 = vmul.f32 %v6627_v31, %v9035_v60  ;;  %v1665_v11 = vmul.f32 %v9052_v8, %v9048_v5 }
 0x486   :  { %2557 = vrot.lane.b32.xlu1 %v2442_v49, %s5102_s19  ;;  %v1659_v49 = vmul.f32 %v9038_v36, %v9035_v60  ;;  %v9054_v60 = vld [vmem:[#allocation26_spill] sm:$0xff]  ;;  %v6936_v36 = vld [vmem:[%s8561_s1 + $0x50] sm:$0xff] }
 0x487   :  { %v2320_v45 = vpop.permute.xlu1 %2319  ;;  %2555 = vrot.lane.b32.xlu0 %v2441_v0, %s5102_s19  ;;  %v2318_v14 = vpop.permute.xlu0 %2317  ;;  %v2078_v35 = vadd.f32 %v9036_v59, %v1660_v38  ;;  %v6915_v38 = vld [vmem:[%s8561_s1 + $0x20] sm:$0xff]  ;;  %v9055_v59 = vld [vmem:[#allocation27_spill] sm:$0xff] }
 0x488   :  { %v2444_v22 = vadd.f32 %v2320_v45, %v2070_v6  ;;  %v2363_v54 = vsel %vm1319_vm5, %v2318_v14, %v2320_v45  ;;  %v2077_v32 = vadd.f32 %v1993_v56, %v1659_v49  ;;  %v9039_v6 = vld [vmem:[#allocation133_spill] sm:$0xff]  ;;  %v9040_v45 = vld [vmem:[#allocation154_spill] sm:$0xff]  ;;  %v9056_v56 = vld [vmem:[#allocation28_spill] sm:$0xff] }
 0x489   :  { %v2443_v62 = vadd.f32 %v2363_v54, %v2069_v1  ;;  %v1662_v1 = vmul.f32 %v6635_v53, %v9039_v6  ;;  %v9041_v14 = vld [vmem:[#allocation153_spill] sm:$0xff]  ;;  %v1661_v27 = vmul.f32 %v9042_v51, %v9039_v6  ;;  %v9058_v49 = vld [vmem:[#allocation30_spill] sm:$0xff]  ;;  %v9062_v6 = vld [vmem:[#allocation32_spill] sm:$0xff] }
 0x48a   :  { %2561 = vrot.lane.b32.xlu1 %v2444_v22, %s5102_s19  ;;  %v1994_v12 = vsel %vm944_vm4, %v9041_v14, %v9040_v45  ;;  %v6965_v14 = vld [vmem:[%s8561_s1 + $0x80] sm:$0xff]  ;;  %v6976_v51 = vld [vmem:[%s8561_s1 + $0x90] sm:$0xff] }
 0x48b   :  { %v2324_v18 = vpop.permute.xlu1 %2323  ;;  %2559 = vrot.lane.b32.xlu0 %v2443_v62, %s5102_s19  ;;  %v2322_v20 = vpop.permute.xlu0 %2321  ;;  %v2080_v22 = vadd.f32 %v9040_v45, %v1662_v1  ;;  %v2079_v54 = vadd.f32 %v1994_v12, %v1661_v27  ;;  %v9044_v62 = vld [vmem:[#allocation175_spill] sm:$0xff]  ;;  %v9065_v12 = vld [vmem:[#allocation33_spill] sm:$0xff] }
 0x48c   :  { %v2446_v29 = vadd.f32 %v2324_v18, %v2072_v7  ;;  %v2364_v25 = vsel %vm1319_vm5, %v2322_v20, %v2324_v18  ;;  %v1664_v7 = vmul.f32 %v9044_v62, %v9043_v10  ;;  %v9046_v18 = vld [vmem:[#allocation155_spill] sm:$0xff]  ;;  %v5103_v62 = vmov 5  }
 0x48d   :  { %v2445_v33 = vadd.f32 %v2364_v25, %v2071_v4  ;;  %v9045_v4 = vld [vmem:[#allocation156_spill] sm:$0xff]  ;;  %v9068_v27 = vld [vmem:[#allocation135_spill] sm:$0xff] }
 0x48e   :  { %2565 = vrot.lane.b32.xlu1 %v2446_v29, %s5102_s19  ;;  %v1995_v20 = vsel %vm944_vm4, %v9046_v18, %v9045_v4  ;;  %v2082_v43 = vadd.f32 %v9045_v4, %v1664_v7 }
 0x48f   :  { %v2328_v2 = vpop.permute.xlu1 %2327  ;;  %2563 = vrot.lane.b32.xlu0 %v2445_v33, %s5102_s19  ;;  %v2326_v16 = vpop.permute.xlu0 %2325  ;;  %v2081_v29 = vadd.f32 %v1995_v20, %v1663_v52  ;;  %v9049_v33 = vld [vmem:[#allocation177_spill] sm:$0xff] }
 0x490   :  { %v2448_v39 = vadd.f32 %v2328_v2, %v2074_v42  ;;  %v2365_v47 = vsel %vm1319_vm5, %v2326_v16, %v2328_v2  ;;  %v1666_v42 = vmul.f32 %v9049_v33, %v9048_v5  ;;  %v9051_v2 = vld [vmem:[#allocation157_spill] sm:$0xff] }
 0x491   :  { %v2447_v28 = vadd.f32 %v2365_v47, %v2073_v3  ;;  %v9050_v3 = vld [vmem:[#allocation158_spill] sm:$0xff] }
 0x492   :  { %2569 = vrot.lane.b32.xlu1 %v2448_v39, %s5102_s19  ;;  %v1996_v16 = vsel %vm944_vm4, %v9051_v2, %v9050_v3  ;;  %v2084_v21 = vadd.f32 %v9050_v3, %v1666_v42 }
 0x493   :  { %v2332_v30 = vpop.permute.xlu1 %2331  ;;  %2567 = vrot.lane.b32.xlu0 %v2447_v28, %s5102_s19  ;;  %v2330_v26 = vpop.permute.xlu0 %2329  ;;  %v2083_v39 = vadd.f32 %v1996_v16, %v1665_v11  ;;  %v4949_v11 = vld [vmem:[%s8561_s1] sm:$0xff] }
 0x494   :  { %v2450_v34 = vadd.f32 %v2332_v30, %v2076_v19  ;;  %v2366_v9 = vsel %vm1319_vm5, %v2330_v26, %v2332_v30  ;;  %v9053_v30 = vld [vmem:[#allocation24_spill] sm:$0xff]  ;;  %v6908_v26 = vld [vmem:[%s8561_s1 + $0x10] sm:$0xff] }
 0x495   :  { %v2449_v55 = vadd.f32 %v2366_v9, %v2075_v13  ;;  %v6901_v13 = vld [vmem:[%s8561_s1 + $0x8] sm:$0xff]  ;;  %v9057_v9 = vld [vmem:[#allocation29_spill] sm:$0xff] }
 0x496   :  { %2573 = vrot.lane.b32.xlu1 %v2450_v34, %s5102_s19  ;;  %v6929_v34 = vld [vmem:[%s8561_s1 + $0x40] sm:$0xff] }
 0x497   :  { %v2336_v0 = vpop.permute.xlu1 %2335  ;;  %2571 = vrot.lane.b32.xlu0 %v2449_v55, %s5102_s19  ;;  %v2334_v31 = vpop.permute.xlu0 %2333  ;;  %v6943_v55 = vld [vmem:[%s8561_s1 + $0x60] sm:$0xff] }
 0x498   :  { %v2452_v24 = vadd.f32 %v2336_v0, %v2078_v35  ;;  %v2367_v46 = vsel %vm1319_vm5, %v2334_v31, %v2336_v0  ;;  %v9059_v35 = vld [vmem:[#allocation31_spill] sm:$0xff] }
 0x499   :  { %v2451_v48 = vadd.f32 %v2367_v46, %v2077_v32  ;;  %v6954_v31 = vld [vmem:[%s8561_s1 + $0x70] sm:$0xff] }
 0x49a   :  { %2577 = vrot.lane.b32.xlu1 %v2452_v24, %s5102_s19 }
 0x49b   :  { %v2340_v57 = vpop.permute.xlu1 %2339  ;;  %2575 = vrot.lane.b32.xlu0 %v2451_v48, %s5102_s19  ;;  %v2338_v53 = vpop.permute.xlu0 %2337 }
 0x49c   :  { %v2454_v23 = vadd.f32 %v2340_v57, %v2080_v22  ;;  %v2368_v61 = vsel %vm1319_vm5, %v2338_v53, %v2340_v57  ;;  %v9071_v57 = vld [vmem:[#allocation136_spill] sm:$0xff] }
 0x49d   :  { %v2453_v58 = vadd.f32 %v2368_v61, %v2079_v54  ;;  %v6987_v54 = vld [vmem:[%s8561_s1 + $0xa0] sm:$0xff] }
 0x49e   :  { %2581 = vrot.lane.b32.xlu1 %v2454_v23, %s5102_s19 }
 0x49f   :  { %v2344_v25 = vpop.permute.xlu1 %2343  ;;  %2579 = vrot.lane.b32.xlu0 %v2453_v58, %s5102_s19  ;;  %v2342_v41 = vpop.permute.xlu0 %2341 }
 0x4a0   :  { %v2456_v44 = vadd.f32 %v2344_v25, %v2082_v43  ;;  %v2369_v40 = vsel %vm1319_vm5, %v2342_v41, %v2344_v25 }
 0x4a1   :  { %v2455_v17 = vadd.f32 %v2369_v40, %v2081_v29  ;;  %v8717_v40 = vmov 8  }
 0x4a2   :  { %2585 = vrot.lane.b32.xlu1 %v2456_v44, %s5102_s19 }
 0x4a3   :  { %v2348_v47 = vpop.permute.xlu1 %2347  ;;  %2583 = vrot.lane.b32.xlu0 %v2455_v17, %s5102_s19  ;;  %v2346_v37 = vpop.permute.xlu0 %2345 }
 0x4a4   :  { %v2458_v50 = vadd.f32 %v2348_v47, %v2084_v21  ;;  %v2370_v28 = vsel %vm1319_vm5, %v2346_v37, %v2348_v47  ;;  %v4950_v21 = vld [vmem:[%s8561_s1 + $0x18] sm:$0xff]  ;;  %v4951_v37 = vld [vmem:[%s8561_s1 + $0x28] sm:$0xff] }
 0x4a5   :  { %v2457_v19 = vadd.f32 %v2370_v28, %v2083_v39  ;;  %v4952_v28 = vld [vmem:[%s8561_s1 + $0x38] sm:$0xff] }
 0x4a6   :  { %2589 = vrot.lane.b32.xlu1 %v2458_v50, %s5102_s19 }
 0x4a7   :  { %2587 = vrot.lane.b32.xlu0 %v2457_v19, %s5102_s19 }
 0x4aa   :  { %2707 = vperm.xlu1 %4751, %v6901_v13  }
 0x4ab   :  { %2703 = vperm.xlu0 %4750, %v9053_v30  }
 0x4ae   :  { %2711 = vperm.xlu1 %4751, %v6908_v26  }
 0x4af   :  { %2715 = vperm.xlu0 %4750, %v9054_v60  }
 0x4b2   :  { %2719 = vperm.xlu1 %4751, %v6915_v38  }
 0x4b3   :  { %2723 = vperm.xlu0 %4750, %v9055_v59  }
 0x4b6   :  { %2727 = vperm.xlu1 %4751, %v6922_v15  }
 0x4b7   :  { %2731 = vperm.xlu0 %4750, %v9056_v56  }
 0x4ba   :  { %2735 = vperm.xlu1 %4751, %v6929_v34  }
 0x4bb   :  { %2739 = vperm.xlu0 %4750, %v9057_v9  }
 0x4be   :  { %2743 = vperm.xlu1 %4751, %v6936_v36  }
 0x4bf   :  { %2747 = vperm.xlu0 %4750, %v9058_v49  }
 0x4c2   :  { %2751 = vperm.xlu1 %4751, %v6943_v55  }
 0x4c3   :  { %2755 = vperm.xlu0 %4750, %v9059_v35  }
 0x4c4   :  { %v6947_v32 = vpop.permute.xlu1 %2505 }
 0x4c5   :  { %9060 = vst [vmem:[#allocation121_spill] sm:$0xff] %v6947_v32  ;;  %v6949_v0 = vpop.permute.xlu0 %2503 }
 0x4c6   :  { %9061 = vst [vmem:[#allocation120_spill] sm:$0xff] %v6949_v0  ;;  %2759 = vperm.xlu1 %4751, %v6954_v31  }
 0x4c7   :  { %2763 = vperm.xlu0 %4750, %v9062_v6  }
 0x4c8   :  { %v6958_v1 = vpop.permute.xlu1 %2509 }
 0x4c9   :  { %9063 = vst [vmem:[#allocation123_spill] sm:$0xff] %v6958_v1  ;;  %v6960_v45 = vpop.permute.xlu0 %2507 }
 0x4ca   :  { %9064 = vst [vmem:[#allocation122_spill] sm:$0xff] %v6960_v45  ;;  %2767 = vperm.xlu1 %4751, %v6965_v14  }
 0x4cb   :  { %2771 = vperm.xlu0 %4750, %v9065_v12  }
 0x4cc   :  { %v6969_v24 = vpop.permute.xlu1 %2513 }
 0x4cd   :  { %9066 = vst [vmem:[#allocation125_spill] sm:$0xff] %v6969_v24  ;;  %v6971_v46 = vpop.permute.xlu0 %2511 }
 0x4ce   :  { %9067 = vst [vmem:[#allocation138_spill] sm:$0xff] %v6971_v46  ;;  %2775 = vperm.xlu1 %4751, %v6976_v51  }
 0x4cf   :  { %2779 = vperm.xlu0 %4750, %v9068_v27  }
 0x4d0   :  { %v6980_v48 = vpop.permute.xlu1 %2517 }
 0x4d1   :  { %9069 = vst [vmem:[#allocation137_spill] sm:$0xff] %v6980_v48  ;;  %v6982_v22 = vpop.permute.xlu0 %2515 }
 0x4d2   :  { %9070 = vst [vmem:[#allocation159_spill] sm:$0xff] %v6982_v22  ;;  %2783 = vperm.xlu1 %4751, %v6987_v54  }
 0x4d3   :  { %2787 = vperm.xlu0 %4750, %v9071_v57  }
 0x4d4   :  { %v6991_v53 = vpop.permute.xlu1 %2521 }
 0x4d5   :  { %9072 = vst [vmem:[#allocation124_spill] sm:$0xff] %v6991_v53  ;;  %v6993_v10 = vpop.permute.xlu0 %2519 }
 0x4d6   :  { %9073 = vst [vmem:[#allocation161_spill] sm:$0xff] %v6993_v10  ;;  %4752 = vset.pattern.permute.xlu1 %v5103_v62  ;;  %v7254_v10 = vld [vmem:[#allocation2 + $0x38] sm:$0xff] }
 0x4d7   :  { %2879 = vperm.xlu1 %4752, %v9053_v30   ;;  %4753 = vset.pattern.permute.xlu0 %v5103_v62 }
 0x4d8   :  { %v6998_v7 = vpop.permute.xlu1 %2525  ;;  %2883 = vperm.xlu0 %4753, %v6901_v13  }
 0x4d9   :  { %9074 = vst [vmem:[#allocation140_spill] sm:$0xff] %v6998_v7  ;;  %v7001_v4 = vpop.permute.xlu0 %2523 }
 0x4da   :  { %9075 = vst [vmem:[#allocation139_spill] sm:$0xff] %v7001_v4  ;;  %v7238_v4 = vld [vmem:[#allocation2 + $0x20] sm:$0xff] }
 0x4db   :  { %2887 = vperm.xlu1 %4752, %v6908_v26  }
 0x4dc   :  { %v7004_v18 = vpop.permute.xlu1 %2529  ;;  %2895 = vperm.xlu0 %4753, %v6915_v38  }
 0x4dd   :  { %9076 = vst [vmem:[#allocation160_spill] sm:$0xff] %v7004_v18  ;;  %v7007_v20 = vpop.permute.xlu0 %2527 }
 0x4de   :  { %9077 = vst [vmem:[#allocation127_spill] sm:$0xff] %v7007_v20 }
 0x4df   :  { %2891 = vperm.xlu1 %4752, %v9054_v60   ;;  %v4954_v60 = vld [vmem:[%s8561_s1 + $0x58] sm:$0xff] }
 0x4e0   :  { %v7010_v23 = vpop.permute.xlu1 %2533  ;;  %2903 = vperm.xlu0 %4753, %v6922_v15  }
 0x4e1   :  { %9078 = vst [vmem:[#allocation163_spill] sm:$0xff] %v7010_v23  ;;  %v7013_v61 = vpop.permute.xlu0 %2531 }
 0x4e2   :  { %9079 = vst [vmem:[#allocation142_spill] sm:$0xff] %v7013_v61 }
 0x4e3   :  { %2899 = vperm.xlu1 %4752, %v9055_v59   ;;  %v4955_v59 = vld [vmem:[%s8561_s1 + $0x68] sm:$0xff] }
 0x4e4   :  { %v7016_v63 = vpop.permute.xlu1 %2537  ;;  %2911 = vperm.xlu0 %4753, %v6929_v34  }
 0x4e5   :  { %9080 = vst [vmem:[#allocation141_spill] sm:$0xff] %v7016_v63  ;;  %v7019_v52 = vpop.permute.xlu0 %2535 }
 0x4e6   :  { %9081 = vst [vmem:[#allocation162_spill] sm:$0xff] %v7019_v52 }
 0x4e7   :  { %2907 = vperm.xlu1 %4752, %v9056_v56   ;;  %v4956_v56 = vld [vmem:[%s8561_s1 + $0x78] sm:$0xff] }
 0x4e8   :  { %v7022_v58 = vpop.permute.xlu1 %2541  ;;  %2919 = vperm.xlu0 %4753, %v6936_v36  }
 0x4e9   :  { %9082 = vst [vmem:[#allocation126_spill] sm:$0xff] %v7022_v58  ;;  %v7025_v43 = vpop.permute.xlu0 %2539 }
 0x4ea   :  { %9083 = vst [vmem:[#allocation165_spill] sm:$0xff] %v7025_v43 }
 0x4eb   :  { %2915 = vperm.xlu1 %4752, %v9057_v9  }
 0x4ec   :  { %v7028_v29 = vpop.permute.xlu1 %2545  ;;  %2927 = vperm.xlu0 %4753, %v6943_v55  }
 0x4ed   :  { %9084 = vst [vmem:[#allocation144_spill] sm:$0xff] %v7028_v29  ;;  %v7031_v25 = vpop.permute.xlu0 %2543 }
 0x4ee   :  { %9085 = vst [vmem:[#allocation143_spill] sm:$0xff] %v7031_v25 }
 0x4ef   :  { %2923 = vperm.xlu1 %4752, %v9058_v49  }
 0x4f0   :  { %v7034_v41 = vpop.permute.xlu1 %2549  ;;  %2935 = vperm.xlu0 %4753, %v6954_v31  }
 0x4f1   :  { %9086 = vst [vmem:[#allocation164_spill] sm:$0xff] %v7034_v41  ;;  %v7037_v5 = vpop.permute.xlu0 %2547 }
 0x4f2   :  { %9087 = vst [vmem:[#allocation129_spill] sm:$0xff] %v7037_v5 }
 0x4f3   :  { %2931 = vperm.xlu1 %4752, %v9059_v35  }
 0x4f4   :  { %v7040_v33 = vpop.permute.xlu1 %2553  ;;  %2943 = vperm.xlu0 %4753, %v6965_v14  }
 0x4f5   :  { %9088 = vst [vmem:[#allocation167_spill] sm:$0xff] %v7040_v33  ;;  %v7043_v42 = vpop.permute.xlu0 %2551 }
 0x4f6   :  { %9089 = vst [vmem:[#allocation146_spill] sm:$0xff] %v7043_v42 }
 0x4f7   :  { %2939 = vperm.xlu1 %4752, %v9062_v6  }
 0x4f8   :  { %v7046_v3 = vpop.permute.xlu1 %2557  ;;  %2955 = vperm.xlu0 %4753, %v9068_v27  }
 0x4f9   :  { %9090 = vst [vmem:[#allocation145_spill] sm:$0xff] %v7046_v3  ;;  %v7049_v2 = vpop.permute.xlu0 %2555 }
 0x4fa   :  { %9091 = vst [vmem:[#allocation166_spill] sm:$0xff] %v7049_v2 }
 0x4fb   :  { %2947 = vperm.xlu1 %4752, %v9065_v12   ;;  %v4958_v12 = vld [vmem:[%s8561_s1 + $0x98] sm:$0xff] }
 0x4fc   :  { %v7052_v16 = vpop.permute.xlu1 %2561  ;;  %2959 = vperm.xlu0 %4753, %v6987_v54  }
 0x4fd   :  { %9092 = vst [vmem:[#allocation128_spill] sm:$0xff] %v7052_v16  ;;  %v7055_v44 = vpop.permute.xlu0 %2559 }
 0x4fe   :  { %9093 = vst [vmem:[#allocation169_spill] sm:$0xff] %v7055_v44 }
 0x4ff   :  { %4754 = vset.pattern.permute.xlu1 %v8717_v40 }
 0x500   :  { %3257 = vperm.xlu1 %4754, %v6901_v13   ;;  %4757 = vset.pattern.permute.xlu0 %v8717_v40  ;;  %v7060_v8 = vpop.permute.xlu1 %2565  ;;  %v4953_v13 = vld [vmem:[%s8561_s1 + $0x48] sm:$0xff] }
 0x501   :  { %9094 = vst [vmem:[#allocation148_spill] sm:$0xff] %v7060_v8  ;;  %3253 = vperm.xlu0 %4757, %v4949_v11   ;;  %v7065_v17 = vpop.permute.xlu0 %2563 }
 0x502   :  { %9095 = vst [vmem:[#allocation147_spill] sm:$0xff] %v7065_v17 }
 0x504   :  { %3261 = vperm.xlu1 %4754, %v6908_v26   ;;  %v7071_v39 = vpop.permute.xlu1 %2569 }
 0x505   :  { %3265 = vperm.xlu0 %4757, %v4950_v21   ;;  %9096 = vst [vmem:[#allocation168_spill] sm:$0xff] %v7071_v39  ;;  %v7073_v47 = vpop.permute.xlu0 %2567  ;;  %v7193_v39 = vld [vmem:[#allocation2 + $0x18] sm:$0xff] }
 0x506   :  { %9097 = vst [vmem:[#allocation131_spill] sm:$0xff] %v7073_v47  ;;  %v7190_v47 = vld [vmem:[#allocation2 + $0x10] sm:$0xff] }
 0x508   :  { %3269 = vperm.xlu1 %4754, %v6915_v38   ;;  %v7080_v50 = vpop.permute.xlu1 %2573 }
 0x509   :  { %3273 = vperm.xlu0 %4757, %v4951_v37   ;;  %9098 = vst [vmem:[#allocation171_spill] sm:$0xff] %v7080_v50  ;;  %v7085_v19 = vpop.permute.xlu0 %2571 }
 0x50a   :  { %9099 = vst [vmem:[#allocation150_spill] sm:$0xff] %v7085_v19  ;;  %v7185_v19 = vld [vmem:[#allocation2 + $0x8] sm:$0xff] }
 0x50c   :  { %3277 = vperm.xlu1 %4754, %v6922_v15   ;;  %v7091_v30 = vpop.permute.xlu1 %2577 }
 0x50d   :  { %3281 = vperm.xlu0 %4757, %v4952_v28   ;;  %9100 = vst [vmem:[#allocation149_spill] sm:$0xff] %v7091_v30  ;;  %v7093_v26 = vpop.permute.xlu0 %2575  ;;  %v7182_v30 = vld [vmem:[#allocation2] sm:$0xff] }
 0x50e   :  { %9101 = vst [vmem:[#allocation170_spill] sm:$0xff] %v7093_v26 }
 0x510   :  { %3285 = vperm.xlu1 %4754, %v6929_v34   ;;  %v7100_v38 = vpop.permute.xlu1 %2581 }
 0x511   :  { %3289 = vperm.xlu0 %4757, %v4953_v13   ;;  %9102 = vst [vmem:[#allocation130_spill] sm:$0xff] %v7100_v38  ;;  %v7105_v15 = vpop.permute.xlu0 %2579 }
 0x512   :  { %9103 = vst [vmem:[#allocation152_spill] sm:$0xff] %v7105_v15 }
 0x514   :  { %3293 = vperm.xlu1 %4754, %v6936_v36   ;;  %v7111_v34 = vpop.permute.xlu1 %2585  ;;  %v4957_v36 = vld [vmem:[%s8561_s1 + $0x88] sm:$0xff] }
 0x515   :  { %3297 = vperm.xlu0 %4757, %v4954_v60   ;;  %9104 = vst [vmem:[#allocation151_spill] sm:$0xff] %v7111_v34  ;;  %v7113_v9 = vpop.permute.xlu0 %2583 }
 0x516   :  { %9105 = vst [vmem:[#allocation172_spill] sm:$0xff] %v7113_v9 }
 0x518   :  { %3301 = vperm.xlu1 %4754, %v6943_v55   ;;  %v7120_v49 = vpop.permute.xlu1 %2589 }
 0x519   :  { %3305 = vperm.xlu0 %4757, %v4955_v59   ;;  %9106 = vst [vmem:[#allocation133_spill] sm:$0xff] %v7120_v49  ;;  %v7124_v55 = vpop.permute.xlu0 %2587 }
 0x51a   :  { %9107 = vst [vmem:[#allocation154_spill] sm:$0xff] %v7124_v55 }
 0x51c   :  { %3309 = vperm.xlu1 %4754, %v6954_v31   ;;  %v9108_v31 = vmov 0  }
 0x51d   :  { %3313 = vperm.xlu0 %4757, %v4956_v56  }
 0x520   :  { %3317 = vperm.xlu1 %4754, %v6965_v14  }
 0x521   :  { %3321 = vperm.xlu0 %4757, %v4957_v36  }
 0x524   :  { %4755 = vset.pattern.permute.xlu1 %v5103_v62 }
 0x525   :  { %2951 = vperm.xlu1 %4755, %v6976_v51   ;;  %3333 = vperm.xlu0 %4757, %v6987_v54  }
 0x529   :  { %4756 = vset.pattern.permute.xlu1 %v8717_v40  ;;  %v7127_v35 = vpop.permute.xlu1 %2707  ;;  %4759 = vset.pattern.permute.xlu0 %v9108_v31 }
 0x52a   :  { %3325 = vperm.xlu1 %4756, %v6976_v51   ;;  %484 = vperm.xlu0 %4759, %v4949_v11   ;;  %v7131_v6 = vpop.permute.xlu0 %2703  ;;  %v4959_v51 = vld [vmem:[%s8561_s1 + $0xa8] sm:$0xff] }
 0x52d   :  { %v7133_v14 = vpop.permute.xlu1 %2711 }
 0x52e   :  { %3329 = vperm.xlu1 %4756, %v4958_v12   ;;  %499 = vperm.xlu0 %4759, %v4950_v21   ;;  %v7138_v27 = vpop.permute.xlu0 %2715  ;;  %v9109_v21 = vmov 8  }
 0x531   :  { %v7140_v54 = vpop.permute.xlu1 %2719 }
 0x532   :  { %4758 = vset.pattern.permute.xlu1 %v5103_v62  ;;  %509 = vperm.xlu0 %4759, %v4951_v37   ;;  %v7143_v57 = vpop.permute.xlu0 %2723 }
 0x533   :  { %2963 = vperm.xlu1 %4758, %v4959_v51  }
 0x535   :  { %v7148_v11 = vpop.permute.xlu1 %2727 }
 0x536   :  { %519 = vperm.xlu0 %4759, %v4952_v28   ;;  %v7150_v40 = vpop.permute.xlu0 %2731 }
 0x537   :  { %4760 = vset.pattern.permute.xlu1 %v9109_v21 }
 0x538   :  { %3337 = vperm.xlu1 %4760, %v4959_v51  }
 0x539   :  { %v7153_v55 = vpop.permute.xlu1 %2735 }
 0x53a   :  { %9110 = vst [vmem:[#allocation153_spill] sm:$0xff] %v7153_v55  ;;  %529 = vperm.xlu0 %4759, %v4953_v13   ;;  %v7155_v62 = vpop.permute.xlu0 %2739 }
 0x53b   :  { %9111 = vst [vmem:[#allocation173_spill] sm:$0xff] %v7155_v62 }
 0x53c   :  { %4871 = vset.pattern.permute.xlu1 %v9108_v31 }
 0x53d   :  { %v7158_v37 = vpop.permute.xlu1 %2743 }
 0x53e   :  { %9112 = vst [vmem:[#allocation132_spill] sm:$0xff] %v7158_v37  ;;  %539 = vperm.xlu0 %4759, %v4954_v60   ;;  %v7160_v49 = vpop.permute.xlu0 %2747  ;;  %v7567_v37 = vld [vmem:[#allocation2 + $0x128] sm:$0xff] }
 0x53f   :  { %9113 = vst [vmem:[#allocation175_spill] sm:$0xff] %v7160_v49  ;;  %v7541_v49 = vld [vmem:[#allocation2 + $0x110] sm:$0xff]  ;;  %9160 = vst [vmem:[#allocation201_spill] sm:$0xff] %v7567_v37 }
 0x540   :  { %9159 = vst [vmem:[#allocation200_spill] sm:$0xff] %v7541_v49 }
 0x541   :  { %v7162_v9 = vpop.permute.xlu1 %2751 }
 0x542   :  { %9114 = vst [vmem:[#allocation156_spill] sm:$0xff] %v7162_v9  ;;  %549 = vperm.xlu0 %4759, %v4955_v59   ;;  %v7164_v28 = vpop.permute.xlu0 %2755 }
 0x543   :  { %9115 = vst [vmem:[#allocation155_spill] sm:$0xff] %v7164_v28  ;;  %v7449_v28 = vld [vmem:[#allocation2 + $0xd0] sm:$0xff] }
 0x544   :  { %9150 = vst [vmem:[#allocation191_spill] sm:$0xff] %v7449_v28 }
 0x545   :  { %v7166_v34 = vpop.permute.xlu1 %2759 }
 0x546   :  { %9116 = vst [vmem:[#allocation174_spill] sm:$0xff] %v7166_v34  ;;  %559 = vperm.xlu0 %4759, %v4956_v56   ;;  %v7168_v21 = vpop.permute.xlu0 %2763 }
 0x547   :  { %9117 = vst [vmem:[#allocation134_spill] sm:$0xff] %v7168_v21 }
 0x549   :  { %v7170_v13 = vpop.permute.xlu1 %2767 }
 0x54a   :  { %9118 = vst [vmem:[#allocation177_spill] sm:$0xff] %v7170_v13  ;;  %569 = vperm.xlu0 %4759, %v4957_v36   ;;  %v7172_v15 = vpop.permute.xlu0 %2771 }
 0x54b   :  { %9119 = vst [vmem:[#allocation158_spill] sm:$0xff] %v7172_v15 }
 0x54d   :  { %v7174_v31 = vpop.permute.xlu1 %2775 }
 0x54e   :  { %9120 = vst [vmem:[#allocation157_spill] sm:$0xff] %v7174_v31  ;;  %579 = vperm.xlu0 %4759, %v4958_v12   ;;  %v7176_v60 = vpop.permute.xlu0 %2779 }
 0x54f   :  { %9121 = vst [vmem:[#allocation176_spill] sm:$0xff] %v7176_v60 }
 0x551   :  { %v7178_v38 = vpop.permute.xlu1 %2783 }
 0x552   :  { %9122 = vst [vmem:[#allocation24_spill] sm:$0xff] %v7178_v38  ;;  %589 = vperm.xlu0 %4759, %v4959_v51   ;;  %v7180_v59 = vpop.permute.xlu0 %2787  ;;  %v7329_v38 = vld [vmem:[#allocation2 + $0x70] sm:$0xff] }
 0x553   :  { %9123 = vst [vmem:[#allocation26_spill] sm:$0xff] %v7180_v59  ;;  %9130 = vst [vmem:[#allocation30_spill] sm:$0xff] %v7329_v38 }
 0x556   :  { %v2880_v26 = vpop.permute.xlu1 %2879 }
 0x557   :  { %v2966_v56 = vmul.f32 %v7182_v30, %v2880_v26  ;;  %v2967_v36 = vmul.f32 %v7185_v19, %v2880_v26  ;;  %v2884_v50 = vpop.permute.xlu0 %2883 }
 0x558   :  { %v2968_v51 = vmul.f32 %v7190_v47, %v2884_v50  ;;  %v2969_v17 = vmul.f32 %v7193_v39, %v2884_v50 }
 0x559   :  { %3054 = vrot.lane.b32.xlu1 %v2966_v56, %s5095_s16  ;;  %3056 = vrot.lane.b32.xlu0 %v2967_v36, %s5095_s16 }
 0x55a   :  { %v2888_v12 = vpop.permute.xlu1 %2887 }
 0x55b   :  { %v7196_v8 = vpop.permute.xlu0 %2895  ;;  %v2970_v7 = vmul.f32 %v7238_v4, %v2888_v12 }
 0x55d   :  { %3060 = vrot.lane.b32.xlu0 %v2969_v17, %s5095_s16  ;;  %3058 = vrot.lane.b32.xlu1 %v2968_v51, %s5095_s16 }
 0x55e   :  { %v2892_v26 = vpop.permute.xlu1 %2891 }
 0x55f   :  { %v7200_v44 = vpop.permute.xlu0 %2903  ;;  %v2973_v53 = vmul.f32 %v7254_v10, %v2892_v26 }
 0x562   :  { %v7202_v56 = vpop.permute.xlu1 %2899 }
 0x563   :  { %v7204_v36 = vpop.permute.xlu0 %2911 }
 0x566   :  { %v7206_v16 = vpop.permute.xlu1 %2907 }
 0x567   :  { %v7208_v2 = vpop.permute.xlu0 %2919 }
 0x56a   :  { %v7210_v3 = vpop.permute.xlu1 %2915 }
 0x56b   :  { %v7212_v50 = vpop.permute.xlu0 %2927 }
 0x56e   :  { %v7214_v42 = vpop.permute.xlu1 %2923 }
 0x56f   :  { %v7216_v17 = vpop.permute.xlu0 %2935 }
 0x572   :  { %v7218_v51 = vpop.permute.xlu1 %2931 }
 0x573   :  { %v7220_v33 = vpop.permute.xlu0 %2943  ;;  %v2992_v9 = vmul.f32 %v7449_v28, %v7218_v51 }
 0x576   :  { %v7222_v5 = vpop.permute.xlu1 %2939 }
 0x577   :  { %v7224_v41 = vpop.permute.xlu0 %2955 }
 0x57a   :  { %v7228_v29 = vpop.permute.xlu1 %2947 }
 0x57b   :  { %v7226_v25 = vpop.permute.xlu0 %2959 }
 0x57f   :  { %v3258_v63 = vpop.permute.xlu1 %3257 }
 0x580   :  { %v3254_v43 = vpop.permute.xlu0 %3253  ;;  %v3342_v23 = vmul.f32 %v7190_v47, %v3258_v63  ;;  %v3343_v20 = vmul.f32 %v7193_v39, %v3258_v63 }
 0x581   :  { %v3340_v58 = vmul.f32 %v7182_v30, %v3254_v43  ;;  %v3341_v52 = vmul.f32 %v7185_v19, %v3254_v43  ;;  %v7241_v43 = vld [vmem:[#allocation2 + $0x28] sm:$0xff] }
 0x583   :  { %3430 = vrot.lane.b32.xlu0 %v3341_v52, %s5097_s17  ;;  %3428 = vrot.lane.b32.xlu1 %v3340_v58, %s5097_s17  ;;  %v2971_v52 = vmul.f32 %v7241_v43, %v2888_v12  ;;  %v9124_v12 = vld [vmem:[#allocation20_spill] sm:$0xff]  ;;  %v3262_v24 = vpop.permute.xlu1 %3261 }
 0x584   :  { %v3266_v61 = vpop.permute.xlu0 %3265  ;;  %v9126_v22 = vsub.s32 0, %v9124_v12 }
 0x587   :  { %3434 = vrot.lane.b32.xlu0 %v3343_v20, %s5097_s17  ;;  %3432 = vrot.lane.b32.xlu1 %v3342_v23, %s5097_s17  ;;  %v4630_v20 = vld [vmem:[%s8564_s4 + $0x1] ss:$2 sm:$0x3]  ;;  %v7251_v23 = vld [vmem:[#allocation2 + $0x30] sm:$0xff]  ;;  %s5105_s4 = smov 3   ;;  %v3270_v1 = vpop.permute.xlu1 %3269 }
 0x588   :  { %v3274_v18 = vpop.permute.xlu0 %3273  ;;  %v2972_v63 = vmul.f32 %v7251_v23, %v2892_v26  ;;  %v3630_v48 = vrot.slane %v4630_v20, %v9126_v22  ;;  %v3344_v26 = vmul.f32 %v7238_v4, %v3262_v24  ;;  %v3346_v22 = vmul.f32 %v7251_v23, %v3266_v61 }
 0x58b   :  { %3064 = vrot.lane.b32.xlu0 %v2971_v52, %s5095_s16  ;;  %3062 = vrot.lane.b32.xlu1 %v2970_v7, %s5095_s16  ;;  %v9125_v7 = vsub.s32 1, %v9124_v12  ;;  %v7279_v12 = vld [vmem:[#allocation2 + $0x40] sm:$0xff]  ;;  %v3278_v59 = vpop.permute.xlu1 %3277 }
 0x58c   :  { %v7246_v58 = vpop.permute.xlu0 %3281 }
 0x58d   :  { %v3634_v52 = vrot.slane %v4630_v20, %v9125_v7  ;;  %v3347_v20 = vmul.f32 %v7254_v10, %v3266_v61  ;;  %v7283_v7 = vld [vmem:[#allocation2 + $0x48] sm:$0xff] }
 0x58f   :  { %3068 = vrot.lane.b32.xlu0 %v2973_v53, %s5095_s16  ;;  %3066 = vrot.lane.b32.xlu1 %v2972_v63, %s5095_s16  ;;  %v3345_v53 = vmul.f32 %v7241_v43, %v3262_v24  ;;  %v2974_v24 = vmul.f32 %v7279_v12, %v7196_v8 }
 0x590   :  { %v7263_v46 = vpop.permute.xlu0 %3289 }
 0x593   :  { %3637 = vrot.lane.b32.xlu0 %v3634_v52, %s5105_s4  ;;  %3635 = vrot.lane.b32.xlu1 %v3630_v48, %s5105_s4  ;;  %v2975_v52 = vmul.f32 %v7283_v7, %v7196_v8 }
 0x594   :  { %v7265_v45 = vpop.permute.xlu0 %3297 }
 0x597   :  { %3438 = vrot.lane.b32.xlu0 %v3345_v53, %s5097_s17  ;;  %3436 = vrot.lane.b32.xlu1 %v3344_v26, %s5097_s17  ;;  %v7291_v26 = vld [vmem:[#allocation2 + $0x50] sm:$0xff] }
 0x598   :  { %v7271_v63 = vpop.permute.xlu0 %3305  ;;  %v2976_v53 = vmul.f32 %v7291_v26, %v7202_v56  ;;  %v3350_v0 = vmul.f32 %v7291_v26, %v3274_v18 }
 0x59b   :  { %3442 = vrot.lane.b32.xlu0 %v3347_v20, %s5097_s17  ;;  %3440 = vrot.lane.b32.xlu1 %v3346_v22, %s5097_s17  ;;  %v7295_v22 = vld [vmem:[#allocation2 + $0x58] sm:$0xff] }
 0x59c   :  { %v7277_v48 = vpop.permute.xlu0 %3313  ;;  %v2977_v20 = vmul.f32 %v7295_v22, %v7202_v56  ;;  %v3351_v32 = vmul.f32 %v7295_v22, %v3274_v18  ;;  %v7325_v18 = vld [vmem:[#allocation2 + $0x78] sm:$0xff] }
 0x59d   :  { %9129 = vst [vmem:[#allocation29_spill] sm:$0xff] %v7325_v18  ;;  %v3355_v60 = vmul.f32 %v7325_v18, %v7246_v58 }
 0x59f   :  { %3072 = vrot.lane.b32.xlu0 %v2975_v52, %s5095_s16  ;;  %3070 = vrot.lane.b32.xlu1 %v2974_v24, %s5095_s16  ;;  %v3348_v24 = vmul.f32 %v7279_v12, %v3270_v1  ;;  %v3349_v52 = vmul.f32 %v7283_v7, %v3270_v1 }
 0x5a0   :  { %v7289_v61 = vpop.permute.xlu0 %3321 }
 0x5a3   :  { %3076 = vrot.lane.b32.xlu0 %v2977_v20, %s5095_s16  ;;  %3074 = vrot.lane.b32.xlu1 %v2976_v53, %s5095_s16  ;;  %v7313_v53 = vld [vmem:[#allocation2 + $0x60] sm:$0xff]  ;;  %v7317_v20 = vld [vmem:[#allocation2 + $0x68] sm:$0xff] }
 0x5a4   :  { %v7301_v8 = vpop.permute.xlu0 %3333  ;;  %v2978_v1 = vmul.f32 %v7313_v53, %v7200_v44 }
 0x5a7   :  { %3446 = vrot.lane.b32.xlu0 %v3349_v52, %s5097_s17  ;;  %3444 = vrot.lane.b32.xlu1 %v3348_v24, %s5097_s17  ;;  %v2979_v24 = vmul.f32 %v7317_v20, %v7200_v44  ;;  %v3353_v44 = vmul.f32 %v7317_v20, %v3278_v59 }
 0x5a9   :  { %v7309_v56 = vpop.permute.xlu0 %484 }
 0x5aa   :  { %9127 = vst [vmem:[#allocation27_spill] sm:$0xff] %v7309_v56  ;;  %v2980_v56 = vmul.f32 %v7329_v38, %v7206_v16 }
 0x5ab   :  { %3450 = vrot.lane.b32.xlu0 %v3351_v32, %s5097_s17  ;;  %3448 = vrot.lane.b32.xlu1 %v3350_v0, %s5097_s17  ;;  %v2981_v32 = vmul.f32 %v7325_v18, %v7206_v16  ;;  %v3286_v0 = vpop.permute.xlu1 %3285  ;;  %v3354_v16 = vmul.f32 %v7329_v38, %v7246_v58  ;;  %v7361_v58 = vld [vmem:[#allocation2 + $0x98] sm:$0xff]  ;;  %v2791_v18 = vmul.f32 %v7185_v19, %v7131_v6 }
 0x5ac   :  { %9135 = vst [vmem:[#allocation136_spill] sm:$0xff] %v7361_v58 }
 0x5ad   :  { %v7321_v52 = vpop.permute.xlu0 %499 }
 0x5ae   :  { %9128 = vst [vmem:[#allocation28_spill] sm:$0xff] %v7321_v52 }
 0x5af   :  { %3080 = vrot.lane.b32.xlu0 %v2979_v24, %s5095_s16  ;;  %3078 = vrot.lane.b32.xlu1 %v2978_v1, %s5095_s16  ;;  %v3352_v1 = vmul.f32 %v7313_v53, %v3278_v59  ;;  %v3294_v52 = vpop.permute.xlu1 %3293 }
 0x5b1   :  { %v7336_v24 = vpop.permute.xlu0 %509 }
 0x5b2   :  { %9131 = vst [vmem:[#allocation31_spill] sm:$0xff] %v7336_v24 }
 0x5b3   :  { %3084 = vrot.lane.b32.xlu0 %v2981_v32, %s5095_s16  ;;  %3082 = vrot.lane.b32.xlu1 %v2980_v56, %s5095_s16  ;;  %v7349_v56 = vld [vmem:[#allocation2 + $0x88] sm:$0xff] }
 0x5b4   :  { %9133 = vst [vmem:[#allocation33_spill] sm:$0xff] %v7349_v56  ;;  %v2983_v59 = vmul.f32 %v7349_v56, %v7204_v36 }
 0x5b5   :  { %v7345_v32 = vpop.permute.xlu0 %519 }
 0x5b6   :  { %9132 = vst [vmem:[#allocation32_spill] sm:$0xff] %v7345_v32  ;;  %v7367_v32 = vld [vmem:[#allocation2 + $0x90] sm:$0xff] }
 0x5b7   :  { %3454 = vrot.lane.b32.xlu0 %v3353_v44, %s5097_s17  ;;  %3452 = vrot.lane.b32.xlu1 %v3352_v1, %s5097_s17  ;;  %v7353_v44 = vpop.permute.xlu1 %3301  ;;  %v7355_v1 = vld [vmem:[#allocation2 + $0x80] sm:$0xff]  ;;  %9137 = vst [vmem:[#allocation178_spill] sm:$0xff] %v7367_v32  ;;  %v2984_v31 = vmul.f32 %v7367_v32, %v7210_v3 }
 0x5b8   :  { %9134 = vst [vmem:[#allocation135_spill] sm:$0xff] %v7355_v1  ;;  %v2982_v24 = vmul.f32 %v7355_v1, %v7204_v36  ;;  %v3357_v36 = vmul.f32 %v7349_v56, %v3286_v0  ;;  %v7637_v56 = vld [vmem:[#allocation2 + $0x150] sm:$0xff] }
 0x5bb   :  { %3458 = vrot.lane.b32.xlu0 %v3355_v60, %s5097_s17  ;;  %3456 = vrot.lane.b32.xlu1 %v3354_v16, %s5097_s17  ;;  %v2985_v60 = vmul.f32 %v7361_v58, %v7210_v3  ;;  %v7365_v16 = vpop.permute.xlu0 %529  ;;  %v7371_v15 = vpop.permute.xlu1 %3309 }
 0x5bc   :  { %9136 = vst [vmem:[#allocation20_spill] sm:$0xff] %v7365_v16  ;;  %v3359_v16 = vmul.f32 %v7361_v58, %v7263_v46 }
 0x5bf   :  { %3088 = vrot.lane.b32.xlu0 %v2983_v59, %s5095_s16  ;;  %3086 = vrot.lane.b32.xlu1 %v2982_v24, %s5095_s16  ;;  %v3356_v24 = vmul.f32 %v7355_v1, %v3286_v0  ;;  %v7377_v59 = vpop.permute.xlu0 %539  ;;  %v7383_v3 = vpop.permute.xlu1 %3317  ;;  %v7615_v1 = vld [vmem:[#allocation2 + $0x148] sm:$0xff] }
 0x5c0   :  { %9138 = vst [vmem:[#allocation179_spill] sm:$0xff] %v7377_v59 }
 0x5c3   :  { %3092 = vrot.lane.b32.xlu0 %v2985_v60, %s5095_s16  ;;  %3090 = vrot.lane.b32.xlu1 %v2984_v31, %s5095_s16  ;;  %v3358_v60 = vmul.f32 %v7367_v32, %v7263_v46  ;;  %v7389_v31 = vld [vmem:[#allocation2 + $0xa8] sm:$0xff]  ;;  %v7399_v13 = vpop.permute.xlu1 %2951  ;;  %v7403_v46 = vld [vmem:[#allocation2 + $0xb8] sm:$0xff]  ;;  %v7589_v32 = vld [vmem:[#allocation2 + $0x130] sm:$0xff] }
 0x5c4   :  { %9139 = vst [vmem:[#allocation180_spill] sm:$0xff] %v7389_v31  ;;  %v2987_v0 = vmul.f32 %v7389_v31, %v7208_v2  ;;  %9142 = vst [vmem:[#allocation183_spill] sm:$0xff] %v7403_v46  ;;  %v3363_v34 = vmul.f32 %v7403_v46, %v7265_v45  ;;  %v3004_v58 = vmul.f32 %v7589_v32, %v7224_v41 }
 0x5c5   :  { %9163 = vst [vmem:[#allocation204_spill] sm:$0xff] %v7589_v32 }
 0x5c7   :  { %3462 = vrot.lane.b32.xlu0 %v3357_v36, %s5097_s17  ;;  %3460 = vrot.lane.b32.xlu1 %v3356_v24, %s5097_s17  ;;  %v7393_v36 = vpop.permute.xlu0 %549  ;;  %v7395_v24 = vld [vmem:[#allocation2 + $0xa0] sm:$0xff] }
 0x5c8   :  { %9140 = vst [vmem:[#allocation181_spill] sm:$0xff] %v7393_v36  ;;  %9141 = vst [vmem:[#allocation182_spill] sm:$0xff] %v7395_v24  ;;  %v2986_v59 = vmul.f32 %v7395_v24, %v7208_v2  ;;  %v3361_v2 = vmul.f32 %v7389_v31, %v3294_v52 }
 0x5cb   :  { %3466 = vrot.lane.b32.xlu0 %v3359_v16, %s5097_s17  ;;  %3464 = vrot.lane.b32.xlu1 %v3358_v60, %s5097_s17  ;;  %v2989_v16 = vmul.f32 %v7403_v46, %v7214_v42  ;;  %v7407_v60 = vld [vmem:[#allocation2 + $0xb0] sm:$0xff]  ;;  %v7411_v21 = vpop.permute.xlu0 %559  ;;  %v7519_v46 = vld [vmem:[#allocation2 + $0x108] sm:$0xff] }
 0x5cc   :  { %9143 = vst [vmem:[#allocation184_spill] sm:$0xff] %v7407_v60  ;;  %v2988_v36 = vmul.f32 %v7407_v60, %v7214_v42  ;;  %9144 = vst [vmem:[#allocation185_spill] sm:$0xff] %v7411_v21 }
 0x5cd   :  { %9156 = vst [vmem:[#allocation197_spill] sm:$0xff] %v7519_v46 }
 0x5cf   :  { %3096 = vrot.lane.b32.xlu0 %v2987_v0, %s5095_s16  ;;  %3094 = vrot.lane.b32.xlu1 %v2986_v59, %s5095_s16  ;;  %v7416_v0 = vpop.permute.xlu1 %3325  ;;  %v3360_v59 = vmul.f32 %v7395_v24, %v3294_v52  ;;  %v7423_v42 = vpop.permute.xlu0 %569  ;;  %v3000_v24 = vmul.f32 %v7541_v49, %v7228_v29 }
 0x5d0   :  { %9145 = vst [vmem:[#allocation186_spill] sm:$0xff] %v7423_v42 }
 0x5d3   :  { %3100 = vrot.lane.b32.xlu0 %v2989_v16, %s5095_s16  ;;  %3098 = vrot.lane.b32.xlu1 %v2988_v36, %s5095_s16  ;;  %v3362_v16 = vmul.f32 %v7407_v60, %v7265_v45  ;;  %v7427_v21 = vpop.permute.xlu1 %3329  ;;  %v7431_v36 = vld [vmem:[#allocation2 + $0xc8] sm:$0xff]  ;;  %v7439_v42 = vpop.permute.xlu0 %579  ;;  %v7443_v45 = vld [vmem:[#allocation2 + $0xd8] sm:$0xff] }
 0x5d4   :  { %9146 = vst [vmem:[#allocation187_spill] sm:$0xff] %v7431_v36  ;;  %v2991_v52 = vmul.f32 %v7431_v36, %v7212_v50  ;;  %9148 = vst [vmem:[#allocation189_spill] sm:$0xff] %v7439_v42 }
 0x5d5   :  { %9149 = vst [vmem:[#allocation190_spill] sm:$0xff] %v7443_v45 }
 0x5d7   :  { %3470 = vrot.lane.b32.xlu0 %v3361_v2, %s5097_s17  ;;  %3468 = vrot.lane.b32.xlu1 %v3360_v59, %s5097_s17  ;;  %v7435_v2 = vld [vmem:[#allocation2 + $0xc0] sm:$0xff] }
 0x5d8   :  { %9147 = vst [vmem:[#allocation188_spill] sm:$0xff] %v7435_v2  ;;  %v2990_v59 = vmul.f32 %v7435_v2, %v7212_v50  ;;  %v3365_v50 = vmul.f32 %v7431_v36, %v7353_v44 }
 0x5db   :  { %3474 = vrot.lane.b32.xlu0 %v3363_v34, %s5097_s17  ;;  %3472 = vrot.lane.b32.xlu1 %v3362_v16, %s5097_s17  ;;  %v2993_v34 = vmul.f32 %v7443_v45, %v7218_v51  ;;  %v7447_v16 = vpop.permute.xlu1 %2963  ;;  %v3367_v51 = vmul.f32 %v7443_v45, %v7271_v63  ;;  %v7493_v45 = vld [vmem:[#allocation2 + $0xf0] sm:$0xff] }
 0x5dc   :  { %9155 = vst [vmem:[#allocation196_spill] sm:$0xff] %v7493_v45  ;;  %v3008_v55 = vmul.f32 %v7637_v56, %v7447_v16 }
 0x5df   :  { %3104 = vrot.lane.b32.xlu0 %v2991_v52, %s5095_s16  ;;  %3102 = vrot.lane.b32.xlu1 %v2990_v59, %s5095_s16  ;;  %v7457_v52 = vpop.permute.xlu0 %589  ;;  %v3364_v59 = vmul.f32 %v7435_v2, %v7353_v44  ;;  %v7461_v42 = vpop.permute.xlu1 %3337  ;;  %v7475_v44 = vld [vmem:[#allocation2 + $0xe8] sm:$0xff]  ;;  %v2996_v2 = vmul.f32 %v7493_v45, %v7222_v5 }
 0x5e0   :  { %9151 = vst [vmem:[#allocation192_spill] sm:$0xff] %v7457_v52  ;;  %9152 = vst [vmem:[#allocation193_spill] sm:$0xff] %v7475_v44 }
 0x5e3   :  { %3108 = vrot.lane.b32.xlu0 %v2993_v34, %s5095_s16  ;;  %3106 = vrot.lane.b32.xlu1 %v2992_v9, %s5095_s16  ;;  %v3366_v9 = vmul.f32 %v7449_v28, %v7271_v63  ;;  %v7469_v34 = vpop.permute.xlu1 %3054  ;;  %v7471_v36 = vpop.permute.xlu0 %3056  ;;  %v7485_v63 = vld [vmem:[#allocation2 + $0xf8] sm:$0xff] }
 0x5e4   :  { %9154 = vst [vmem:[#allocation195_spill] sm:$0xff] %v7485_v63 }
 0x5e7   :  { %3478 = vrot.lane.b32.xlu0 %v3365_v50, %s5097_s17  ;;  %3476 = vrot.lane.b32.xlu1 %v3364_v59, %s5097_s17  ;;  %v2995_v50 = vmul.f32 %v7475_v44, %v7216_v17  ;;  %v7479_v59 = vld [vmem:[#allocation2 + $0xe0] sm:$0xff]  ;;  %v7491_v28 = vpop.permute.xlu0 %3060 }
 0x5e8   :  { %9153 = vst [vmem:[#allocation194_spill] sm:$0xff] %v7479_v59  ;;  %v2994_v52 = vmul.f32 %v7479_v59, %v7216_v17  ;;  %v3369_v17 = vmul.f32 %v7475_v44, %v7371_v15  ;;  %v3368_v60 = vmul.f32 %v7479_v59, %v7371_v15  ;;  %v3370_v44 = vmul.f32 %v7493_v45, %v7277_v48 }
 0x5e9   :  { %v2999_v15 = vmul.f32 %v7519_v46, %v7220_v33 }
 0x5eb   :  { %3482 = vrot.lane.b32.xlu0 %v3367_v51, %s5097_s17  ;;  %3480 = vrot.lane.b32.xlu1 %v3366_v9, %s5097_s17  ;;  %v2997_v51 = vmul.f32 %v7485_v63, %v7222_v5  ;;  %v7489_v9 = vpop.permute.xlu1 %3058  ;;  %v3371_v5 = vmul.f32 %v7485_v63, %v7277_v48  ;;  %v7527_v63 = vld [vmem:[#allocation2 + $0x100] sm:$0xff]  ;;  %v7533_v48 = vld [vmem:[#allocation2 + $0x118] sm:$0xff] }
 0x5ec   :  { %9157 = vst [vmem:[#allocation198_spill] sm:$0xff] %v7527_v63  ;;  %v2998_v59 = vmul.f32 %v7527_v63, %v7220_v33  ;;  %9158 = vst [vmem:[#allocation199_spill] sm:$0xff] %v7533_v48  ;;  %v3373_v33 = vmul.f32 %v7519_v46, %v7383_v3  ;;  %v3372_v31 = vmul.f32 %v7527_v63, %v7383_v3 }
 0x5ed   :  { %v3374_v46 = vmul.f32 %v7541_v49, %v7289_v61  ;;  %v3003_v3 = vmul.f32 %v7567_v37, %v7399_v13 }
 0x5ef   :  { %3112 = vrot.lane.b32.xlu0 %v2995_v50, %s5095_s16  ;;  %3110 = vrot.lane.b32.xlu1 %v2994_v52, %s5095_s16 }
 0x5f3   :  { %3116 = vrot.lane.b32.xlu0 %v2997_v51, %s5095_s16  ;;  %3114 = vrot.lane.b32.xlu1 %v2996_v2, %s5095_s16 }
 0x5f5   :  { %v7501_v52 = vpop.permute.xlu1 %3428  ;;  %v7503_v50 = vpop.permute.xlu0 %3430 }
 0x5f6   :  { %v3516_v19 = vsel %vm1319_vm5, %v7501_v52, %v7503_v50  ;;  %v2795_v52 = vmul.f32 %v7241_v43, %v7133_v14 }
 0x5f7   :  { %3486 = vrot.lane.b32.xlu0 %v3369_v17, %s5097_s17  ;;  %3484 = vrot.lane.b32.xlu1 %v3368_v60, %s5097_s17 }
 0x5f9   :  { %v7511_v51 = vpop.permute.xlu1 %3432  ;;  %v7513_v2 = vpop.permute.xlu0 %3434 }
 0x5fb   :  { %3490 = vrot.lane.b32.xlu0 %v3371_v5, %s5097_s17  ;;  %3488 = vrot.lane.b32.xlu1 %v3370_v44, %s5097_s17  ;;  %v3001_v44 = vmul.f32 %v7533_v48, %v7228_v29  ;;  %v3375_v29 = vmul.f32 %v7533_v48, %v7289_v61  ;;  %v7575_v48 = vld [vmem:[#allocation2 + $0x120] sm:$0xff]  ;;  %v7581_v61 = vld [vmem:[#allocation2 + $0x138] sm:$0xff] }
 0x5fc   :  { %9161 = vst [vmem:[#allocation202_spill] sm:$0xff] %v7575_v48  ;;  %v3002_v63 = vmul.f32 %v7575_v48, %v7399_v13  ;;  %9162 = vst [vmem:[#allocation203_spill] sm:$0xff] %v7581_v61  ;;  %v3377_v13 = vmul.f32 %v7567_v37, %v7416_v0  ;;  %v3376_v62 = vmul.f32 %v7575_v48, %v7416_v0 }
 0x5fd   :  { %v7523_v60 = vpop.permute.xlu1 %3062  ;;  %v7525_v17 = vpop.permute.xlu0 %3064  ;;  %v3378_v37 = vmul.f32 %v7589_v32, %v7427_v21  ;;  %v3007_v0 = vmul.f32 %v7615_v1, %v7226_v25 }
 0x5ff   :  { %3120 = vrot.lane.b32.xlu0 %v2999_v15, %s5095_s16  ;;  %3118 = vrot.lane.b32.xlu1 %v2998_v59, %s5095_s16 }
 0x601   :  { %v7537_v5 = vpop.permute.xlu1 %3066  ;;  %v7539_v45 = vpop.permute.xlu0 %3068 }
 0x603   :  { %3124 = vrot.lane.b32.xlu0 %v3001_v44, %s5095_s16  ;;  %3122 = vrot.lane.b32.xlu1 %v3000_v24, %s5095_s16 }
 0x605   :  { %v7549_v59 = vpop.permute.xlu1 %3635  ;;  %v7551_v15 = vpop.permute.xlu0 %3637 }
 0x607   :  { %3494 = vrot.lane.b32.xlu0 %v3373_v33, %s5097_s17  ;;  %3492 = vrot.lane.b32.xlu1 %v3372_v31, %s5097_s17 }
 0x609   :  { %v7559_v44 = vpop.permute.xlu1 %3436  ;;  %v7561_v24 = vpop.permute.xlu0 %3438 }
 0x60b   :  { %3498 = vrot.lane.b32.xlu0 %v3375_v29, %s5097_s17  ;;  %3496 = vrot.lane.b32.xlu1 %v3374_v46, %s5097_s17  ;;  %v3005_v46 = vmul.f32 %v7581_v61, %v7224_v41  ;;  %v3379_v41 = vmul.f32 %v7581_v61, %v7427_v21  ;;  %v7623_v61 = vld [vmem:[#allocation2 + $0x140] sm:$0xff]  ;;  %v7629_v21 = vld [vmem:[#allocation2 + $0x158] sm:$0xff] }
 0x60c   :  { %9164 = vst [vmem:[#allocation205_spill] sm:$0xff] %v7623_v61  ;;  %v3006_v48 = vmul.f32 %v7623_v61, %v7226_v25  ;;  %v3381_v25 = vmul.f32 %v7615_v1, %v7301_v8 }
 0x60d   :  { %v7571_v31 = vpop.permute.xlu1 %3440  ;;  %v7573_v33 = vpop.permute.xlu0 %3442 }
 0x60f   :  { %3128 = vrot.lane.b32.xlu0 %v3003_v3, %s5095_s16  ;;  %3126 = vrot.lane.b32.xlu1 %v3002_v63, %s5095_s16 }
 0x611   :  { %v7585_v29 = vpop.permute.xlu1 %3070  ;;  %v7587_v49 = vpop.permute.xlu0 %3072 }
 0x613   :  { %3132 = vrot.lane.b32.xlu0 %v3005_v46, %s5095_s16  ;;  %3130 = vrot.lane.b32.xlu1 %v3004_v58, %s5095_s16 }
 0x615   :  { %v7597_v63 = vpop.permute.xlu1 %3074  ;;  %v7599_v3 = vpop.permute.xlu0 %3076 }
 0x617   :  { %3502 = vrot.lane.b32.xlu0 %v3377_v13, %s5097_s17  ;;  %3500 = vrot.lane.b32.xlu1 %v3376_v62, %s5097_s17 }
 0x619   :  { %v7607_v46 = vpop.permute.xlu1 %3444  ;;  %v7609_v58 = vpop.permute.xlu0 %3446 }
 0x61b   :  { %3506 = vrot.lane.b32.xlu0 %v3379_v41, %s5097_s17  ;;  %3504 = vrot.lane.b32.xlu1 %v3378_v37, %s5097_s17  ;;  %v3009_v37 = vmul.f32 %v7629_v21, %v7447_v16  ;;  %v3142_v16 = vsel %vm944_vm4, %v7469_v34, %v7471_v36  ;;  %v3382_v34 = vmul.f32 %v7637_v56, %v7461_v42 }
 0x61d   :  { %v7619_v62 = vpop.permute.xlu1 %3448  ;;  %v7621_v13 = vpop.permute.xlu0 %3450 }
 0x61f   :  { %3136 = vrot.lane.b32.xlu0 %v3007_v0, %s5095_s16  ;;  %3134 = vrot.lane.b32.xlu1 %v3006_v48, %s5095_s16  ;;  %v3380_v0 = vmul.f32 %v7623_v61, %v7301_v8  ;;  %v3383_v8 = vmul.f32 %v7629_v21, %v7461_v42  ;;  %v2792_v42 = vmul.f32 %v7190_v47, %v7127_v35 }
 0x621   :  { %v7633_v41 = vpop.permute.xlu1 %3078  ;;  %v7635_v32 = vpop.permute.xlu0 %3080 }
 0x623   :  { %3140 = vrot.lane.b32.xlu0 %v3009_v37, %s5095_s16  ;;  %3138 = vrot.lane.b32.xlu1 %v3008_v55, %s5095_s16  ;;  %v2790_v55 = vmul.f32 %v7182_v30, %v7131_v6  ;;  %v3209_v37 = vadd.f32 %v7471_v36, %v2791_v18  ;;  %v7672_v30 = vsel %vm3639_vm6, %v7549_v59, %v7551_v15  ;;  %s5106_s16 = smov 126  }
 0x624   :  { %v3143_v18 = vsel %vm944_vm4, %v7489_v9, %v7491_v28  ;;  %v3144_v9 = vsel %vm944_vm4, %v7523_v60, %v7525_v17  ;;  %v3518_v60 = vsel %vm1319_vm5, %v7559_v44, %v7561_v24 }
 0x625   :  { %v7645_v48 = vpop.permute.xlu0 %3084  ;;  %v7649_v38 = vpop.permute.xlu1 %3082  ;;  %v3583_v36 = vadd.f32 %v7503_v50, %v3209_v37  ;;  %v3210_v43 = vadd.f32 %v3143_v18, %v2792_v42 }
 0x627   :  { %3510 = vrot.lane.b32.xlu0 %v3381_v25, %s5097_s17  ;;  %3508 = vrot.lane.b32.xlu1 %v3380_v0, %s5097_s17  ;;  %v3208_v25 = vadd.f32 %v3142_v16, %v2790_v55  ;;  %v2793_v0 = vmul.f32 %v7193_v39, %v7127_v35  ;;  %v3517_v39 = vsel %vm1319_vm5, %v7511_v51, %v7513_v2 }
 0x628   :  { %v3644_v47 = vmul.f32 %v7672_v30, %v3583_v36  ;;  %v2794_v35 = vmul.f32 %v7238_v4, %v7133_v14  ;;  %v3213_v51 = vadd.f32 %v7525_v17, %v2795_v52  ;;  %v3584_v37 = vadd.f32 %v3517_v39, %v3210_v43 }
 0x629   :  { %v7666_v61 = vpop.permute.xlu0 %3454  ;;  %v7674_v6 = vpop.permute.xlu1 %3452  ;;  %v3582_v15 = vadd.f32 %v3516_v19, %v3208_v25  ;;  %v3211_v16 = vadd.f32 %v7491_v28, %v2793_v0  ;;  %v2797_v4 = vmul.f32 %v7254_v10, %v7138_v27  ;;  %v3145_v14 = vsel %vm944_vm4, %v7537_v5, %v7539_v45 }
 0x62a   :  { %v3212_v19 = vadd.f32 %v3144_v9, %v2794_v35  ;;  %v3645_v18 = vmul.f32 %v7549_v59, %v3584_v37  ;;  %v3519_v5 = vsel %vm1319_vm5, %v7571_v31, %v7573_v33  ;;  %v2799_v36 = vmul.f32 %v7283_v7, %v7140_v54 }
 0x62b   :  { %3514 = vrot.lane.b32.xlu0 %v3383_v8, %s5097_s17  ;;  %3512 = vrot.lane.b32.xlu1 %v3382_v34, %s5097_s17  ;;  %v3643_v28 = vmul.f32 %v7549_v59, %v3582_v15  ;;  %v3585_v8 = vadd.f32 %v7513_v2, %v3211_v16  ;;  %v3587_v2 = vadd.f32 %v7561_v24, %v3213_v51 }
 0x62c   :  { %v2796_v34 = vmul.f32 %v7251_v23, %v7138_v27  ;;  %v3586_v25 = vadd.f32 %v3518_v60, %v3212_v19  ;;  %v3215_v10 = vadd.f32 %v7539_v45, %v2797_v4  ;;  %v3146_v45 = vsel %vm944_vm4, %v7585_v29, %v7587_v49 }
 0x62d   :  { %v7695_v50 = vpop.permute.xlu0 %3458  ;;  %v7700_v55 = vpop.permute.xlu1 %3456  ;;  %v3646_v44 = vmul.f32 %v7672_v30, %v3585_v8  ;;  %v3648_v27 = vmul.f32 %v7672_v30, %v3587_v2  ;;  %v2798_v31 = vmul.f32 %v7279_v12, %v7140_v54  ;;  %v3217_v39 = vadd.f32 %v7587_v49, %v2799_v36 }
 0x62e   :  { %v3214_v24 = vadd.f32 %v3145_v14, %v2796_v34  ;;  %v3589_v23 = vadd.f32 %v7573_v33, %v3215_v10  ;;  %v3647_v52 = vmul.f32 %v7549_v59, %v3586_v25  ;;  %v3520_v33 = vsel %vm1319_vm5, %v7607_v46, %v7609_v58 }
 0x62f   :  { %3733 = vrot.lane.b32.xlu0 %v3644_v47, %s5106_s16  ;;  %3731 = vrot.lane.b32.xlu1 %v3643_v28, %s5106_s16  ;;  %v3216_v9 = vadd.f32 %v3146_v45, %v2798_v31  ;;  %v2801_v29 = vmul.f32 %v7295_v22, %v7143_v57  ;;  %v3147_v47 = vsel %vm944_vm4, %v7597_v63, %v7599_v3 }
 0x630   :  { %v3588_v15 = vadd.f32 %v3519_v5, %v3214_v24  ;;  %v3650_v54 = vmul.f32 %v7672_v30, %v3589_v23  ;;  %v3591_v49 = vadd.f32 %v7609_v58, %v3217_v39  ;;  %v2800_v46 = vmul.f32 %v7291_v26, %v7143_v57 }
 0x631   :  { %v7716_v17 = vpop.permute.xlu0 %3088  ;;  %v7721_v0 = vpop.permute.xlu1 %3086  ;;  %v3590_v28 = vadd.f32 %v3520_v33, %v3216_v9  ;;  %v3219_v51 = vadd.f32 %v7599_v3, %v2801_v29  ;;  %v3521_v22 = vsel %vm1319_vm5, %v7619_v62, %v7621_v13  ;;  %v2803_v63 = vmul.f32 %v7317_v20, %v7148_v11 }
 0x632   :  { %v3649_v43 = vmul.f32 %v7549_v59, %v3588_v15  ;;  %v3218_v60 = vadd.f32 %v3147_v47, %v2800_v46  ;;  %v3652_v57 = vmul.f32 %v7672_v30, %v3591_v49  ;;  %v3148_v3 = vsel %vm944_vm4, %v7633_v41, %v7635_v32  ;;  %v9165_v41 = vld [vmem:[#allocation29_spill] sm:$0xff]  ;;  %v9169_v15 = vld [vmem:[#allocation135_spill] sm:$0xff]  ;;  %v9171_v49 = vld [vmem:[#allocation136_spill] sm:$0xff] }
 0x633   :  { %3737 = vrot.lane.b32.xlu0 %v3646_v44, %s5106_s16  ;;  %3735 = vrot.lane.b32.xlu1 %v3645_v18, %s5106_s16  ;;  %v3593_v26 = vadd.f32 %v7621_v13, %v3219_v51  ;;  %v2802_v62 = vmul.f32 %v7313_v53, %v7148_v11  ;;  %v3651_v37 = vmul.f32 %v7549_v59, %v3590_v28  ;;  %v9166_v18 = vld [vmem:[#allocation30_spill] sm:$0xff] }
 0x634   :  { %v3592_v19 = vadd.f32 %v3521_v22, %v3218_v60  ;;  %v3221_v14 = vadd.f32 %v7635_v32, %v2803_v63  ;;  %v3522_v2 = vsel %vm1319_vm5, %v7674_v6, %v7666_v61  ;;  %v2805_v44 = vmul.f32 %v9165_v41, %v7150_v40 }
 0x635   :  { %v7737_v42 = vpop.permute.xlu0 %3092  ;;  %v7742_v16 = vpop.permute.xlu1 %3090  ;;  %v3220_v13 = vadd.f32 %v3148_v3, %v2802_v62  ;;  %v3654_v11 = vmul.f32 %v7672_v30, %v3593_v26  ;;  %v3149_v34 = vsel %vm944_vm4, %v7649_v38, %v7645_v48  ;;  %v2804_v6 = vmul.f32 %v9166_v18, %v7150_v40  ;;  %v9167_v38 = vld [vmem:[#allocation153_spill] sm:$0xff]  ;;  %v9173_v62 = vld [vmem:[#allocation132_spill] sm:$0xff]  ;;  %v9176_v18 = vld [vmem:[#allocation175_spill] sm:$0xff] }
 0x636   :  { %v3595_v32 = vadd.f32 %v7666_v61, %v3221_v14  ;;  %v3653_v10 = vmul.f32 %v7549_v59, %v3592_v19  ;;  %v3223_v36 = vadd.f32 %v7645_v48, %v2805_v44  ;;  %v9168_v61 = vld [vmem:[#allocation33_spill] sm:$0xff]  ;;  %v3150_v48 = vsel %vm944_vm4, %v7721_v0, %v7716_v17 }
 0x637   :  { %3741 = vrot.lane.b32.xlu0 %v3648_v27, %s5106_s16  ;;  %3739 = vrot.lane.b32.xlu1 %v3647_v52, %s5106_s16  ;;  %v3594_v5 = vadd.f32 %v3522_v2, %v3220_v13  ;;  %v3523_v27 = vsel %vm1319_vm5, %v7700_v55, %v7695_v50  ;;  %v3222_v23 = vadd.f32 %v3149_v34, %v2804_v6  ;;  %v9175_v13 = vld [vmem:[#allocation182_spill] sm:$0xff] }
 0x638   :  { %v2807_v45 = vmul.f32 %v9168_v61, %v9167_v38  ;;  %v3656_v40 = vmul.f32 %v7672_v30, %v3595_v32  ;;  %v3597_v31 = vadd.f32 %v7695_v50, %v3223_v36  ;;  %v2806_v55 = vmul.f32 %v9169_v15, %v9167_v38  ;;  %v9170_v50 = vld [vmem:[#allocation173_spill] sm:$0xff] }
 0x639   :  { %v3463_v35 = vpop.permute.xlu0 %3462  ;;  %v3461_v8 = vpop.permute.xlu1 %3460  ;;  %v3655_v39 = vmul.f32 %v7549_v59, %v3594_v5  ;;  %v3596_v33 = vadd.f32 %v3523_v27, %v3222_v23  ;;  %v2809_v0 = vmul.f32 %v9171_v49, %v9170_v50  ;;  %v2810_v41 = vmul.f32 %v9175_v13, %v9173_v62  ;;  %v9178_v27 = vld [vmem:[#allocation184_spill] sm:$0xff] }
 0x63a   :  { %v3225_v29 = vadd.f32 %v7716_v17, %v2807_v45  ;;  %v3224_v47 = vadd.f32 %v3150_v48, %v2806_v55  ;;  %v3658_v46 = vmul.f32 %v7672_v30, %v3597_v31  ;;  %v9172_v17 = vld [vmem:[#allocation178_spill] sm:$0xff]  ;;  %v2812_v23 = vmul.f32 %v9178_v27, %v9176_v18 }
 0x63b   :  { %3745 = vrot.lane.b32.xlu0 %v3650_v54, %s5106_s16  ;;  %3743 = vrot.lane.b32.xlu1 %v3649_v43, %s5106_s16  ;;  %v3524_v54 = vsel %vm1319_vm5, %v3461_v8, %v3463_v35  ;;  %v3151_v43 = vsel %vm944_vm4, %v7742_v16, %v7737_v42  ;;  %v2808_v22 = vmul.f32 %v9172_v17, %v9170_v50  ;;  %v9174_v16 = vld [vmem:[#allocation180_spill] sm:$0xff]  ;;  %v9182_v17 = vld [vmem:[#allocation155_spill] sm:$0xff] }
 0x63c   :  { %v3599_v28 = vadd.f32 %v3463_v35, %v3225_v29  ;;  %v3657_v8 = vmul.f32 %v7549_v59, %v3596_v33  ;;  %v3598_v60 = vadd.f32 %v3524_v54, %v3224_v47  ;;  %v2811_v35 = vmul.f32 %v9174_v16, %v9173_v62  ;;  %v9180_v29 = vld [vmem:[#allocation187_spill] sm:$0xff] }
 0x63d   :  { %v3467_v58 = vpop.permute.xlu0 %3466  ;;  %v3465_v4 = vpop.permute.xlu1 %3464  ;;  %v3226_v3 = vadd.f32 %v3151_v43, %v2808_v22  ;;  %v9183_v22 = vld [vmem:[#allocation190_spill] sm:$0xff] }
 0x63e   :  { %v3525_v26 = vsel %vm1319_vm5, %v3465_v4, %v3467_v58 }
 0x63f   :  { %3749 = vrot.lane.b32.xlu0 %v3652_v57, %s5106_s16  ;;  %3747 = vrot.lane.b32.xlu1 %v3651_v37, %s5106_s16  ;;  %v3227_v57 = vadd.f32 %v7737_v42, %v2809_v0  ;;  %v3660_v37 = vmul.f32 %v7672_v30, %v3599_v28  ;;  %v3659_v42 = vmul.f32 %v7549_v59, %v3598_v60  ;;  %v9181_v0 = vld [vmem:[#allocation188_spill] sm:$0xff] }
 0x640   :  { %v3600_v4 = vadd.f32 %v3525_v26, %v3226_v3 }
 0x641   :  { %v3097_v25 = vpop.permute.xlu0 %3096  ;;  %v3095_v24 = vpop.permute.xlu1 %3094  ;;  %v3601_v19 = vadd.f32 %v3467_v58, %v3227_v57  ;;  %v9177_v58 = vld [vmem:[#allocation183_spill] sm:$0xff] }
 0x642   :  { %v3152_v14 = vsel %vm944_vm4, %v3095_v24, %v3097_v25  ;;  %v2813_v6 = vmul.f32 %v9177_v58, %v9176_v18 }
 0x643   :  { %3753 = vrot.lane.b32.xlu0 %v3654_v11, %s5106_s16  ;;  %3751 = vrot.lane.b32.xlu1 %v3653_v10, %s5106_s16  ;;  %v3229_v11 = vadd.f32 %v3097_v25, %v2811_v35  ;;  %v3228_v32 = vadd.f32 %v3152_v14, %v2810_v41  ;;  %v3662_v10 = vmul.f32 %v7672_v30, %v3601_v19  ;;  %v9184_v35 = vld [vmem:[#allocation191_spill] sm:$0xff] }
 0x644   :  { %v3661_v25 = vmul.f32 %v7549_v59, %v3600_v4 }
 0x645   :  { %v3101_v52 = vpop.permute.xlu0 %3100  ;;  %v3099_v9 = vpop.permute.xlu1 %3098 }
 0x646   :  { %v3153_v5 = vsel %vm944_vm4, %v3099_v9, %v3101_v52  ;;  %v9179_v9 = vld [vmem:[#allocation156_spill] sm:$0xff] }
 0x647   :  { %3757 = vrot.lane.b32.xlu0 %v3656_v40, %s5106_s16  ;;  %3755 = vrot.lane.b32.xlu1 %v3655_v39, %s5106_s16  ;;  %v3231_v40 = vadd.f32 %v3101_v52, %v2813_v6  ;;  %v3230_v48 = vadd.f32 %v3153_v5, %v2812_v23  ;;  %v2815_v54 = vmul.f32 %v9180_v29, %v9179_v9 }
 0x649   :  { %v3471_v51 = vpop.permute.xlu0 %3470  ;;  %v3469_v63 = vpop.permute.xlu1 %3468 }
 0x64a   :  { %v3526_v34 = vsel %vm1319_vm5, %v3469_v63, %v3471_v51  ;;  %v3603_v24 = vadd.f32 %v3471_v51, %v3229_v11 }
 0x64b   :  { %3761 = vrot.lane.b32.xlu0 %v3658_v46, %s5106_s16  ;;  %3759 = vrot.lane.b32.xlu1 %v3657_v8, %s5106_s16  ;;  %v3602_v38 = vadd.f32 %v3526_v34, %v3228_v32  ;;  %v2814_v46 = vmul.f32 %v9181_v0, %v9179_v9  ;;  %v2817_v8 = vmul.f32 %v9183_v22, %v9182_v17 }
 0x64c   :  { %v3664_v55 = vmul.f32 %v7672_v30, %v3603_v24  ;;  %v9185_v24 = vld [vmem:[#allocation174_spill] sm:$0xff] }
 0x64d   :  { %v3475_v2 = vpop.permute.xlu0 %3474  ;;  %v3473_v44 = vpop.permute.xlu1 %3472  ;;  %v3663_v47 = vmul.f32 %v7549_v59, %v3602_v38  ;;  %v9187_v38 = vld [vmem:[#allocation194_spill] sm:$0xff] }
 0x64e   :  { %v3527_v31 = vsel %vm1319_vm5, %v3473_v44, %v3475_v2  ;;  %v3605_v39 = vadd.f32 %v3475_v2, %v3231_v40 }
 0x64f   :  { %3765 = vrot.lane.b32.xlu0 %v3660_v37, %s5106_s16  ;;  %3763 = vrot.lane.b32.xlu1 %v3659_v42, %s5106_s16  ;;  %v3604_v50 = vadd.f32 %v3527_v31, %v3230_v48  ;;  %v2816_v37 = vmul.f32 %v9184_v35, %v9182_v17  ;;  %v9188_v48 = vld [vmem:[#allocation134_spill] sm:$0xff]  ;;  %v9191_v35 = vld [vmem:[#allocation177_spill] sm:$0xff] }
 0x650   :  { %v3666_v28 = vmul.f32 %v7672_v30, %v3605_v39 }
 0x651   :  { %v3105_v36 = vpop.permute.xlu0 %3104  ;;  %v3103_v45 = vpop.permute.xlu1 %3102  ;;  %v3665_v60 = vmul.f32 %v7549_v59, %v3604_v50  ;;  %v9190_v50 = vld [vmem:[#allocation196_spill] sm:$0xff] }
 0x652   :  { %v3154_v52 = vsel %vm944_vm4, %v3103_v45, %v3105_v36  ;;  %v3233_v43 = vadd.f32 %v3105_v36, %v2815_v54  ;;  %v9186_v36 = vld [vmem:[#allocation193_spill] sm:$0xff]  ;;  %v2818_v45 = vmul.f32 %v9187_v38, %v9185_v24 }
 0x653   :  { %3769 = vrot.lane.b32.xlu0 %v3662_v10, %s5106_s16  ;;  %3767 = vrot.lane.b32.xlu1 %v3661_v25, %s5106_s16  ;;  %v3232_v63 = vadd.f32 %v3154_v52, %v2814_v46  ;;  %v2819_v27 = vmul.f32 %v9186_v36, %v9185_v24  ;;  %v9196_v24 = vld [vmem:[#allocation200_spill] sm:$0xff] }
 0x655   :  { %v3109_v33 = vpop.permute.xlu0 %3108  ;;  %v3107_v49 = vpop.permute.xlu1 %3106 }
 0x656   :  { %v3155_v3 = vsel %vm944_vm4, %v3107_v49, %v3109_v33  ;;  %v3235_v19 = vadd.f32 %v3109_v33, %v2817_v8  ;;  %v2820_v49 = vmul.f32 %v9190_v50, %v9188_v48  ;;  %v9197_v50 = vld [vmem:[#allocation157_spill] sm:$0xff] }
 0x657   :  { %3773 = vrot.lane.b32.xlu0 %v3664_v55, %s5106_s16  ;;  %3771 = vrot.lane.b32.xlu1 %v3663_v47, %s5106_s16  ;;  %v3234_v42 = vadd.f32 %v3155_v3, %v2816_v37  ;;  %v9189_v55 = vld [vmem:[#allocation195_spill] sm:$0xff]  ;;  %v9192_v37 = vld [vmem:[#allocation197_spill] sm:$0xff] }
 0x658   :  { %v2821_v39 = vmul.f32 %v9189_v55, %v9188_v48 }
 0x659   :  { %v3479_v51 = vpop.permute.xlu0 %3478  ;;  %v3477_v57 = vpop.permute.xlu1 %3476 }
 0x65a   :  { %v3607_v26 = vadd.f32 %v3479_v51, %v3233_v43  ;;  %v3528_v62 = vsel %vm1319_vm5, %v3477_v57, %v3479_v51 }
 0x65b   :  { %3777 = vrot.lane.b32.xlu0 %v3666_v28, %s5106_s16  ;;  %v3606_v14 = vadd.f32 %v3528_v62, %v3232_v63  ;;  %3775 = vrot.lane.b32.xlu1 %v3665_v60, %s5106_s16 }
 0x65c   :  { %v3668_v2 = vmul.f32 %v7672_v30, %v3607_v26 }
 0x65d   :  { %v3483_v41 = vpop.permute.xlu0 %3482  ;;  %v3667_v4 = vmul.f32 %v7549_v59, %v3606_v14  ;;  %v3481_v44 = vpop.permute.xlu1 %3480 }
 0x65e   :  { %v3609_v11 = vadd.f32 %v3483_v41, %v3235_v19  ;;  %v3529_v34 = vsel %vm1319_vm5, %v3481_v44, %v3483_v41  ;;  %v2823_v19 = vmul.f32 %v9192_v37, %v9191_v35  ;;  %v9193_v41 = vld [vmem:[#allocation198_spill] sm:$0xff] }
 0x65f   :  { %3781 = vrot.lane.b32.xlu0 %v3668_v2, %s5106_s16  ;;  %v3608_v32 = vadd.f32 %v3529_v34, %v3234_v42  ;;  %3779 = vrot.lane.b32.xlu1 %v3667_v4, %s5106_s16  ;;  %v2822_v42 = vmul.f32 %v9193_v41, %v9191_v35  ;;  %v9195_v34 = vld [vmem:[#allocation199_spill] sm:$0xff]  ;;  %v9202_v35 = vld [vmem:[#allocation204_spill] sm:$0xff] }
 0x660   :  { %v3670_v18 = vmul.f32 %v7672_v30, %v3609_v11  ;;  %v9194_v11 = vld [vmem:[#allocation158_spill] sm:$0xff] }
 0x661   :  { %v3113_v58 = vpop.permute.xlu0 %3112  ;;  %v3669_v6 = vmul.f32 %v7549_v59, %v3608_v32  ;;  %v3111_v10 = vpop.permute.xlu1 %3110  ;;  %v2825_v32 = vmul.f32 %v9195_v34, %v9194_v11  ;;  %v2824_v36 = vmul.f32 %v9196_v24, %v9194_v11  ;;  %v5005_v24 = vld [vmem:[#allocation2 + $0x10] sm:$0xff] }
 0x662   :  { %v3156_v25 = vsel %vm944_vm4, %v3111_v10, %v3113_v58  ;;  %v3237_v40 = vadd.f32 %v3113_v58, %v2819_v27 }
 0x663   :  { %3785 = vrot.lane.b32.xlu0 %v3670_v18, %s5106_s16  ;;  %3783 = vrot.lane.b32.xlu1 %v3669_v6, %s5106_s16  ;;  %v3236_v33 = vadd.f32 %v3156_v25, %v2818_v45 }
 0x665   :  { %v3117_v5 = vpop.permute.xlu0 %3116  ;;  %v3115_v23 = vpop.permute.xlu1 %3114 }
 0x666   :  { %v3157_v54 = vsel %vm944_vm4, %v3115_v23, %v3117_v5  ;;  %v3239_v52 = vadd.f32 %v3117_v5, %v2821_v39 }
 0x667   :  { %v3238_v28 = vadd.f32 %v3157_v54, %v2820_v49  ;;  %v9198_v49 = vld [vmem:[#allocation201_spill] sm:$0xff] }
 0x669   :  { %v3487_v31 = vpop.permute.xlu0 %3486  ;;  %v3485_v9 = vpop.permute.xlu1 %3484 }
 0x66a   :  { %v3611_v29 = vadd.f32 %v3487_v31, %v3237_v40  ;;  %v3530_v47 = vsel %vm1319_vm5, %v3485_v9, %v3487_v31 }
 0x66b   :  { %v3610_v0 = vadd.f32 %v3530_v47, %v3236_v33 }
 0x66c   :  { %v3672_v46 = vmul.f32 %v7672_v30, %v3611_v29 }
 0x66d   :  { %v3491_v43 = vpop.permute.xlu0 %3490  ;;  %v3671_v51 = vmul.f32 %v7549_v59, %v3610_v0  ;;  %v3489_v17 = vpop.permute.xlu1 %3488 }
 0x66e   :  { %v3613_v22 = vadd.f32 %v3491_v43, %v3239_v52  ;;  %3789 = vrot.lane.b32.xlu0 %v3672_v46, %s5106_s16  ;;  %v3531_v8 = vsel %vm1319_vm5, %v3489_v17, %v3491_v43  ;;  %v2827_v52 = vmul.f32 %v9198_v49, %v9197_v50  ;;  %v9199_v43 = vld [vmem:[#allocation202_spill] sm:$0xff] }
 0x66f   :  { %v3612_v60 = vadd.f32 %v3531_v8, %v3238_v28  ;;  %3787 = vrot.lane.b32.xlu1 %v3671_v51, %s5106_s16  ;;  %v2826_v28 = vmul.f32 %v9199_v43, %v9197_v50  ;;  %v9201_v8 = vld [vmem:[#allocation203_spill] sm:$0xff]  ;;  %v9207_v50 = vld [vmem:[#allocation12_spill] sm:$0xff] }
 0x670   :  { %v3674_v63 = vmul.f32 %v7672_v30, %v3613_v22  ;;  %v9200_v22 = vld [vmem:[#allocation176_spill] sm:$0xff]  ;;  %v7948_v49 = vmul.f32 %v7313_v53, %v9207_v50 }
 0x671   :  { %v3121_v57 = vpop.permute.xlu0 %3120  ;;  %v3673_v26 = vmul.f32 %v7549_v59, %v3612_v60  ;;  %v3119_v3 = vpop.permute.xlu1 %3118  ;;  %v2829_v60 = vmul.f32 %v9201_v8, %v9200_v22  ;;  %v2828_v37 = vmul.f32 %v9202_v35, %v9200_v22  ;;  %v9213_v22 = vld [vmem:[#allocation35_spill] sm:$0xff] }
 0x672   :  { %3793 = vrot.lane.b32.xlu0 %v3674_v63, %s5106_s16  ;;  %v3158_v2 = vsel %vm944_vm4, %v3119_v3, %v3121_v57  ;;  %v3241_v4 = vadd.f32 %v3121_v57, %v2823_v19 }
 0x673   :  { %3791 = vrot.lane.b32.xlu1 %v3673_v26, %s5106_s16  ;;  %v3240_v18 = vadd.f32 %v3158_v2, %v2822_v42 }
 0x675   :  { %v3125_v62 = vpop.permute.xlu0 %3124  ;;  %v3123_v14 = vpop.permute.xlu1 %3122 }
 0x676   :  { %v3159_v10 = vsel %vm944_vm4, %v3123_v14, %v3125_v62  ;;  %v3243_v27 = vadd.f32 %v3125_v62, %v2825_v32  ;;  %v5004_v32 = vld [vmem:[#allocation2 + $0x8] sm:$0xff] }
 0x677   :  { %v3242_v45 = vadd.f32 %v3159_v10, %v2824_v36  ;;  %v9204_v36 = vld [vmem:[#allocation9_spill] sm:$0xff] }
 0x679   :  { %v3495_v44 = vpop.permute.xlu0 %3494  ;;  %v3493_v58 = vpop.permute.xlu1 %3492 }
 0x67a   :  { %v3615_v6 = vadd.f32 %v3495_v44, %v3241_v4  ;;  %v3532_v5 = vsel %vm1319_vm5, %v3493_v58, %v3495_v44 }
 0x67b   :  { %v3614_v23 = vadd.f32 %v3532_v5, %v3240_v18  ;;  %v9203_v18 = vld [vmem:[#allocation27_spill] sm:$0xff] }
 0x67c   :  { %v3676_v25 = vmul.f32 %v7672_v30, %v3615_v6  ;;  %v593_v58 = vmul.f32 %v5004_v32, %v9203_v18 }
 0x67d   :  { %v3499_v38 = vpop.permute.xlu0 %3498  ;;  %v3675_v40 = vmul.f32 %v7549_v59, %v3614_v23  ;;  %v3497_v31 = vpop.permute.xlu1 %3496  ;;  %v5006_v23 = vld [vmem:[#allocation2 + $0x18] sm:$0xff] }
 0x67e   :  { %v3617_v48 = vadd.f32 %v3499_v38, %v3243_v27  ;;  %3797 = vrot.lane.b32.xlu0 %v3676_v25, %s5106_s16  ;;  %v3533_v55 = vsel %vm1319_vm5, %v3497_v31, %v3499_v38  ;;  %v594_v27 = vmul.f32 %v5005_v24, %v9204_v36  ;;  %v595_v25 = vmul.f32 %v5006_v23, %v9204_v36  ;;  %v5007_v38 = vld [vmem:[#allocation2] sm:$0xff]  ;;  %v9224_v36 = vld [vmem:[#allocation26_spill] sm:$0xff] }
 0x67f   :  { %v3616_v39 = vadd.f32 %v3533_v55, %v3242_v45  ;;  %3795 = vrot.lane.b32.xlu1 %v3675_v40, %s5106_s16  ;;  %v592_v45 = vmul.f32 %v5007_v38, %v9203_v18  ;;  %v9205_v55 = vld [vmem:[#allocation10_spill] sm:$0xff] }
 0x680   :  { %v3678_v33 = vmul.f32 %v7672_v30, %v3617_v48  ;;  %v5008_v48 = vld [vmem:[#allocation2 + $0x20] sm:$0xff] }
 0x681   :  { %v3129_v9 = vpop.permute.xlu0 %3128  ;;  %v3677_v29 = vmul.f32 %v7549_v59, %v3616_v39  ;;  %v3127_v54 = vpop.permute.xlu1 %3126  ;;  %v596_v39 = vmul.f32 %v5008_v48, %v9205_v55 }
 0x682   :  { %3801 = vrot.lane.b32.xlu0 %v3678_v33, %s5106_s16  ;;  %v3160_v46 = vsel %vm944_vm4, %v3127_v54, %v3129_v9  ;;  %v3245_v51 = vadd.f32 %v3129_v9, %v2827_v52  ;;  %v5009_v33 = vld [vmem:[#allocation2 + $0x28] sm:$0xff]  ;;  %v7952_v52 = vmul.f32 %v7317_v20, %v9207_v50 }
 0x683   :  { %3799 = vrot.lane.b32.xlu1 %v3677_v29, %s5106_s16  ;;  %v3244_v63 = vadd.f32 %v3160_v46, %v2826_v28  ;;  %v597_v9 = vmul.f32 %v5009_v33, %v9205_v55  ;;  %v9206_v29 = vld [vmem:[#allocation11_spill] sm:$0xff]  ;;  %v9209_v46 = vld [vmem:[#allocation37_spill] sm:$0xff]  ;;  %v9210_v28 = vld [vmem:[#allocation34_spill] sm:$0xff] }
 0x684   :  { %v7940_v54 = vmul.f32 %v7279_v12, %v9206_v29  ;;  %v9211_v12 = vld [vmem:[#allocation13_spill] sm:$0xff]  ;;  %v945_v8 = vsel %vm944_vm4, %v9213_v22, %v9210_v28  ;;  %v9226_v50 = vld [vmem:[#allocation42_spill] sm:$0xff] }
 0x685   :  { %v3133_v47 = vpop.permute.xlu0 %3132  ;;  %v3131_v0 = vpop.permute.xlu1 %3130  ;;  %v7965_v53 = vmul.f32 %v9168_v61, %v9211_v12 }
 0x686   :  { %v3161_v3 = vsel %vm944_vm4, %v3131_v0, %v3133_v47  ;;  %v3247_v19 = vadd.f32 %v3133_v47, %v2829_v60  ;;  %v7944_v47 = vmul.f32 %v7283_v7, %v9206_v29  ;;  %v9208_v0 = vld [vmem:[#allocation36_spill] sm:$0xff]  ;;  %v7961_v7 = vmul.f32 %v9169_v15, %v9211_v12 }
 0x687   :  { %v3246_v42 = vadd.f32 %v3161_v3, %v2828_v37  ;;  %v946_v43 = vsel %vm944_vm4, %v9209_v46, %v9208_v0  ;;  %v9216_v15 = vld [vmem:[#allocation24_spill] sm:$0xff] }
 0x688   :  { %v2831_v3 = vmul.f32 %v7615_v1, %v9216_v15  ;;  %v1013_v37 = vadd.f32 %v946_v43, %v594_v27  ;;  %v2833_v27 = vmul.f32 %v7629_v21, %v9224_v36  ;;  %v9228_v43 = vld [vmem:[#allocation25_spill] sm:$0xff] }
 0x689   :  { %v3503_v17 = vpop.permute.xlu0 %3502  ;;  %v3501_v57 = vpop.permute.xlu1 %3500 }
 0x68a   :  { %v3619_v26 = vadd.f32 %v3503_v17, %v3245_v51  ;;  %v3534_v62 = vsel %vm1319_vm5, %v3501_v57, %v3503_v17  ;;  %v1012_v51 = vadd.f32 %v9210_v28, %v593_v58  ;;  %v9212_v17 = vld [vmem:[#allocation14_spill] sm:$0xff]  ;;  %v9215_v57 = vld [vmem:[#allocation39_spill] sm:$0xff] }
 0x68b   :  { %v3618_v14 = vadd.f32 %v3534_v62, %v3244_v63  ;;  %v7969_v20 = vmul.f32 %v9175_v13, %v9212_v17  ;;  %v9214_v63 = vld [vmem:[#allocation38_spill] sm:$0xff]  ;;  %v1011_v62 = vadd.f32 %v945_v8, %v592_v45  ;;  %v7981_v35 = vmul.f32 %v9174_v16, %v9212_v17  ;;  %v9221_v16 = vld [vmem:[#allocation21_spill] sm:$0xff]  ;;  %v9222_v58 = vld [vmem:[#allocation119_spill] sm:$0xff] }
 0x68c   :  { %v3680_v2 = vmul.f32 %v7672_v30, %v3619_v26  ;;  %v947_v26 = vsel %vm944_vm4, %v9215_v57, %v9214_v63  ;;  %v1014_v13 = vadd.f32 %v9208_v0, %v595_v25  ;;  %v2832_v45 = vmul.f32 %v7637_v56, %v9224_v36  ;;  %v9227_v0 = vld [vmem:[#allocation43_spill] sm:$0xff] }
 0x68d   :  { %v3507_v41 = vpop.permute.xlu0 %3506  ;;  %v3679_v4 = vmul.f32 %v7549_v59, %v3618_v14  ;;  %v3505_v44 = vpop.permute.xlu1 %3504  ;;  %v1016_v14 = vadd.f32 %v9214_v63, %v597_v9  ;;  %v1015_v1 = vadd.f32 %v947_v26, %v596_v39  ;;  %v949_v46 = vsel %vm944_vm4, %v9227_v0, %v9226_v50  ;;  %v9229_v28 = vld [vmem:[#allocation23_spill] sm:$0xff] }
 0x68e   :  { %v3621_v11 = vadd.f32 %v3507_v41, %v3247_v19  ;;  %3805 = vrot.lane.b32.xlu0 %v3680_v2, %s5106_s16  ;;  %v3535_v34 = vsel %vm1319_vm5, %v3505_v44, %v3507_v41  ;;  %v9217_v2 = vld [vmem:[#allocation205_spill] sm:$0xff]  ;;  %v1321_v56 = vsel %vm1319_vm5, %v9229_v28, %v9228_v43  ;;  %v1389_v26 = vadd.f32 %v9228_v43, %v1014_v13 }
 0x68f   :  { %v3620_v6 = vadd.f32 %v3535_v34, %v3246_v42  ;;  %3803 = vrot.lane.b32.xlu1 %v3679_v4, %s5106_s16  ;;  %v2830_v41 = vmul.f32 %v9217_v2, %v9216_v15  ;;  %v9218_v42 = vld [vmem:[#allocation22_spill] sm:$0xff]  ;;  %v9220_v34 = vld [vmem:[#allocation41_spill] sm:$0xff]  ;;  %v9230_v15 = vld [vmem:[#allocation79_spill] sm:$0xff] }
 0x690   :  { %v3682_v10 = vmul.f32 %v7672_v30, %v3621_v11  ;;  %v1387_v4 = vadd.f32 %v9218_v42, %v1012_v51  ;;  %v9219_v11 = vld [vmem:[#allocation40_spill] sm:$0xff]  ;;  %v1320_v18 = vsel %vm1319_vm5, %v9221_v16, %v9218_v42  ;;  %v5011_v51 = vld [vmem:[#allocation2 + $0x30] sm:$0xff]  ;;  %v9232_v42 = vld [vmem:[#allocation121_spill] sm:$0xff] }
 0x691   :  { %v3137_v5 = vpop.permute.xlu0 %3136  ;;  %v3681_v40 = vmul.f32 %v7549_v59, %v3620_v6  ;;  %v3135_v31 = vpop.permute.xlu1 %3134  ;;  %v948_v32 = vsel %vm944_vm4, %v9220_v34, %v9219_v11  ;;  %v9223_v6 = vld [vmem:[#allocation118_spill] sm:$0xff]  ;;  %v1386_v23 = vadd.f32 %v1320_v18, %v1011_v62  ;;  %v9233_v34 = vld [vmem:[#allocation120_spill] sm:$0xff]  ;;  %v9234_v18 = vld [vmem:[#allocation123_spill] sm:$0xff] }
 0x692   :  { %3809 = vrot.lane.b32.xlu0 %v3682_v10, %s5106_s16  ;;  %v3162_v19 = vsel %vm944_vm4, %v3135_v31, %v3137_v5  ;;  %v3249_v44 = vadd.f32 %v3137_v5, %v2831_v3  ;;  %v7997_v10 = vsel %vm1443_vm7, %v9223_v6, %v9222_v58  ;;  %v9225_v31 = vld [vmem:[#allocation28_spill] sm:$0xff]  ;;  %v9231_v3 = vld [vmem:[#allocation78_spill] sm:$0xff]  ;;  %v2592_v13 = vsel %vm2591_vm8, %v9233_v34, %v9232_v42 }
 0x693   :  { %3807 = vrot.lane.b32.xlu1 %v3681_v40, %s5106_s16  ;;  %v3248_v25 = vadd.f32 %v3162_v19, %v2830_v41  ;;  %v5010_v40 = vld [vmem:[#allocation2 + $0x38] sm:$0xff]  ;;  %v1448_v21 = vmul.f32 %v7997_v10, %v1387_v4  ;;  %v598_v12 = vmul.f32 %v5011_v51, %v9225_v31  ;;  %v1447_v57 = vmul.f32 %v9223_v6, %v1386_v23  ;;  %v9235_v58 = vld [vmem:[#allocation122_spill] sm:$0xff] }
 0x694   :  { %v599_v48 = vmul.f32 %v5010_v40, %v9225_v31  ;;  %v1322_v62 = vsel %vm1319_vm5, %v9231_v3, %v9230_v15  ;;  %v1450_v16 = vmul.f32 %v7997_v10, %v1389_v26  ;;  %v9236_v31 = vld [vmem:[#allocation81_spill] sm:$0xff] }
 0x695   :  { %v3141_v60 = vpop.permute.xlu0 %3140  ;;  %v3139_v61 = vpop.permute.xlu1 %3138  ;;  %v2659_v4 = vadd.f32 %v9232_v42, %v1448_v21  ;;  %v1017_v36 = vadd.f32 %v948_v32, %v598_v12  ;;  %v2658_v23 = vadd.f32 %v2592_v13, %v1447_v57  ;;  %v9237_v32 = vld [vmem:[#allocation31_spill] sm:$0xff]  ;;  %v9240_v21 = vld [vmem:[#allocation138_spill] sm:$0xff] }
 0x696   :  { %v3163_v55 = vsel %vm944_vm4, %v3139_v61, %v3141_v60  ;;  %v3251_v33 = vadd.f32 %v3141_v60, %v2833_v27  ;;  %v1018_v61 = vadd.f32 %v9219_v11, %v599_v48  ;;  %v2593_v11 = vsel %vm2591_vm8, %v9235_v58, %v9234_v18  ;;  %v9245_v42 = vld [vmem:[#allocation46_spill] sm:$0xff] }
 0x697   :  { %v3250_v22 = vadd.f32 %v3163_v55, %v2832_v45  ;;  %v2661_v40 = vadd.f32 %v9234_v18, %v1450_v16  ;;  %v5012_v55 = vld [vmem:[#allocation2 + $0x58] sm:$0xff] }
 0x698   :  { %v1393_v48 = vadd.f32 %v9236_v31, %v1018_v61 }
 0x699   :  { %v3511_v24 = vpop.permute.xlu0 %3510  ;;  %v3509_v5 = vpop.permute.xlu1 %3508 }
 0x69a   :  { %v3623_v38 = vadd.f32 %v3511_v24, %v3249_v44  ;;  %v3536_v39 = vsel %vm1319_vm5, %v3509_v5, %v3511_v24  ;;  %v1388_v44 = vadd.f32 %v1321_v56, %v1013_v37  ;;  %v1390_v37 = vadd.f32 %v1322_v62, %v1015_v1  ;;  %v5013_v56 = vld [vmem:[#allocation2 + $0x50] sm:$0xff]  ;;  %v9243_v62 = vld [vmem:[#allocation44_spill] sm:$0xff] }
 0x69b   :  { %v3622_v9 = vadd.f32 %v3536_v39, %v3248_v25  ;;  %v1391_v5 = vadd.f32 %v9230_v15, %v1016_v14  ;;  %v603_v39 = vmul.f32 %v5012_v55, %v9237_v32  ;;  %v602_v51 = vmul.f32 %v5013_v56, %v9237_v32  ;;  %v9252_v55 = vld [vmem:[#allocation84_spill] sm:$0xff]  ;;  %v9254_v56 = vld [vmem:[#allocation87_spill] sm:$0xff] }
 0x69c   :  { %v3684_v29 = vmul.f32 %v7672_v30, %v3623_v38  ;;  %v1449_v38 = vmul.f32 %v9223_v6, %v1388_v44  ;;  %v1451_v26 = vmul.f32 %v9223_v6, %v1390_v37 }
 0x69d   :  { %v3515_v17 = vpop.permute.xlu0 %3514  ;;  %v3683_v8 = vmul.f32 %v7549_v59, %v3622_v9  ;;  %v3513_v60 = vpop.permute.xlu1 %3512  ;;  %v1452_v14 = vmul.f32 %v7997_v10, %v1391_v5  ;;  %v1022_v61 = vadd.f32 %v9243_v62, %v603_v39  ;;  %v5014_v5 = vld [vmem:[#allocation2 + $0x78] sm:$0xff]  ;;  %v9253_v39 = vld [vmem:[#allocation159_spill] sm:$0xff] }
 0x69e   :  { %v3625_v63 = vadd.f32 %v3515_v17, %v3251_v33  ;;  %3813 = vrot.lane.b32.xlu0 %v3684_v29, %s5106_s16  ;;  %v3537_v19 = vsel %vm1319_vm5, %v3513_v60, %v3515_v17  ;;  %v9238_v33 = vld [vmem:[#allocation80_spill] sm:$0xff]  ;;  %v2660_v9 = vadd.f32 %v2593_v11, %v1449_v38  ;;  %v9239_v29 = vld [vmem:[#allocation125_spill] sm:$0xff]  ;;  %v9241_v60 = vld [vmem:[#allocation83_spill] sm:$0xff] }
 0x69f   :  { %v3624_v2 = vadd.f32 %v3537_v19, %v3250_v22  ;;  %3811 = vrot.lane.b32.xlu1 %v3683_v8, %s5106_s16  ;;  %v1323_v1 = vsel %vm1319_vm5, %v9238_v33, %v9236_v31  ;;  %v2594_v0 = vsel %vm2591_vm8, %v9240_v21, %v9239_v29  ;;  %v1020_v8 = vadd.f32 %v9226_v50, %v7944_v47  ;;  %v9244_v47 = vld [vmem:[#allocation45_spill] sm:$0xff]  ;;  %v9250_v38 = vld [vmem:[#allocation32_spill] sm:$0xff] }
 0x6a0   :  { %v3686_v41 = vmul.f32 %v7672_v30, %v3625_v63  ;;  %v1392_v28 = vadd.f32 %v1323_v1, %v1017_v36  ;;  %v9242_v63 = vld [vmem:[#allocation82_spill] sm:$0xff]  ;;  %v2663_v3 = vadd.f32 %v9239_v29, %v1452_v14  ;;  %v950_v50 = vsel %vm944_vm4, %v9244_v47, %v9243_v62  ;;  %v9247_v36 = vld [vmem:[#allocation48_spill] sm:$0xff]  ;;  %v9251_v31 = vld [vmem:[#allocation137_spill] sm:$0xff] }
 0x6a1   :  { %v3734_v24 = vpop.permute.xlu0 %3733  ;;  %v3685_v30 = vmul.f32 %v7549_v59, %v3624_v2  ;;  %v3732_v27 = vpop.permute.xlu1 %3731  ;;  %v1324_v57 = vsel %vm1319_vm5, %v9242_v63, %v9241_v60  ;;  %v1454_v2 = vmul.f32 %v7997_v10, %v1393_v48  ;;  %v2662_v34 = vadd.f32 %v2594_v0, %v1451_v26  ;;  %v5015_v1 = vld [vmem:[#allocation2 + $0x70] sm:$0xff] }
 0x6a2   :  { %v3887_v25 = vadd.f32 %v3734_v24, %v2659_v4  ;;  %3817 = vrot.lane.b32.xlu0 %v3686_v41, %s5106_s16  ;;  %v3820_v45 = vsel %vm3819_vm9, %v3732_v27, %v3734_v24  ;;  %v1019_v41 = vadd.f32 %v949_v46, %v7940_v54  ;;  %v9246_v4 = vld [vmem:[#allocation47_spill] sm:$0xff]  ;;  %v1021_v16 = vadd.f32 %v950_v50, %v602_v51  ;;  %v9255_v51 = vld [vmem:[#allocation86_spill] sm:$0xff] }
 0x6a3   :  { %v3886_v59 = vadd.f32 %v3820_v45, %v2658_v23  ;;  %3815 = vrot.lane.b32.xlu1 %v3685_v30, %s5106_s16  ;;  %v951_v44 = vsel %vm944_vm4, %v9246_v4, %v9245_v42  ;;  %v1453_v24 = vmul.f32 %v9223_v6, %v1392_v28  ;;  %v9248_v30 = vld [vmem:[#allocation49_spill] sm:$0xff]  ;;  %v1395_v27 = vadd.f32 %v9241_v60, %v1020_v8 }
 0x6a4   :  { %v952_v54 = vsel %vm944_vm4, %v9248_v30, %v9247_v36  ;;  %v1394_v46 = vadd.f32 %v1324_v57, %v1019_v41  ;;  %v607_v45 = vmul.f32 %v5014_v5, %v9250_v38  ;;  %v2665_v48 = vadd.f32 %v9251_v31, %v1454_v2  ;;  %v9257_v8 = vld [vmem:[#allocation161_spill] sm:$0xff]  ;;  %v9259_v2 = vld [vmem:[#allocation51_spill] sm:$0xff]  ;;  %v9262_v30 = vld [vmem:[#allocation20_spill] sm:$0xff] }
 0x6a5   :  { %v3738_v43 = vpop.permute.xlu0 %3737  ;;  %v4761_v12 = vpack.i.bf16 %v3887_v25, %v3886_v59  ;;  %v3736_v17 = vpop.permute.xlu1 %3735  ;;  %v9249_v25 = vld [vmem:[#allocation85_spill] sm:$0xff]  ;;  %v2595_v59 = vsel %vm2591_vm8, %v9253_v39, %v9251_v31  ;;  %v1456_v33 = vmul.f32 %v7997_v10, %v1395_v27  ;;  %v1024_v62 = vadd.f32 %v9245_v42, %v7952_v52  ;;  %v9263_v27 = vld [vmem:[#allocation140_spill] sm:$0xff] }
 0x6a6   :  { %v3889_v22 = vadd.f32 %v3738_v43, %v2661_v40  ;;  %v3821_v15 = vsel %vm3819_vm9, %v3736_v17, %v3738_v43  ;;  %v1397_v37 = vadd.f32 %v9249_v25, %v1022_v61  ;;  %v1325_v32 = vsel %vm1319_vm5, %v9252_v55, %v9249_v25  ;;  %v9264_v25 = vld [vmem:[#allocation139_spill] sm:$0xff] }
 0x6a7   :  { %v3888_v19 = vadd.f32 %v3821_v15, %v2660_v9  ;;  %4762 = vrot.lane.b32.xlu1 %v4761_v12, %s5102_s19  ;;  %v606_v9 = vmul.f32 %v5015_v1, %v9250_v38  ;;  %v1396_v29 = vadd.f32 %v1325_v32, %v1021_v16  ;;  %v2664_v43 = vadd.f32 %v2595_v59, %v1453_v24  ;;  %v9260_v24 = vld [vmem:[#allocation89_spill] sm:$0xff]  ;;  %v9265_v38 = vld [vmem:[#allocation160_spill] sm:$0xff]  ;;  %v5017_v55 = vld [vmem:[#allocation2 + $0x90] sm:$0xff] }
 0x6a8   :  { %v1326_v12 = vsel %vm1319_vm5, %v9255_v51, %v9254_v56  ;;  %v1455_v17 = vmul.f32 %v9223_v6, %v1394_v46  ;;  %v1026_v26 = vadd.f32 %v9247_v36, %v607_v45  ;;  %v1023_v61 = vadd.f32 %v951_v44, %v7948_v49  ;;  %v9261_v36 = vld [vmem:[#allocation88_spill] sm:$0xff]  ;;  %v9266_v45 = vld [vmem:[#allocation127_spill] sm:$0xff] }
 0x6a9   :  { %v3742_v13 = vpop.permute.xlu0 %3741  ;;  %v4766_v18 = vpack.i.bf16 %v3889_v22, %v3888_v19  ;;  %v3740_v58 = vpop.permute.xlu1 %3739  ;;  %v9256_v22 = vld [vmem:[#allocation124_spill] sm:$0xff]  ;;  %v9258_v19 = vld [vmem:[#allocation50_spill] sm:$0xff]  ;;  %v1025_v47 = vadd.f32 %v952_v54, %v606_v9  ;;  %v1327_v52 = vsel %vm1319_vm5, %v9261_v36, %v9260_v24  ;;  %v610_v32 = vmul.f32 %v5017_v55, %v9262_v30  ;;  %v9277_v36 = vld [vmem:[#allocation163_spill] sm:$0xff] }
 0x6aa   :  { %v3891_v11 = vadd.f32 %v3742_v13, %v2663_v3  ;;  %v3822_v23 = vsel %vm3819_vm9, %v3740_v58, %v3742_v13  ;;  %v2596_v60 = vsel %vm2591_vm8, %v9257_v8, %v9256_v22  ;;  %v2667_v57 = vadd.f32 %v9256_v22, %v1456_v33  ;;  %v5016_v44 = vld [vmem:[#allocation2 + $0x98] sm:$0xff] }
 0x6ab   :  { %v3890_v40 = vadd.f32 %v3822_v23, %v2662_v34  ;;  %4767 = vrot.lane.b32.xlu0 %v4766_v18, %s5102_s19  ;;  %v1458_v3 = vmul.f32 %v7997_v10, %v1397_v37  ;;  %v953_v41 = vsel %vm944_vm4, %v9259_v2, %v9258_v19  ;;  %v2666_v4 = vadd.f32 %v2596_v60, %v1455_v17  ;;  %v9271_v60 = vld [vmem:[#allocation54_spill] sm:$0xff] }
 0x6ac   :  { %v1457_v18 = vmul.f32 %v9223_v6, %v1396_v29  ;;  %v1398_v58 = vadd.f32 %v1326_v12, %v1023_v61  ;;  %v1401_v42 = vadd.f32 %v9260_v24, %v1026_v26  ;;  %v611_v54 = vmul.f32 %v5016_v44, %v9262_v30  ;;  %v9268_v29 = vld [vmem:[#allocation90_spill] sm:$0xff] }
 0x6ad   :  { %v3746_v14 = vpop.permute.xlu0 %3745  ;;  %v4771_v21 = vpack.i.bf16 %v3891_v11, %v3890_v40  ;;  %v3744_v0 = vpop.permute.xlu1 %3743  ;;  %v1399_v11 = vadd.f32 %v9254_v56, %v1024_v62  ;;  %v2669_v23 = vadd.f32 %v9263_v27, %v1458_v3  ;;  %v2597_v37 = vsel %vm2591_vm8, %v9264_v25, %v9263_v27  ;;  %v9269_v56 = vld [vmem:[#allocation52_spill] sm:$0xff]  ;;  %v9279_v44 = vld [vmem:[#allocation142_spill] sm:$0xff] }
 0x6ae   :  { %v3893_v28 = vadd.f32 %v3746_v14, %v2665_v48  ;;  %v3823_v63 = vsel %vm3819_vm9, %v3744_v0, %v3746_v14  ;;  %v2598_v40 = vsel %vm2591_vm8, %v9266_v45, %v9265_v38  ;;  %v1400_v31 = vadd.f32 %v1327_v52, %v1025_v47  ;;  %v9267_v14 = vld [vmem:[#allocation91_spill] sm:$0xff]  ;;  %v9273_v47 = vld [vmem:[#allocation56_spill] sm:$0xff] }
 0x6af   :  { %v3892_v15 = vadd.f32 %v3823_v63, %v2664_v43  ;;  %4772 = vrot.lane.b32.xlu1 %v4771_v21, %s5102_s19  ;;  %v1460_v5 = vmul.f32 %v7997_v10, %v1399_v11  ;;  %v2668_v33 = vadd.f32 %v2597_v37, %v1457_v18  ;;  %v1028_v9 = vadd.f32 %v9258_v19, %v7965_v53  ;;  %v9270_v53 = vld [vmem:[#allocation53_spill] sm:$0xff]  ;;  %v9272_v63 = vld [vmem:[#allocation55_spill] sm:$0xff]  ;;  %v5018_v18 = vld [vmem:[#allocation2 + $0xb8] sm:$0xff] }
 0x6b0   :  { %v1328_v21 = vsel %vm1319_vm5, %v9268_v29, %v9267_v14  ;;  %v1459_v0 = vmul.f32 %v9223_v6, %v1398_v58  ;;  %v1030_v51 = vadd.f32 %v9269_v56, %v611_v54  ;;  %v1462_v17 = vmul.f32 %v7997_v10, %v1401_v42  ;;  %v9276_v58 = vld [vmem:[#allocation179_spill] sm:$0xff] }
 0x6b1   :  { %v3750_v50 = vpop.permute.xlu0 %3749  ;;  %v4776_v34 = vpack.i.bf16 %v3893_v28, %v3892_v15  ;;  %v3748_v13 = vpop.permute.xlu1 %3747  ;;  %v2671_v28 = vadd.f32 %v9265_v38, %v1460_v5  ;;  %v1027_v22 = vadd.f32 %v953_v41, %v7961_v7  ;;  %v954_v8 = vsel %vm944_vm4, %v9270_v53, %v9269_v56 }
 0x6b2   :  { %v3895_v16 = vadd.f32 %v3750_v50, %v2667_v57  ;;  %v3824_v49 = vsel %vm3819_vm9, %v3748_v13, %v3750_v50  ;;  %v955_v57 = vsel %vm944_vm4, %v9272_v63, %v9271_v60  ;;  %v2670_v26 = vadd.f32 %v2598_v40, %v1459_v0  ;;  %v9274_v50 = vld [vmem:[#allocation57_spill] sm:$0xff]  ;;  %v9280_v40 = vld [vmem:[#allocation95_spill] sm:$0xff] }
 0x6b3   :  { %v3894_v46 = vadd.f32 %v3824_v49, %v2666_v4  ;;  %4777 = vrot.lane.b32.xlu0 %v4776_v34, %s5102_s19  ;;  %v1029_v3 = vadd.f32 %v954_v8, %v610_v32  ;;  %v1461_v2 = vmul.f32 %v9223_v6, %v1400_v31  ;;  %v956_v7 = vsel %vm944_vm4, %v9274_v50, %v9273_v47  ;;  %v9275_v13 = vld [vmem:[#allocation93_spill] sm:$0xff]  ;;  %v9278_v49 = vld [vmem:[#allocation92_spill] sm:$0xff]  ;;  %v9281_v31 = vld [vmem:[#allocation94_spill] sm:$0xff] }
 0x6b4   :  { %v1402_v41 = vadd.f32 %v1328_v21, %v1027_v22  ;;  %v1403_v4 = vadd.f32 %v9267_v14, %v1028_v9  ;;  %v615_v11 = vmul.f32 %v5018_v18, %v9276_v58  ;;  %v2673_v52 = vadd.f32 %v9277_v36, %v1462_v17  ;;  %v9282_v32 = vld [vmem:[#allocation141_spill] sm:$0xff]  ;;  %v9284_v0 = vld [vmem:[#allocation15_spill] sm:$0xff] }
 0x6b5   :  { %v3754_v48 = vpop.permute.xlu0 %3753  ;;  %v4781_v39 = vpack.i.bf16 %v3895_v16, %v3894_v46  ;;  %v3752_v59 = vpop.permute.xlu1 %3751  ;;  %v1405_v16 = vadd.f32 %v9275_v13, %v1030_v51  ;;  %v1329_v42 = vsel %vm1319_vm5, %v9278_v49, %v9275_v13  ;;  %v2599_v30 = vsel %vm2591_vm8, %v9279_v44, %v9277_v36  ;;  %v5019_v46 = vld [vmem:[#allocation2 + $0xb0] sm:$0xff]  ;;  %v5020_v21 = vld [vmem:[#allocation2 + $0xc0] sm:$0xff]  ;;  %v5023_v44 = vld [vmem:[#allocation2 + $0xc8] sm:$0xff] }
 0x6b6   :  { %v3897_v1 = vadd.f32 %v3754_v48, %v2669_v23  ;;  %v3825_v43 = vsel %vm3819_vm9, %v3752_v59, %v3754_v48  ;;  %v1464_v54 = vmul.f32 %v7997_v10, %v1403_v4  ;;  %v614_v27 = vmul.f32 %v5019_v46, %v9276_v58  ;;  %v9291_v13 = vld [vmem:[#allocation143_spill] sm:$0xff] }
 0x6b7   :  { %v3896_v12 = vadd.f32 %v3825_v43, %v2668_v33  ;;  %4782 = vrot.lane.b32.xlu1 %v4781_v39, %s5102_s19  ;;  %v1404_v25 = vadd.f32 %v1329_v42, %v1029_v3  ;;  %v2672_v38 = vadd.f32 %v2599_v30, %v1461_v2  ;;  %v1330_v48 = vsel %vm1319_vm5, %v9281_v31, %v9280_v40  ;;  %v9283_v39 = vld [vmem:[#allocation162_spill] sm:$0xff]  ;;  %v9285_v3 = vld [vmem:[#allocation97_spill] sm:$0xff]  ;;  %v9293_v46 = vld [vmem:[#allocation59_spill] sm:$0xff] }
 0x6b8   :  { %v1463_v55 = vmul.f32 %v9223_v6, %v1402_v41  ;;  %v2600_v59 = vsel %vm2591_vm8, %v9283_v39, %v9282_v32  ;;  %v1034_v9 = vadd.f32 %v9273_v47, %v615_v11  ;;  %v1466_v29 = vmul.f32 %v7997_v10, %v1405_v16  ;;  %v9288_v47 = vld [vmem:[#allocation126_spill] sm:$0xff]  ;;  %v5022_v11 = vld [vmem:[#allocation2 + $0xd0] sm:$0xff] }
 0x6b9   :  { %v3758_v15 = vpop.permute.xlu0 %3757  ;;  %v4786_v62 = vpack.i.bf16 %v3897_v1, %v3896_v12  ;;  %v3756_v61 = vpop.permute.xlu1 %3755  ;;  %v2675_v1 = vadd.f32 %v9282_v32, %v1464_v54  ;;  %v616_v43 = vmul.f32 %v5020_v21, %v9284_v0  ;;  %v1031_v56 = vadd.f32 %v955_v57, %v7969_v20  ;;  %v5021_v20 = vld [vmem:[#allocation2 + $0xd8] sm:$0xff]  ;;  %v9292_v54 = vld [vmem:[#allocation58_spill] sm:$0xff]  ;;  %v9296_v32 = vld [vmem:[#allocation99_spill] sm:$0xff] }
 0x6ba   :  { %v3899_v19 = vadd.f32 %v3758_v15, %v2671_v28  ;;  %v3826_v34 = vsel %vm3819_vm9, %v3756_v61, %v3758_v15  ;;  %v1032_v28 = vadd.f32 %v9271_v60, %v7981_v35  ;;  %v1033_v51 = vadd.f32 %v956_v7, %v614_v27  ;;  %v9287_v60 = vld [vmem:[#allocation181_spill] sm:$0xff]  ;;  %v9297_v39 = vld [vmem:[#allocation98_spill] sm:$0xff] }
 0x6bb   :  { %v3898_v24 = vadd.f32 %v3826_v34, %v2670_v26  ;;  %4787 = vrot.lane.b32.xlu0 %v4786_v62, %s5102_s19  ;;  %v2674_v17 = vadd.f32 %v2600_v59, %v1463_v55  ;;  %v1465_v63 = vmul.f32 %v9223_v6, %v1404_v25  ;;  %v1406_v26 = vadd.f32 %v1330_v48, %v1031_v56  ;;  %v9286_v62 = vld [vmem:[#allocation96_spill] sm:$0xff]  ;;  %v9289_v7 = vld [vmem:[#allocation165_spill] sm:$0xff] }
 0x6bc   :  { %v1407_v15 = vadd.f32 %v9280_v40, %v1032_v28  ;;  %v1331_v61 = vsel %vm1319_vm5, %v9286_v62, %v9285_v3  ;;  %v1409_v35 = vadd.f32 %v9285_v3, %v1034_v9  ;;  %v619_v57 = vmul.f32 %v5021_v20, %v9287_v60  ;;  %v9290_v34 = vld [vmem:[#allocation144_spill] sm:$0xff]  ;;  %v9295_v48 = vld [vmem:[#allocation61_spill] sm:$0xff] }
 0x6bd   :  { %v3762_v23 = vpop.permute.xlu0 %3761  ;;  %v4791_v37 = vpack.i.bf16 %v3899_v19, %v3898_v24  ;;  %v3760_v5 = vpop.permute.xlu1 %3759  ;;  %v2677_v50 = vadd.f32 %v9288_v47, %v1466_v29  ;;  %v2601_v41 = vsel %vm2591_vm8, %v9289_v7, %v9288_v47  ;;  %v2602_v16 = vsel %vm2591_vm8, %v9291_v13, %v9290_v34  ;;  %v9301_v3 = vld [vmem:[#allocation129_spill] sm:$0xff]  ;;  %v9303_v47 = vld [vmem:[#allocation146_spill] sm:$0xff] }
 0x6be   :  { %v3901_v45 = vadd.f32 %v3762_v23, %v2673_v52  ;;  %v3827_v33 = vsel %vm3819_vm9, %v3760_v5, %v3762_v23  ;;  %v1468_v4 = vmul.f32 %v7997_v10, %v1407_v15  ;;  %v1408_v18 = vadd.f32 %v1331_v61, %v1033_v51  ;;  %v9294_v5 = vld [vmem:[#allocation60_spill] sm:$0xff] }
 0x6bf   :  { %v3900_v14 = vadd.f32 %v3827_v33, %v2672_v38  ;;  %4792 = vrot.lane.b32.xlu1 %v4791_v37, %s5102_s19  ;;  %v618_v24 = vmul.f32 %v5022_v11, %v9287_v60  ;;  %v2676_v49 = vadd.f32 %v2601_v41, %v1465_v63  ;;  %v617_v30 = vmul.f32 %v5023_v44, %v9284_v0 }
 0x6c0   :  { %v957_v27 = vsel %vm944_vm4, %v9293_v46, %v9292_v54  ;;  %v1467_v23 = vmul.f32 %v9223_v6, %v1406_v26  ;;  %v2679_v37 = vadd.f32 %v9290_v34, %v1468_v4  ;;  %v1038_v38 = vadd.f32 %v9294_v5, %v619_v57  ;;  %v9300_v26 = vld [vmem:[#allocation100_spill] sm:$0xff]  ;;  %v5024_v46 = vld [vmem:[#allocation2 + $0xf0] sm:$0xff] }
 0x6c1   :  { %v3766_v12 = vpop.permute.xlu0 %3765  ;;  %v4796_v22 = vpack.i.bf16 %v3901_v45, %v3900_v14  ;;  %v3764_v53 = vpop.permute.xlu1 %3763  ;;  %v1470_v40 = vmul.f32 %v7997_v10, %v1409_v35  ;;  %v1036_v31 = vadd.f32 %v9292_v54, %v617_v30  ;;  %v958_v55 = vsel %vm944_vm4, %v9295_v48, %v9294_v5  ;;  %v9305_v30 = vld [vmem:[#allocation166_spill] sm:$0xff] }
 0x6c2   :  { %v3903_v8 = vadd.f32 %v3766_v12, %v2675_v1  ;;  %v3828_v19 = vsel %vm3819_vm9, %v3764_v53, %v3766_v12  ;;  %v1332_v59 = vsel %vm1319_vm5, %v9297_v39, %v9296_v32  ;;  %v2678_v33 = vadd.f32 %v2602_v16, %v1467_v23  ;;  %v9298_v12 = vld [vmem:[#allocation101_spill] sm:$0xff]  ;;  %v9299_v53 = vld [vmem:[#allocation164_spill] sm:$0xff] }
 0x6c3   :  { %v3902_v2 = vadd.f32 %v3828_v19, %v2674_v17  ;;  %4797 = vrot.lane.b32.xlu0 %v4796_v22, %s5102_s19  ;;  %v1037_v9 = vadd.f32 %v958_v55, %v618_v24  ;;  %v1469_v0 = vmul.f32 %v9223_v6, %v1408_v18  ;;  %v1035_v28 = vadd.f32 %v957_v27, %v616_v43  ;;  %v9306_v27 = vld [vmem:[#allocation185_spill] sm:$0xff]  ;;  %v9307_v39 = vld [vmem:[#allocation16_spill] sm:$0xff] }
 0x6c4   :  { %v1411_v56 = vadd.f32 %v9296_v32, %v1036_v31  ;;  %v1413_v17 = vadd.f32 %v9298_v12, %v1038_v38  ;;  %v1333_v15 = vsel %vm1319_vm5, %v9300_v26, %v9298_v12  ;;  %v2603_v43 = vsel %vm2591_vm8, %v9301_v3, %v9299_v53  ;;  %v5026_v32 = vld [vmem:[#allocation2 + $0xe0] sm:$0xff] }
 0x6c5   :  { %v3770_v58 = vpop.permute.xlu0 %3769  ;;  %v4801_v36 = vpack.i.bf16 %v3903_v8, %v3902_v2  ;;  %v3768_v52 = vpop.permute.xlu1 %3767  ;;  %v2681_v8 = vadd.f32 %v9299_v53, %v1470_v40  ;;  %v1410_v63 = vadd.f32 %v1332_v59, %v1035_v28  ;;  %v1412_v19 = vadd.f32 %v1333_v15, %v1037_v9  ;;  %v9302_v2 = vld [vmem:[#allocation167_spill] sm:$0xff]  ;;  %v9314_v26 = vld [vmem:[#allocation105_spill] sm:$0xff]  ;;  %v9315_v15 = vld [vmem:[#allocation104_spill] sm:$0xff] }
 0x6c6   :  { %v3905_v42 = vadd.f32 %v3770_v58, %v2677_v50  ;;  %v3829_v25 = vsel %vm3819_vm9, %v3768_v52, %v3770_v58  ;;  %v1472_v62 = vmul.f32 %v7997_v10, %v1411_v56  ;;  %v2680_v60 = vadd.f32 %v2603_v43, %v1469_v0  ;;  %v5027_v0 = vld [vmem:[#allocation2 + $0xe8] sm:$0xff] }
 0x6c7   :  { %v3904_v45 = vadd.f32 %v3829_v25, %v2676_v49  ;;  %4802 = vrot.lane.b32.xlu1 %v4801_v36, %s5102_s19  ;;  %v2604_v50 = vsel %vm2591_vm8, %v9303_v47, %v9302_v2  ;;  %v1471_v4 = vmul.f32 %v9223_v6, %v1410_v63  ;;  %v1474_v13 = vmul.f32 %v7997_v10, %v1413_v17  ;;  %v9312_v17 = vld [vmem:[#allocation103_spill] sm:$0xff] }
 0x6c8   :  { %v2683_v41 = vadd.f32 %v9302_v2, %v1472_v62  ;;  %v1473_v36 = vmul.f32 %v9223_v6, %v1412_v19  ;;  %v622_v23 = vmul.f32 %v5024_v46, %v9306_v27  ;;  %v620_v59 = vmul.f32 %v5026_v32, %v9307_v39  ;;  %v9324_v32 = vld [vmem:[#allocation68_spill] sm:$0xff] }
 0x6c9   :  { %v3774_v1 = vpop.permute.xlu0 %3773  ;;  %v4806_v14 = vpack.i.bf16 %v3905_v42, %v3904_v45  ;;  %v3772_v29 = vpop.permute.xlu1 %3771  ;;  %v2682_v18 = vadd.f32 %v2604_v50, %v1471_v4  ;;  %v9304_v42 = vld [vmem:[#allocation145_spill] sm:$0xff]  ;;  %v621_v28 = vmul.f32 %v5027_v0, %v9307_v39  ;;  %v1335_v3 = vsel %vm1319_vm5, %v9315_v15, %v9314_v26  ;;  %v9327_v0 = vld [vmem:[#allocation106_spill] sm:$0xff]  ;;  %v9330_v15 = vld [vmem:[#allocation168_spill] sm:$0xff] }
 0x6ca   :  { %v3907_v21 = vadd.f32 %v3774_v1, %v2679_v37  ;;  %v3830_v51 = vsel %vm3819_vm9, %v3772_v29, %v3774_v1  ;;  %v2685_v44 = vadd.f32 %v9304_v42, %v1474_v13  ;;  %v2605_v54 = vsel %vm2591_vm8, %v9305_v30, %v9304_v42  ;;  %v5025_v37 = vld [vmem:[#allocation2 + $0xf8] sm:$0xff]  ;;  %v9309_v1 = vld [vmem:[#allocation63_spill] sm:$0xff]  ;;  %v9311_v29 = vld [vmem:[#allocation65_spill] sm:$0xff] }
 0x6cb   :  { %v3906_v22 = vadd.f32 %v3830_v51, %v2678_v33  ;;  %4807 = vrot.lane.b32.xlu0 %v4806_v14, %s5102_s19  ;;  %v623_v5 = vmul.f32 %v5025_v37, %v9306_v27  ;;  %v2684_v40 = vadd.f32 %v2605_v54, %v1473_v36  ;;  %v9308_v33 = vld [vmem:[#allocation62_spill] sm:$0xff]  ;;  %v9310_v14 = vld [vmem:[#allocation64_spill] sm:$0xff]  ;;  %v9325_v39 = vld [vmem:[#allocation69_spill] sm:$0xff] }
 0x6cc   :  { %v959_v9 = vsel %vm944_vm4, %v9309_v1, %v9308_v33 }
 0x6cd   :  { %v3778_v61 = vpop.permute.xlu0 %3777  ;;  %v4811_v35 = vpack.i.bf16 %v3907_v21, %v3906_v22  ;;  %v3776_v20 = vpop.permute.xlu1 %3775  ;;  %v960_v21 = vsel %vm944_vm4, %v9311_v29, %v9310_v14  ;;  %v1042_v51 = vadd.f32 %v9310_v14, %v623_v5  ;;  %v9313_v22 = vld [vmem:[#allocation102_spill] sm:$0xff]  ;;  %v1039_v63 = vadd.f32 %v959_v9, %v620_v59 }
 0x6ce   :  { %v3909_v57 = vadd.f32 %v3778_v61, %v2681_v8  ;;  %v3831_v7 = vsel %vm3819_vm9, %v3776_v20, %v3778_v61  ;;  %v1041_v56 = vadd.f32 %v960_v21, %v622_v23  ;;  %v1334_v53 = vsel %vm1319_vm5, %v9313_v22, %v9312_v17  ;;  %v9317_v20 = vld [vmem:[#allocation169_spill] sm:$0xff]  ;;  %v9326_v21 = vld [vmem:[#allocation107_spill] sm:$0xff] }
 0x6cf   :  { %v3908_v34 = vadd.f32 %v3831_v7, %v2680_v60  ;;  %4812 = vrot.lane.b32.xlu1 %v4811_v35, %s5102_s19  ;;  %v1040_v8 = vadd.f32 %v9308_v33, %v621_v28  ;;  %v1414_v43 = vadd.f32 %v1334_v53, %v1039_v63  ;;  %v1417_v19 = vadd.f32 %v9314_v26, %v1042_v51  ;;  %v9316_v35 = vld [vmem:[#allocation128_spill] sm:$0xff]  ;;  %v5031_v33 = vld [vmem:[#allocation2 + $0x108] sm:$0xff] }
 0x6d0   :  { %v1416_v61 = vadd.f32 %v1335_v3, %v1041_v56  ;;  %v2606_v60 = vsel %vm2591_vm8, %v9317_v20, %v9316_v35  ;;  %v962_v59 = vsel %vm944_vm4, %v9325_v39, %v9324_v32  ;;  %v1336_v28 = vsel %vm1319_vm5, %v9327_v0, %v9326_v21  ;;  %v9331_v3 = vld [vmem:[#allocation131_spill] sm:$0xff] }
 0x6d1   :  { %v3782_v16 = vpop.permute.xlu0 %3781  ;;  %v4816_v58 = vpack.i.bf16 %v3909_v57, %v3908_v34  ;;  %v3780_v11 = vpop.permute.xlu1 %3779  ;;  %v1415_v62 = vadd.f32 %v9312_v17, %v1040_v8  ;;  %v1475_v2 = vmul.f32 %v9223_v6, %v1414_v43  ;;  %v1478_v4 = vmul.f32 %v7997_v10, %v1417_v19  ;;  %v9329_v17 = vld [vmem:[#allocation108_spill] sm:$0xff] }
 0x6d2   :  { %v3911_v24 = vadd.f32 %v3782_v16, %v2683_v41  ;;  %v3832_v52 = vsel %vm3819_vm9, %v3780_v11, %v3782_v16  ;;  %v1477_v34 = vmul.f32 %v9223_v6, %v1416_v61  ;;  %v9318_v11 = vld [vmem:[#allocation148_spill] sm:$0xff]  ;;  %v2608_v43 = vsel %vm2591_vm8, %v9331_v3, %v9330_v15 }
 0x6d3   :  { %v3910_v49 = vadd.f32 %v3832_v52, %v2682_v18  ;;  %4817 = vrot.lane.b32.xlu0 %v4816_v58, %s5102_s19  ;;  %v1476_v57 = vmul.f32 %v7997_v10, %v1415_v62  ;;  %v2686_v7 = vadd.f32 %v2606_v60, %v1475_v2  ;;  %v5028_v52 = vld [vmem:[#allocation2 + $0x110] sm:$0xff]  ;;  %v2689_v46 = vadd.f32 %v9318_v11, %v1478_v4 }
 0x6d4   :  { %v9332_v4 = vld [vmem:[#allocation171_spill] sm:$0xff] }
 0x6d5   :  { %v3786_v25 = vpop.permute.xlu0 %3785  ;;  %v4821_v38 = vpack.i.bf16 %v3911_v24, %v3910_v49  ;;  %v3784_v45 = vpop.permute.xlu1 %3783  ;;  %v2687_v50 = vadd.f32 %v9316_v35, %v1476_v57  ;;  %v9319_v24 = vld [vmem:[#allocation147_spill] sm:$0xff]  ;;  %v9320_v49 = vld [vmem:[#allocation186_spill] sm:$0xff] }
 0x6d6   :  { %v3913_v31 = vadd.f32 %v3786_v25, %v2685_v44  ;;  %v3833_v48 = vsel %vm3819_vm9, %v3784_v45, %v3786_v25  ;;  %v2607_v36 = vsel %vm2591_vm8, %v9319_v24, %v9318_v11  ;;  %v626_v42 = vmul.f32 %v5028_v52, %v9320_v49  ;;  %v5029_v44 = vld [vmem:[#allocation2 + $0x118] sm:$0xff]  ;;  %v9321_v45 = vld [vmem:[#allocation17_spill] sm:$0xff] }
 0x6d7   :  { %v3912_v55 = vadd.f32 %v3833_v48, %v2684_v40  ;;  %4822 = vrot.lane.b32.xlu1 %v4821_v38, %s5102_s19  ;;  %v627_v30 = vmul.f32 %v5029_v44, %v9320_v49  ;;  %v2688_v27 = vadd.f32 %v2607_v36, %v1477_v34  ;;  %v5030_v38 = vld [vmem:[#allocation2 + $0x100] sm:$0xff]  ;;  %v9323_v48 = vld [vmem:[#allocation67_spill] sm:$0xff]  ;;  %v625_v1 = vmul.f32 %v5031_v33, %v9321_v45  ;;  %v9333_v34 = vld [vmem:[#allocation150_spill] sm:$0xff] }
 0x6d8   :  { %v624_v40 = vmul.f32 %v5030_v38, %v9321_v45  ;;  %v1045_v9 = vadd.f32 %v962_v59, %v626_v42  ;;  %v5033_v11 = vld [vmem:[#allocation2 + $0x138] sm:$0xff]  ;;  %v9339_v45 = vld [vmem:[#allocation73_spill] sm:$0xff]  ;;  %v9340_v59 = vld [vmem:[#allocation111_spill] sm:$0xff] }
 0x6d9   :  { %v4826_v12 = vpack.i.bf16 %v3913_v31, %v3912_v55  ;;  %v9322_v31 = vld [vmem:[#allocation66_spill] sm:$0xff]  ;;  %v1046_v14 = vadd.f32 %v9324_v32, %v627_v30  ;;  %v9338_v38 = vld [vmem:[#allocation72_spill] sm:$0xff] }
 0x6da   :  { %v961_v55 = vsel %vm944_vm4, %v9323_v48, %v9322_v31  ;;  %v1044_v56 = vadd.f32 %v9322_v31, %v625_v1  ;;  %v5035_v31 = vld [vmem:[#allocation2 + $0x128] sm:$0xff] }
 0x6db   :  { %4827 = vrot.lane.b32.xlu0 %v4826_v12, %s5102_s19  ;;  %v1043_v51 = vadd.f32 %v961_v55, %v624_v40  ;;  %v9328_v12 = vld [vmem:[#allocation109_spill] sm:$0xff]  ;;  %v964_v40 = vsel %vm944_vm4, %v9339_v45, %v9338_v38  ;;  %v9341_v33 = vld [vmem:[#allocation110_spill] sm:$0xff] }
 0x6dc   :  { %v1337_v22 = vsel %vm1319_vm5, %v9329_v17, %v9328_v12  ;;  %v1419_v8 = vadd.f32 %v9326_v21, %v1044_v56  ;;  %v1421_v26 = vadd.f32 %v9328_v12, %v1046_v14  ;;  %v1338_v1 = vsel %vm1319_vm5, %v9341_v33, %v9340_v59  ;;  %v9343_v21 = vld [vmem:[#allocation112_spill] sm:$0xff]  ;;  %v9344_v17 = vld [vmem:[#allocation149_spill] sm:$0xff] }
 0x6dd   :  { %v1418_v53 = vadd.f32 %v1336_v28, %v1043_v51  ;;  %v1420_v63 = vadd.f32 %v1337_v22, %v1045_v9  ;;  %v9345_v22 = vld [vmem:[#allocation170_spill] sm:$0xff] }
 0x6de   :  { %v1480_v62 = vmul.f32 %v7997_v10, %v1419_v8  ;;  %v1482_v57 = vmul.f32 %v7997_v10, %v1421_v26 }
 0x6df   :  { %v1479_v61 = vmul.f32 %v9223_v6, %v1418_v53  ;;  %v1481_v2 = vmul.f32 %v9223_v6, %v1420_v63  ;;  %v2610_v53 = vsel %vm2591_vm8, %v9345_v22, %v9344_v17 }
 0x6e0   :  { %v3790_v47 = vpop.permute.xlu0 %3789  ;;  %v2691_v35 = vadd.f32 %v9330_v15, %v1480_v62  ;;  %v2693_v52 = vadd.f32 %v9332_v4, %v1482_v57  ;;  %v9346_v57 = vld [vmem:[#allocation130_spill] sm:$0xff] }
 0x6e1   :  { %v3788_v41 = vpop.permute.xlu1 %3787  ;;  %v3915_v16 = vadd.f32 %v3790_v47, %v2687_v50  ;;  %v2690_v20 = vadd.f32 %v2608_v43, %v1479_v61 }
 0x6e2   :  { %v3834_v13 = vsel %vm3819_vm9, %v3788_v41, %v3790_v47 }
 0x6e3   :  { %v3914_v18 = vadd.f32 %v3834_v13, %v2686_v7  ;;  %v2609_v13 = vsel %vm2591_vm8, %v9333_v34, %v9332_v4  ;;  %v5037_v4 = vld [vmem:[#allocation2 + $0x158] sm:$0xff] }
 0x6e4   :  { %v3794_v58 = vpop.permute.xlu0 %3793  ;;  %v2692_v49 = vadd.f32 %v2609_v13, %v1481_v2  ;;  %v9347_v2 = vld [vmem:[#allocation152_spill] sm:$0xff] }
 0x6e5   :  { %v4831_v54 = vpack.i.bf16 %v3915_v16, %v3914_v18  ;;  %v3792_v23 = vpop.permute.xlu1 %3791  ;;  %v3917_v37 = vadd.f32 %v3794_v58, %v2689_v46  ;;  %v5032_v16 = vld [vmem:[#allocation2 + $0x130] sm:$0xff]  ;;  %v9334_v18 = vld [vmem:[#allocation189_spill] sm:$0xff] }
 0x6e6   :  { %v3835_v25 = vsel %vm3819_vm9, %v3792_v23, %v3794_v58  ;;  %v630_v58 = vmul.f32 %v5032_v16, %v9334_v18  ;;  %v631_v24 = vmul.f32 %v5033_v11, %v9334_v18  ;;  %v5034_v46 = vld [vmem:[#allocation2 + $0x120] sm:$0xff] }
 0x6e7   :  { %v3916_v5 = vadd.f32 %v3835_v25, %v2688_v27  ;;  %4832 = vrot.lane.b32.xlu1 %v4831_v54, %s5102_s19  ;;  %v9335_v27 = vld [vmem:[#allocation18_spill] sm:$0xff] }
 0x6e8   :  { %v628_v23 = vmul.f32 %v5034_v46, %v9335_v27  ;;  %v9336_v25 = vld [vmem:[#allocation70_spill] sm:$0xff]  ;;  %v629_v48 = vmul.f32 %v5035_v31, %v9335_v27  ;;  %v1049_v55 = vadd.f32 %v964_v40, %v630_v58  ;;  %v1050_v32 = vadd.f32 %v9338_v38, %v631_v24  ;;  %v9352_v46 = vld [vmem:[#allocation76_spill] sm:$0xff]  ;;  %v9353_v27 = vld [vmem:[#allocation77_spill] sm:$0xff] }
 0x6e9   :  { %v4836_v29 = vpack.i.bf16 %v3917_v37, %v3916_v5  ;;  %v9337_v37 = vld [vmem:[#allocation71_spill] sm:$0xff]  ;;  %v9355_v31 = vld [vmem:[#allocation114_spill] sm:$0xff] }
 0x6ea   :  { %v963_v5 = vsel %vm944_vm4, %v9337_v37, %v9336_v25  ;;  %v1048_v9 = vadd.f32 %v9336_v25, %v629_v48  ;;  %v5039_v25 = vld [vmem:[#allocation2 + $0x148] sm:$0xff]  ;;  %v9354_v40 = vld [vmem:[#allocation115_spill] sm:$0xff] }
 0x6eb   :  { %4837 = vrot.lane.b32.xlu0 %v4836_v29, %s5102_s19  ;;  %v1047_v14 = vadd.f32 %v963_v5, %v628_v23  ;;  %v9342_v29 = vld [vmem:[#allocation113_spill] sm:$0xff]  ;;  %v966_v23 = vsel %vm944_vm4, %v9353_v27, %v9352_v46  ;;  %v1340_v48 = vsel %vm1319_vm5, %v9355_v31, %v9354_v40 }
 0x6ec   :  { %v1339_v0 = vsel %vm1319_vm5, %v9343_v21, %v9342_v29  ;;  %v1423_v56 = vadd.f32 %v9340_v59, %v1048_v9  ;;  %v1425_v12 = vadd.f32 %v9342_v29, %v1050_v32  ;;  %v9357_v59 = vld [vmem:[#allocation116_spill] sm:$0xff]  ;;  %v9358_v21 = vld [vmem:[#allocation151_spill] sm:$0xff] }
 0x6ed   :  { %v1422_v28 = vadd.f32 %v1338_v1, %v1047_v14  ;;  %v1424_v51 = vadd.f32 %v1339_v0, %v1049_v55  ;;  %v9359_v0 = vld [vmem:[#allocation172_spill] sm:$0xff] }
 0x6ee   :  { %v1484_v8 = vmul.f32 %v7997_v10, %v1423_v56  ;;  %v1486_v62 = vmul.f32 %v7997_v10, %v1425_v12 }
 0x6ef   :  { %v1483_v63 = vmul.f32 %v9223_v6, %v1422_v28  ;;  %v1485_v61 = vmul.f32 %v9223_v6, %v1424_v51  ;;  %v2612_v28 = vsel %vm2591_vm8, %v9359_v0, %v9358_v21 }
 0x6f0   :  { %v3798_v19 = vpop.permute.xlu0 %3797  ;;  %v2695_v15 = vadd.f32 %v9344_v17, %v1484_v8  ;;  %v2697_v16 = vadd.f32 %v9346_v57, %v1486_v62  ;;  %v3931_v62 = vld [vmem:[#allocation3 + $0x8] sm:$0xff] }
 0x6f1   :  { %v3796_v60 = vpop.permute.xlu1 %3795  ;;  %v3919_v50 = vadd.f32 %v3798_v19, %v2691_v35  ;;  %v2694_v3 = vadd.f32 %v2610_v53, %v1483_v63  ;;  %4631 = vmatprep.mubr.msk.f32.mxu0 %vm4304_vm10, %v3931_v62 }
 0x6f2   :  { %v3836_v47 = vsel %vm3819_vm9, %v3796_v60, %v3798_v19 }
 0x6f3   :  { %v3918_v7 = vadd.f32 %v3836_v47, %v2690_v20  ;;  %v2611_v47 = vsel %vm2591_vm8, %v9347_v2, %v9346_v57 }
 0x6f4   :  { %v3802_v41 = vpop.permute.xlu0 %3801  ;;  %v2696_v18 = vadd.f32 %v2611_v47, %v1485_v61  ;;  %v3953_v61 = vld [vmem:[#allocation3 + $0xb8] sm:$0xff] }
 0x6f5   :  { %v4841_v36 = vpack.i.bf16 %v3919_v50, %v3918_v7  ;;  %v3800_v42 = vpop.permute.xlu1 %3799  ;;  %v3921_v30 = vadd.f32 %v3802_v41, %v2693_v52  ;;  %v5036_v50 = vld [vmem:[#allocation2 + $0x150] sm:$0xff]  ;;  %v9348_v7 = vld [vmem:[#allocation192_spill] sm:$0xff]  ;;  %v5038_v52 = vld [vmem:[#allocation2 + $0x140] sm:$0xff]  ;;  %4642 = vmatprep.mubr.msk.f32.mxu1 %vm4304_vm10, %v3953_v61 }
 0x6f6   :  { %v3837_v44 = vsel %vm3819_vm9, %v3800_v42, %v3802_v41  ;;  %v634_v41 = vmul.f32 %v5036_v50, %v9348_v7  ;;  %v635_v34 = vmul.f32 %v5037_v4, %v9348_v7  ;;  %v3992_v61 = vld [vmem:[%s8563_s3 + $0x90] sm:$0xff] }
 0x6f7   :  { %v3920_v54 = vadd.f32 %v3837_v44, %v2692_v49  ;;  %4842 = vrot.lane.b32.xlu1 %v4841_v36, %s5102_s19  ;;  %v9349_v49 = vld [vmem:[#allocation19_spill] sm:$0xff]  ;;  %v9350_v44 = vld [vmem:[#allocation74_spill] sm:$0xff] }
 0x6f8   :  { %v632_v42 = vmul.f32 %v5038_v52, %v9349_v49  ;;  %v633_v37 = vmul.f32 %v5039_v25, %v9349_v49  ;;  %v1053_v5 = vadd.f32 %v966_v23, %v634_v41  ;;  %v1054_v38 = vadd.f32 %v9352_v46, %v635_v34 }
 0x6f9   :  { %v4846_v39 = vpack.i.bf16 %v3921_v30, %v3920_v54  ;;  %v9351_v30 = vld [vmem:[#allocation75_spill] sm:$0xff] }
 0x6fa   :  { %v965_v54 = vsel %vm944_vm4, %v9351_v30, %v9350_v44  ;;  %v1052_v55 = vadd.f32 %v9350_v44, %v633_v37  ;;  %v3982_v37 = vld [vmem:[%s8563_s3 + $0x40] sm:$0xff] }
 0x6fb   :  { %4847 = vrot.lane.b32.xlu0 %v4846_v39, %s5102_s19  ;;  %v1051_v32 = vadd.f32 %v965_v54, %v632_v42  ;;  %v9356_v39 = vld [vmem:[#allocation117_spill] sm:$0xff]  ;;  %v3980_v54 = vld [vmem:[%s8563_s3 + $0x30] sm:$0xff] }
 0x6fc   :  { %v1341_v33 = vsel %vm1319_vm5, %v9357_v59, %v9356_v39  ;;  %v1427_v9 = vadd.f32 %v9354_v40, %v1052_v55  ;;  %v1429_v29 = vadd.f32 %v9356_v39, %v1054_v38  ;;  %v3984_v55 = vld [vmem:[%s8563_s3 + $0x50] sm:$0xff] }
 0x6fd   :  { %v1426_v1 = vadd.f32 %v1340_v48, %v1051_v32  ;;  %v1428_v14 = vadd.f32 %v1341_v33, %v1053_v5 }
 0x6fe   :  { %v1488_v56 = vmul.f32 %v7997_v10, %v1427_v9  ;;  %v1490_v8 = vmul.f32 %v7997_v10, %v1429_v29 }
 0x6ff   :  { %v1487_v51 = vmul.f32 %v9223_v6, %v1426_v1  ;;  %v1489_v63 = vmul.f32 %v9223_v6, %v1428_v14  ;;  %v3986_v1 = vld [vmem:[%s8563_s3 + $0x60] sm:$0xff] }
 0x700   :  { %v3806_v26 = vpop.permute.xlu0 %3805  ;;  %v2699_v17 = vadd.f32 %v9358_v21, %v1488_v56  ;;  %v3988_v56 = vld [vmem:[%s8563_s3 + $0x70] sm:$0xff] }
 0x701   :  { %v3804_v43 = vpop.permute.xlu1 %3803  ;;  %v3923_v35 = vadd.f32 %v3806_v26, %v2695_v15  ;;  %v2698_v22 = vadd.f32 %v2612_v28, %v1487_v51 }
 0x702   :  { %v3838_v19 = vsel %vm3819_vm9, %v3804_v43, %v3806_v26 }
 0x703   :  { %v3922_v20 = vadd.f32 %v3838_v19, %v2694_v3  ;;  %v9360_v19 = vld [vmem:[#allocation133_spill] sm:$0xff] }
 0x704   :  { %v3810_v60 = vpop.permute.xlu0 %3809  ;;  %v2701_v10 = vadd.f32 %v9360_v19, %v1490_v8 }
 0x705   :  { %v4851_v13 = vpack.i.bf16 %v3923_v35, %v3922_v20  ;;  %v3808_v58 = vpop.permute.xlu1 %3807  ;;  %v3925_v24 = vadd.f32 %v3810_v60, %v2697_v16  ;;  %v9361_v35 = vld [vmem:[#allocation154_spill] sm:$0xff] }
 0x706   :  { %v3839_v11 = vsel %vm3819_vm9, %v3808_v58, %v3810_v60  ;;  %v2613_v20 = vsel %vm2591_vm8, %v9361_v35, %v9360_v19 }
 0x707   :  { %v3924_v36 = vadd.f32 %v3839_v11, %v2696_v18  ;;  %4852 = vrot.lane.b32.xlu1 %v4851_v13, %s5102_s19  ;;  %v2700_v6 = vadd.f32 %v2613_v20, %v1489_v63  ;;  %v3975_v13 = vld [vmem:[%s8563_s3 + $0x8] sm:$0xff] }
 0x709   :  { %v4856_v45 = vpack.i.bf16 %v3925_v24, %v3924_v36  ;;  %v3978_v24 = vld [vmem:[%s8563_s3 + $0x20] sm:$0xff] }
 0x70b   :  { %4857 = vrot.lane.b32.xlu0 %v4856_v45, %s5102_s19 }
 0x710   :  { %v3814_v12 = vpop.permute.xlu0 %3813 }
 0x711   :  { %v3812_v53 = vpop.permute.xlu1 %3811  ;;  %v3927_v15 = vadd.f32 %v3814_v12, %v2699_v17 }
 0x712   :  { %v3840_v26 = vsel %vm3819_vm9, %v3812_v53, %v3814_v12  ;;  %v3990_v53 = vld [vmem:[%s8563_s3 + $0x80] sm:$0xff] }
 0x713   :  { %v3926_v3 = vadd.f32 %v3840_v26, %v2698_v22 }
 0x714   :  { %v3818_v43 = vpop.permute.xlu0 %3817 }
 0x715   :  { %v4861_v60 = vpack.i.bf16 %v3927_v15, %v3926_v3  ;;  %v3816_v57 = vpop.permute.xlu1 %3815  ;;  %v3929_v47 = vadd.f32 %v3818_v43, %v2701_v10  ;;  %v3974_v3 = vld [vmem:[%s8563_s3] sm:$0xff] }
 0x716   :  { %v3841_v2 = vsel %vm3819_vm9, %v3816_v57, %v3818_v43 }
 0x717   :  { %v3928_v50 = vadd.f32 %v3841_v2, %v2700_v6  ;;  %4862 = vrot.lane.b32.xlu1 %v4861_v60, %s5102_s19  ;;  %v3976_v60 = vld [vmem:[%s8563_s3 + $0x10] sm:$0xff]  ;;  %v3994_v6 = vld [vmem:[%s8563_s3 + $0xa0] sm:$0xff] }
 0x719   :  { %v4866_v7 = vpack.i.bf16 %v3929_v47, %v3928_v50  ;;  %v4763_v41 = vpop.permute.xlu1 %4762 }
 0x71a   :  { %v4765_v4 = vunpack.i.h.bf16 %v4763_v41  ;;  %v4764_v34 = vunpack.i.l.bf16 %v4763_v41 }
 0x71b   :  { %4867 = vrot.lane.b32.xlu0 %v4866_v7, %s5102_s19  ;;  %3998 = vperm.xlu1 %4871, %v3974_v3   ;;  %v3977_v7 = vld [vmem:[%s8563_s3 + $0x18] sm:$0xff] }
 0x71c   :  { %v4238_v36 = vsel %vm2591_vm8, %v4764_v34, %v4765_v4 }
 0x71d   :  { %v4768_v16 = vpop.permute.xlu0 %4767 }
 0x71e   :  { %v4770_v18 = vunpack.i.h.bf16 %v4768_v16  ;;  %v4769_v58 = vunpack.i.l.bf16 %v4768_v16 }
 0x71f   :  { %4003 = vperm.xlu0 %4759, %v3975_v13   ;;  %4008 = vperm.xlu1 %4871, %v3976_v60   ;;  %v3979_v13 = vld [vmem:[%s8563_s3 + $0x28] sm:$0xff] }
 0x720   :  { %v4653_v11 = vpack.c.bf16 %v4770_v18, %v4765_v4  ;;  %v4239_v52 = vsel %vm2591_vm8, %v4769_v58, %v4770_v18 }
 0x721   :  { %v4773_v49 = vpop.permute.xlu1 %4772  ;;  %v4655_v42 = vpack.c.bf16 %v4239_v52, %v4238_v36 }
 0x722   :  { %4654 = vmatprep.subr.bf16.mxu0 %v4653_v11  ;;  %4697 = vmatprep.subr.bf16.mxu1 %v4653_v11  ;;  %v4775_v44 = vunpack.i.h.bf16 %v4773_v49  ;;  %v4774_v30 = vunpack.i.l.bf16 %v4773_v49  ;;  %v3981_v49 = vld [vmem:[%s8563_s3 + $0x38] sm:$0xff] }
 0x723   :  { %4018 = vperm.xlu0 %4759, %v3978_v24   ;;  %4656 = vmatpush1.bf16.msra.mxu0 %v4655_v42 }
 0x724   :  { %4708 = vmatpush1.bf16.msra.mxu1 %v4655_v42  ;;  %v4240_v5 = vsel %vm2591_vm8, %v4774_v30, %v4775_v44  ;;  %4013 = vperm.xlu1 %4871, %v3977_v7  }
 0x725   :  { %v4778_v46 = vpop.permute.xlu0 %4777 }
 0x726   :  { %v4780_v27 = vunpack.i.h.bf16 %v4778_v46  ;;  %v4779_v23 = vunpack.i.l.bf16 %v4778_v46 }
 0x727   :  { %4028 = vperm.xlu0 %4759, %v3980_v54   ;;  %v3983_v54 = vld [vmem:[%s8563_s3 + $0x48] sm:$0xff] }
 0x728   :  { %v4657_v25 = vpack.c.bf16 %v4780_v27, %v4775_v44  ;;  %v4241_v38 = vsel %vm2591_vm8, %v4779_v23, %v4780_v27  ;;  %4023 = vperm.xlu1 %4871, %v3979_v13  }
 0x729   :  { %v4783_v45 = vpop.permute.xlu1 %4782  ;;  %v4659_v40 = vpack.c.bf16 %v4241_v38, %v4240_v5  ;;  %v3985_v38 = vld [vmem:[%s8563_s3 + $0x58] sm:$0xff] }
 0x72a   :  { %4658 = vmatprep.subr.bf16.mxu0 %v4657_v25  ;;  %4698 = vmatprep.subr.bf16.mxu1 %v4657_v25  ;;  %v4785_v31 = vunpack.i.h.bf16 %v4783_v45  ;;  %v4784_v48 = vunpack.i.l.bf16 %v4783_v45  ;;  %v3987_v45 = vld [vmem:[%s8563_s3 + $0x68] sm:$0xff] }
 0x72b   :  { %4038 = vperm.xlu0 %4759, %v3982_v37   ;;  %4660 = vmatpush1.bf16.msra.mxu0 %v4659_v40 }
 0x72c   :  { %4709 = vmatpush1.bf16.msra.mxu1 %v4659_v40  ;;  %v4242_v9 = vsel %vm2591_vm8, %v4784_v48, %v4785_v31  ;;  %4033 = vperm.xlu1 %4871, %v3981_v49   ;;  %v3957_v49 = vld [vmem:[#allocation3 + $0xd8] sm:$0xff] }
 0x72d   :  { %v4788_v32 = vpop.permute.xlu0 %4787 }
 0x72e   :  { %v4790_v39 = vunpack.i.h.bf16 %v4788_v32  ;;  %v4789_v59 = vunpack.i.l.bf16 %v4788_v32 }
 0x72f   :  { %4048 = vperm.xlu0 %4759, %v3984_v55  }
 0x730   :  { %v4661_v33 = vpack.c.bf16 %v4790_v39, %v4785_v31  ;;  %v4243_v14 = vsel %vm2591_vm8, %v4789_v59, %v4790_v39  ;;  %4043 = vperm.xlu1 %4871, %v3983_v54   ;;  %v3989_v31 = vld [vmem:[%s8563_s3 + $0x78] sm:$0xff]  ;;  %v3991_v39 = vld [vmem:[%s8563_s3 + $0x88] sm:$0xff] }
 0x731   :  { %v4793_v29 = vpop.permute.xlu1 %4792  ;;  %v4663_v21 = vpack.c.bf16 %v4243_v14, %v4242_v9  ;;  %v3959_v54 = vld [vmem:[#allocation3 + $0xe8] sm:$0xff] }
 0x732   :  { %4662 = vmatprep.subr.bf16.mxu0 %v4661_v33  ;;  %4699 = vmatprep.subr.bf16.mxu1 %v4661_v33  ;;  %v4795_v0 = vunpack.i.h.bf16 %v4793_v29  ;;  %v4794_v28 = vunpack.i.l.bf16 %v4793_v29 }
 0x733   :  { %4058 = vperm.xlu0 %4759, %v3986_v1   ;;  %4664 = vmatpush1.bf16.msra.mxu0 %v4663_v21 }
 0x734   :  { %4710 = vmatpush1.bf16.msra.mxu1 %v4663_v21  ;;  %v4244_v8 = vsel %vm2591_vm8, %v4794_v28, %v4795_v0  ;;  %4053 = vperm.xlu1 %4871, %v3985_v38   ;;  %v3993_v21 = vld [vmem:[%s8563_s3 + $0x98] sm:$0xff] }
 0x735   :  { %v4798_v51 = vpop.permute.xlu0 %4797  ;;  %v3941_v38 = vld [vmem:[#allocation3 + $0x58] sm:$0xff] }
 0x736   :  { %v4800_v12 = vunpack.i.h.bf16 %v4798_v51  ;;  %v4799_v17 = vunpack.i.l.bf16 %v4798_v51 }
 0x737   :  { %4068 = vperm.xlu0 %4759, %v3988_v56  }
 0x738   :  { %v4665_v22 = vpack.c.bf16 %v4800_v12, %v4795_v0  ;;  %v4245_v63 = vsel %vm2591_vm8, %v4799_v17, %v4800_v12  ;;  %4063 = vperm.xlu1 %4871, %v3987_v45   ;;  %v3995_v0 = vld [vmem:[%s8563_s3 + $0xa8] sm:$0xff]  ;;  %s5107_s3 = smov [#allocation6]  }
 0x739   :  { %v4803_v26 = vpop.permute.xlu1 %4802  ;;  %v4667_v15 = vpack.c.bf16 %v4245_v63, %v4244_v8  ;;  %v3963_v45 = vld [vmem:[#allocation3 + $0x108] sm:$0xff]  ;;  %s4618_s11 = sshll.u32 %s5107_s3, 4  ;;  %s4619_s11 = int_to_ptr.vmem [resolvable:$true] %s4618_s11 }
 0x73a   :  { %4666 = vmatprep.subr.bf16.mxu0 %v4665_v22  ;;  %4700 = vmatprep.subr.bf16.mxu1 %v4665_v22  ;;  %v4805_v43 = vunpack.i.h.bf16 %v4803_v26  ;;  %v4804_v62 = vunpack.i.l.bf16 %v4803_v26  ;;  %s5062_s12 = scalar_lea.vmem %s4619_s11, 5632  ;;  %p5067_p9 = scmp.lt.s32.totalorder %s4619_s11, %s4619_s11 }
 0x73b   :  { %4078 = vperm.xlu0 %4759, %v3990_v53   ;;  %4668 = vmatpush1.bf16.msra.mxu0 %v4667_v15  ;;  %p5063_p8 = scmp.ne.s32.totalorder %s4619_s11, %s5062_s12  ;;  %p5068_p10 = scmp.lt.s32.totalorder %s5062_s12, %s5062_s12 }
 0x73c   :  { %4711 = vmatpush1.bf16.msra.mxu1 %v4667_v15  ;;  %v4246_v57 = vsel %vm2591_vm8, %v4804_v62, %v4805_v43  ;;  %4073 = vperm.xlu1 %4871, %v3989_v31   ;;  %v3962_v31 = vld [vmem:[#allocation3 + $0x100] sm:$0xff] }
 0x73d   :  { %v4808_v19 = vpop.permute.xlu0 %4807  ;;  %p5069_p11 = por %p5068_p10, %p5067_p9 }
 0x73e   :  { %v4810_v35 = vunpack.i.h.bf16 %v4808_v19  ;;  %v4809_v20 = vunpack.i.l.bf16 %v4808_v19 }
 0x73f   :  { %4088 = vperm.xlu0 %4759, %v3992_v61   ;;  %p5070_p12 = pnand %p5069_p11, %p5063_p8 }
 0x740   :  { %v4669_v10 = vpack.c.bf16 %v4810_v35, %v4805_v43  ;;  %v4247_v2 = vsel %vm2591_vm8, %v4809_v20, %v4810_v35  ;;  %4083 = vperm.xlu1 %4871, %v3991_v39   ;;  %v3964_v39 = vld [vmem:[#allocation3 + $0x110] sm:$0xff] }
 0x741   :  { %v4813_v47 = vpop.permute.xlu1 %4812  ;;  %v4671_v50 = vpack.c.bf16 %v4247_v2, %v4246_v57 }
 0x742   :  { %4670 = vmatprep.subr.bf16.mxu0 %v4669_v10  ;;  %4701 = vmatprep.subr.bf16.mxu1 %v4669_v10  ;;  %v4815_v41 = vunpack.i.h.bf16 %v4813_v47  ;;  %v4814_v4 = vunpack.i.l.bf16 %v4813_v47 }
 0x743   :  { %4098 = vperm.xlu0 %4759, %v3994_v6   ;;  %4672 = vmatpush1.bf16.msra.mxu0 %v4671_v50 }
 0x744   :  { %4712 = vmatpush1.bf16.msra.mxu1 %v4671_v50  ;;  %v4248_v11 = vsel %vm2591_vm8, %v4814_v4, %v4815_v41  ;;  %4093 = vperm.xlu1 %4871, %v3993_v21   ;;  %v3946_v21 = vld [vmem:[#allocation3 + $0x80] sm:$0xff] }
 0x745   :  { %v4818_v34 = vpop.permute.xlu0 %4817 }
 0x746   :  { %v4820_v16 = vunpack.i.h.bf16 %v4818_v34  ;;  %v4819_v18 = vunpack.i.l.bf16 %v4818_v34 }
 0x748   :  { %v4673_v58 = vpack.c.bf16 %v4820_v16, %v4815_v41  ;;  %v4249_v24 = vsel %vm2591_vm8, %v4819_v18, %v4820_v16  ;;  %4103 = vperm.xlu1 %4871, %v3995_v0   ;;  %v3930_v16 = vld [vmem:[#allocation3] sm:$0xff]  ;;  %v3952_v18 = vld [vmem:[#allocation3 + $0xb0] sm:$0xff] }
 0x749   :  { %v4823_v36 = vpop.permute.xlu1 %4822  ;;  %v4675_v52 = vpack.c.bf16 %v4249_v24, %v4248_v11  ;;  %v3955_v11 = vld [vmem:[#allocation3 + $0xc8] sm:$0xff]  ;;  %v3932_v24 = vld [vmem:[#allocation3 + $0x10] sm:$0xff] }
 0x74a   :  { %4674 = vmatprep.subr.bf16.mxu0 %v4673_v58  ;;  %4702 = vmatprep.subr.bf16.mxu1 %v4673_v58  ;;  %v4825_v42 = vunpack.i.h.bf16 %v4823_v36  ;;  %v4824_v44 = vunpack.i.l.bf16 %v4823_v36  ;;  %v3933_v58 = vld [vmem:[#allocation3 + $0x18] sm:$0xff]  ;;  %v3954_v36 = vld [vmem:[#allocation3 + $0xc0] sm:$0xff]  ;;  %v3968_v0 = vld [vmem:[#allocation3 + $0x130] sm:$0xff] }
 0x74b   :  { %4676 = vmatpush1.bf16.msra.mxu0 %v4675_v52  ;;  %4713 = vmatpush1.bf16.msra.mxu1 %v4675_v52  ;;  %v3935_v52 = vld [vmem:[#allocation3 + $0x28] sm:$0xff] }
 0x74c   :  { %v4250_v25 = vsel %vm2591_vm8, %v4824_v44, %v4825_v42  ;;  %v3956_v44 = vld [vmem:[#allocation3 + $0xd0] sm:$0xff] }
 0x74d   :  { %v4828_v30 = vpop.permute.xlu0 %4827 }
 0x74e   :  { %v4830_v46 = vunpack.i.h.bf16 %v4828_v30  ;;  %v4829_v27 = vunpack.i.l.bf16 %v4828_v30  ;;  %v3937_v30 = vld [vmem:[#allocation3 + $0x38] sm:$0xff] }
 0x750   :  { %v4677_v23 = vpack.c.bf16 %v4830_v46, %v4825_v42  ;;  %v4251_v37 = vsel %vm2591_vm8, %v4829_v27, %v4830_v46  ;;  %v3934_v42 = vld [vmem:[#allocation3 + $0x20] sm:$0xff]  ;;  %v3936_v46 = vld [vmem:[#allocation3 + $0x30] sm:$0xff] }
 0x751   :  { %v4679_v5 = vpack.c.bf16 %v4251_v37, %v4250_v25  ;;  %v3958_v27 = vld [vmem:[#allocation3 + $0xe0] sm:$0xff]  ;;  %v3961_v25 = vld [vmem:[#allocation3 + $0xf8] sm:$0xff] }
 0x752   :  { %4678 = vmatprep.subr.bf16.mxu0 %v4677_v23  ;;  %4703 = vmatprep.subr.bf16.mxu1 %v4677_v23  ;;  %v3939_v23 = vld [vmem:[#allocation3 + $0x48] sm:$0xff]  ;;  %v3938_v37 = vld [vmem:[#allocation3 + $0x40] sm:$0xff] }
 0x753   :  { %4680 = vmatpush1.bf16.msra.mxu0 %v4679_v5  ;;  %4714 = vmatpush1.bf16.msra.mxu1 %v4679_v5  ;;  %v3960_v5 = vld [vmem:[#allocation3 + $0xf0] sm:$0xff] }
 0x759   :  { %v4833_v40 = vpop.permute.xlu1 %4832 }
 0x75a   :  { %v4835_v48 = vunpack.i.h.bf16 %v4833_v40  ;;  %v4834_v55 = vunpack.i.l.bf16 %v4833_v40  ;;  %v3940_v40 = vld [vmem:[#allocation3 + $0x50] sm:$0xff] }
 0x75c   :  { %v4252_v9 = vsel %vm2591_vm8, %v4834_v55, %v4835_v48  ;;  %v3965_v55 = vld [vmem:[#allocation3 + $0x118] sm:$0xff] }
 0x75d   :  { %v4838_v32 = vpop.permute.xlu0 %4837 }
 0x75e   :  { %v4840_v59 = vunpack.i.h.bf16 %v4838_v32  ;;  %v4839_v33 = vunpack.i.l.bf16 %v4838_v32  ;;  %v3942_v32 = vld [vmem:[#allocation3 + $0x60] sm:$0xff] }
 0x760   :  { %v4681_v1 = vpack.c.bf16 %v4840_v59, %v4835_v48  ;;  %v4253_v14 = vsel %vm2591_vm8, %v4839_v33, %v4840_v59  ;;  %v3943_v48 = vld [vmem:[#allocation3 + $0x68] sm:$0xff]  ;;  %v3945_v59 = vld [vmem:[#allocation3 + $0x78] sm:$0xff] }
 0x761   :  { %v4683_v29 = vpack.c.bf16 %v4253_v14, %v4252_v9  ;;  %v3967_v33 = vld [vmem:[#allocation3 + $0x128] sm:$0xff]  ;;  %v3966_v9 = vld [vmem:[#allocation3 + $0x120] sm:$0xff] }
 0x762   :  { %4682 = vmatprep.subr.bf16.mxu0 %v4681_v1  ;;  %4704 = vmatprep.subr.bf16.mxu1 %v4681_v1  ;;  %v3944_v1 = vld [vmem:[#allocation3 + $0x70] sm:$0xff]  ;;  %v3947_v14 = vld [vmem:[#allocation3 + $0x88] sm:$0xff] }
 0x763   :  { %4684 = vmatpush1.bf16.msra.mxu0 %v4683_v29  ;;  %4715 = vmatpush1.bf16.msra.mxu1 %v4683_v29  ;;  %v3969_v29 = vld [vmem:[#allocation3 + $0x138] sm:$0xff] }
 0x769   :  { %v4843_v28 = vpop.permute.xlu1 %4842 }
 0x76a   :  { %v4845_v56 = vunpack.i.h.bf16 %v4843_v28  ;;  %v4844_v51 = vunpack.i.l.bf16 %v4843_v28  ;;  %v3949_v28 = vld [vmem:[#allocation3 + $0x98] sm:$0xff] }
 0x76c   :  { %v4254_v8 = vsel %vm2591_vm8, %v4844_v51, %v4845_v56  ;;  %v3948_v51 = vld [vmem:[#allocation3 + $0x90] sm:$0xff] }
 0x76d   :  { %v4848_v12 = vpop.permute.xlu0 %4847 }
 0x76e   :  { %v4850_v17 = vunpack.i.h.bf16 %v4848_v12  ;;  %v4849_v22 = vunpack.i.l.bf16 %v4848_v12  ;;  %v3970_v12 = vld [vmem:[#allocation3 + $0x140] sm:$0xff] }
 0x770   :  { %v4685_v53 = vpack.c.bf16 %v4850_v17, %v4845_v56  ;;  %v4255_v63 = vsel %vm2591_vm8, %v4849_v22, %v4850_v17  ;;  %v3971_v56 = vld [vmem:[#allocation3 + $0x148] sm:$0xff]  ;;  %v3973_v22 = vld [vmem:[#allocation3 + $0x158] sm:$0xff] }
 0x771   :  { %v4687_v26 = vpack.c.bf16 %v4255_v63, %v4254_v8  ;;  %v3951_v17 = vld [vmem:[#allocation3 + $0xa8] sm:$0xff]  ;;  %v3972_v8 = vld [vmem:[#allocation3 + $0x150] sm:$0xff] }
 0x772   :  { %4686 = vmatprep.subr.bf16.mxu0 %v4685_v53  ;;  %4705 = vmatprep.subr.bf16.mxu1 %v4685_v53  ;;  %v3950_v53 = vld [vmem:[#allocation3 + $0xa0] sm:$0xff] }
 0x773   :  { %4688 = vmatpush1.bf16.msra.mxu0 %v4687_v26  ;;  %4716 = vmatpush1.bf16.msra.mxu1 %v4687_v26 }
 0x779   :  { %v4853_v15 = vpop.permute.xlu1 %4852 }
 0x77a   :  { %v4855_v3 = vunpack.i.h.bf16 %v4853_v15  ;;  %v4854_v43 = vunpack.i.l.bf16 %v4853_v15 }
 0x77c   :  { %v4256_v20 = vsel %vm2591_vm8, %v4854_v43, %v4855_v3 }
 0x77d   :  { %v4858_v62 = vpop.permute.xlu0 %4857 }
 0x77e   :  { %v4860_v61 = vunpack.i.h.bf16 %v4858_v62  ;;  %v4859_v19 = vunpack.i.l.bf16 %v4858_v62 }
 0x780   :  { %v4689_v35 = vpack.c.bf16 %v4860_v61, %v4855_v3  ;;  %v4257_v60 = vsel %vm2591_vm8, %v4859_v19, %v4860_v61 }
 0x781   :  { %v4691_v10 = vpack.c.bf16 %v4257_v60, %v4256_v20 }
 0x782   :  { %4690 = vmatprep.subr.bf16.mxu0 %v4689_v35  ;;  %4706 = vmatprep.subr.bf16.mxu1 %v4689_v35 }
 0x783   :  { %4692 = vmatpush1.bf16.msra.mxu0 %v4691_v10  ;;  %4717 = vmatpush1.bf16.msra.mxu1 %v4691_v10 }
 0x789   :  { %v4863_v6 = vpop.permute.xlu1 %4862 }
 0x78a   :  { %v4865_v57 = vunpack.i.h.bf16 %v4863_v6  ;;  %v4864_v2 = vunpack.i.l.bf16 %v4863_v6 }
 0x78c   :  { %v4258_v4 = vsel %vm2591_vm8, %v4864_v2, %v4865_v57 }
 0x78d   :  { %v4868_v47 = vpop.permute.xlu0 %4867 }
 0x78e   :  { %v4870_v50 = vunpack.i.h.bf16 %v4868_v47  ;;  %v4869_v7 = vunpack.i.l.bf16 %v4868_v47 }
 0x790   :  { %v4693_v41 = vpack.c.bf16 %v4870_v50, %v4865_v57  ;;  %v4259_v34 = vsel %vm2591_vm8, %v4869_v7, %v4870_v50 }
 0x791   :  { %v4695_v13 = vpack.c.bf16 %v4259_v34, %v4258_v4 }
 0x792   :  { %4694 = vmatprep.subr.bf16.mxu0 %v4693_v41  ;;  %4707 = vmatprep.subr.bf16.mxu1 %v4693_v41 }
 0x793   :  { %4696 = vmatpush1.bf16.msra.mxu0 %v4695_v13  ;;  %4718 = vmatpush1.bf16.msra.mxu1 %v4695_v13 }
 0x796   :  { %4436 = vmatmul.mubr.f32.vlgmr.msra.gmra.mrb[0].mxu0 %v3930_v16  ;;  %4502 = vmatmul.mubr.f32.vlgmr.msra.gmra.mrb[0].mxu1 %v3952_v18 }
 0x797   :  { %4632 = vmatprep.mubr.msk.f32.mxu0 %vm4304_vm10, %v3933_v58  ;;  %4643 = vmatprep.mubr.msk.f32.mxu1 %vm4304_vm10, %v3955_v11 }
 0x79a   :  { %4442 = vmatmul.mubr.f32.gmra.mrb[2].mxu0 %v3932_v24  ;;  %4508 = vmatmul.mubr.f32.gmra.mrb[2].mxu1 %v3954_v36  ;;  %v3999_v63 = vpop.permute.xlu1 %3998 }
 0x79b   :  { %4633 = vmatprep.mubr.msk.f32.mxu0 %vm4304_vm10, %v3935_v52  ;;  %4644 = vmatprep.mubr.msk.f32.mxu1 %vm4304_vm10, %v3957_v49 }
 0x79e   :  { %4448 = vmatmul.mubr.f32.gmra.mrb[4].mxu0 %v3934_v42  ;;  %4514 = vmatmul.mubr.f32.gmra.mrb[4].mxu1 %v3956_v44  ;;  %v4009_v26 = vpop.permute.xlu1 %4008  ;;  %v4004_v15 = vpop.permute.xlu0 %4003 }
 0x79f   :  { %4634 = vmatprep.mubr.msk.f32.mxu0 %vm4304_vm10, %v3937_v30  ;;  %4645 = vmatprep.mubr.msk.f32.mxu1 %vm4304_vm10, %v3959_v54 }
 0x7a2   :  { %4454 = vmatmul.mubr.f32.gmra.mrb[6].mxu0 %v3936_v46  ;;  %4520 = vmatmul.mubr.f32.gmra.mrb[6].mxu1 %v3958_v27  ;;  %v8495_v43 = vpop.permute.xlu0 %4018 }
 0x7a3   :  { %4635 = vmatprep.mubr.msk.f32.mxu0 %vm4304_vm10, %v3939_v23  ;;  %4646 = vmatprep.mubr.msk.f32.mxu1 %vm4304_vm10, %v3961_v25  ;;  %v4014_v3 = vpop.permute.xlu1 %4013 }
 0x7a6   :  { %4460 = vmatmul.mubr.f32.gmra.mrb[8].mxu0 %v3938_v37  ;;  %4526 = vmatmul.mubr.f32.gmra.mrb[8].mxu1 %v3960_v5  ;;  %v8499_v61 = vpop.permute.xlu0 %4028 }
 0x7a7   :  { %4636 = vmatprep.mubr.msk.f32.mxu0 %vm4304_vm10, %v3941_v38  ;;  %4647 = vmatprep.mubr.msk.f32.mxu1 %vm4304_vm10, %v3963_v45  ;;  %v8497_v62 = vpop.permute.xlu1 %4023 }
 0x7aa   :  { %4466 = vmatmul.mubr.f32.gmra.mrb[10].mxu0 %v3940_v40  ;;  %4532 = vmatmul.mubr.f32.gmra.mrb[10].mxu1 %v3962_v31  ;;  %v8503_v35 = vpop.permute.xlu0 %4038 }
 0x7ab   :  { %4637 = vmatprep.mubr.msk.f32.mxu0 %vm4304_vm10, %v3943_v48  ;;  %4648 = vmatprep.mubr.msk.f32.mxu1 %vm4304_vm10, %v3965_v55  ;;  %v8501_v19 = vpop.permute.xlu1 %4033 }
 0x7ae   :  { %4472 = vmatmul.mubr.f32.gmra.mrb[12].mxu0 %v3942_v32  ;;  %4538 = vmatmul.mubr.f32.gmra.mrb[12].mxu1 %v3964_v39  ;;  %v8507_v60 = vpop.permute.xlu0 %4048 }
 0x7af   :  { %4638 = vmatprep.mubr.msk.f32.mxu0 %vm4304_vm10, %v3945_v59  ;;  %4649 = vmatprep.mubr.msk.f32.mxu1 %vm4304_vm10, %v3967_v33  ;;  %v8505_v20 = vpop.permute.xlu1 %4043 }
 0x7b2   :  { %4478 = vmatmul.mubr.f32.gmra.mrb[14].mxu0 %v3944_v1  ;;  %4544 = vmatmul.mubr.f32.gmra.mrb[14].mxu1 %v3966_v9  ;;  %v4059_v34 = vpop.permute.xlu0 %4058 }
 0x7b3   :  { %4639 = vmatprep.mubr.msk.f32.mxu0 %vm4304_vm10, %v3947_v14  ;;  %4650 = vmatprep.mubr.msk.f32.mxu1 %vm4304_vm10, %v3969_v29  ;;  %v4054_v10 = vpop.permute.xlu1 %4053 }
 0x7b6   :  { %4484 = vmatmul.mubr.f32.gmra.mrb[16].mxu0 %v3946_v21  ;;  %4550 = vmatmul.mubr.f32.gmra.mrb[16].mxu1 %v3968_v0  ;;  %v4069_v37 = vpop.permute.xlu0 %4068 }
 0x7b7   :  { %4640 = vmatprep.mubr.msk.f32.mxu0 %vm4304_vm10, %v3949_v28  ;;  %4651 = vmatprep.mubr.msk.f32.mxu1 %vm4304_vm10, %v3971_v56  ;;  %v4064_v49 = vpop.permute.xlu1 %4063 }
 0x7ba   :  { %4490 = vmatmul.mubr.f32.gmra.mrb[18].mxu0 %v3948_v51  ;;  %4556 = vmatmul.mubr.f32.gmra.mrb[18].mxu1 %v3970_v12  ;;  %v4079_v28 = vpop.permute.xlu0 %4078 }
 0x7bb   :  { %4641 = vmatprep.mubr.msk.f32.mxu0 %vm4304_vm10, %v3951_v17  ;;  %4652 = vmatprep.mubr.msk.f32.mxu1 %vm4304_vm10, %v3973_v22  ;;  %v4074_v39 = vpop.permute.xlu1 %4073 }
 0x7be   :  { %4496 = vmatmul.mubr.f32.gmra.mrb[20].mxu0 %v3950_v53  ;;  %4562 = vmatmul.mubr.f32.gmra.mrb[20].mxu1 %v3972_v8 }
 0x869   :  { %v4437_v6 = vpop.f32.mrb[0].mxu0  ;;  %v4503_v57 = vpop.f32.mrb[0].mxu1 }
 0x86a   :  { %v4438_v2 = vadd.f32 %v4437_v6, %v3999_v63  ;;  %v4504_v47 = vadd.f32 %v4503_v57, %v4054_v10  ;;  %v4439_v50 = vpop.f32.mrb[1].mxu0  ;;  %v4505_v7 = vpop.f32.mrb[1].mxu1 }
 0x86b   :  { %v4440_v41 = vadd.f32 %v4439_v50, %v3999_v63  ;;  %v4506_v4 = vadd.f32 %v4505_v7, %v4054_v10  ;;  %v4089_v50 = vpop.permute.xlu0 %4088 }
 0x86c   :  { %4568 = vst [vmem:[#allocation6] sm:$0xff] %v4438_v2  ;;  %4591 = vst [vmem:[#allocation6 + $0xb0] sm:$0xff] %v4504_v47 }
 0x86d   :  { %4570 = vst.msk [vmem:[#allocation6 + $0x8] sm:$0xff] %vm4569_vm11, %v4440_v41  ;;  %4592 = vst.msk [vmem:[#allocation6 + $0xb8] sm:$0xff] %vm4569_vm11, %v4506_v4  ;;  %v4443_v13 = vpop.f32.mrb[2].mxu0  ;;  %v4509_v16 = vpop.f32.mrb[2].mxu1 }
 0x86e   :  { %v4444_v18 = vadd.f32 %v4443_v13, %v4004_v15  ;;  %v4510_v58 = vadd.f32 %v4509_v16, %v4059_v34  ;;  %v4445_v11 = vpop.f32.mrb[3].mxu0  ;;  %v4511_v24 = vpop.f32.mrb[3].mxu1 }
 0x86f   :  { %v4446_v36 = vadd.f32 %v4445_v11, %v4004_v15  ;;  %v4512_v52 = vadd.f32 %v4511_v24, %v4059_v34 }
 0x870   :  { %4571 = vst [vmem:[#allocation6 + $0x10] sm:$0xff] %v4444_v18  ;;  %4593 = vst [vmem:[#allocation6 + $0xc0] sm:$0xff] %v4510_v58 }
 0x871   :  { %4572 = vst.msk [vmem:[#allocation6 + $0x18] sm:$0xff] %vm4569_vm11, %v4446_v36  ;;  %4594 = vst.msk [vmem:[#allocation6 + $0xc8] sm:$0xff] %vm4569_vm11, %v4512_v52  ;;  %v4449_v42 = vpop.f32.mrb[4].mxu0  ;;  %v4515_v44 = vpop.f32.mrb[4].mxu1 }
 0x872   :  { %v4450_v30 = vadd.f32 %v4449_v42, %v4009_v26  ;;  %v4516_v54 = vadd.f32 %v4515_v44, %v4064_v49  ;;  %v4451_v46 = vpop.f32.mrb[5].mxu0  ;;  %v4517_v27 = vpop.f32.mrb[5].mxu1 }
 0x873   :  { %v4452_v23 = vadd.f32 %v4451_v46, %v4009_v26  ;;  %v4518_v25 = vadd.f32 %v4517_v27, %v4064_v49  ;;  %v4084_v26 = vpop.permute.xlu1 %4083 }
 0x874   :  { %4573 = vst [vmem:[#allocation6 + $0x20] sm:$0xff] %v4450_v30  ;;  %4595 = vst [vmem:[#allocation6 + $0xd0] sm:$0xff] %v4516_v54  ;;  %v4099_v30 = vpop.permute.xlu0 %4098 }
 0x875   :  { %4574 = vst.msk [vmem:[#allocation6 + $0x28] sm:$0xff] %vm4569_vm11, %v4452_v23  ;;  %4596 = vst.msk [vmem:[#allocation6 + $0xd8] sm:$0xff] %vm4569_vm11, %v4518_v25  ;;  %v4455_v5 = vpop.f32.mrb[6].mxu0  ;;  %v4521_v38 = vpop.f32.mrb[6].mxu1 }
 0x876   :  { %v4456_v45 = vadd.f32 %v4455_v5, %v4014_v3  ;;  %v4522_v40 = vadd.f32 %v4521_v38, %v4069_v37  ;;  %v4457_v31 = vpop.f32.mrb[7].mxu0  ;;  %v4523_v48 = vpop.f32.mrb[7].mxu1 }
 0x877   :  { %v4458_v55 = vadd.f32 %v4457_v31, %v4014_v3  ;;  %v4524_v32 = vadd.f32 %v4523_v48, %v4069_v37  ;;  %v4094_v58 = vpop.permute.xlu1 %4093 }
 0x878   :  { %4575 = vst [vmem:[#allocation6 + $0x30] sm:$0xff] %v4456_v45  ;;  %4597 = vst [vmem:[#allocation6 + $0xe0] sm:$0xff] %v4522_v40 }
 0x879   :  { %4576 = vst.msk [vmem:[#allocation6 + $0x38] sm:$0xff] %vm4569_vm11, %v4458_v55  ;;  %4598 = vst.msk [vmem:[#allocation6 + $0xe8] sm:$0xff] %vm4569_vm11, %v4524_v32  ;;  %v4461_v59 = vpop.f32.mrb[8].mxu0  ;;  %v4527_v33 = vpop.f32.mrb[8].mxu1 }
 0x87a   :  { %v4462_v1 = vadd.f32 %v4461_v59, %v8495_v43  ;;  %v4528_v9 = vadd.f32 %v4527_v33, %v4074_v39  ;;  %v4463_v14 = vpop.f32.mrb[9].mxu0  ;;  %v4529_v29 = vpop.f32.mrb[9].mxu1 }
 0x87b   :  { %v4464_v21 = vadd.f32 %v4463_v14, %v8495_v43  ;;  %v4530_v0 = vadd.f32 %v4529_v29, %v4074_v39  ;;  %v4104_v38 = vpop.permute.xlu1 %4103 }
 0x87c   :  { %4577 = vst [vmem:[#allocation6 + $0x40] sm:$0xff] %v4462_v1  ;;  %4599 = vst [vmem:[#allocation6 + $0xf0] sm:$0xff] %v4528_v9 }
 0x87d   :  { %4578 = vst.msk [vmem:[#allocation6 + $0x48] sm:$0xff] %vm4569_vm11, %v4464_v21  ;;  %4600 = vst.msk [vmem:[#allocation6 + $0xf8] sm:$0xff] %vm4569_vm11, %v4530_v0  ;;  %v4467_v56 = vpop.f32.mrb[10].mxu0  ;;  %v4533_v51 = vpop.f32.mrb[10].mxu1 }
 0x87e   :  { %v4468_v12 = vadd.f32 %v4467_v56, %v8497_v62  ;;  %v4534_v17 = vadd.f32 %v4533_v51, %v4079_v28  ;;  %v4469_v22 = vpop.f32.mrb[11].mxu0  ;;  %v4535_v53 = vpop.f32.mrb[11].mxu1 }
 0x87f   :  { %v4470_v8 = vadd.f32 %v4469_v22, %v8497_v62  ;;  %v4536_v63 = vadd.f32 %v4535_v53, %v4079_v28 }
 0x880   :  { %4579 = vst [vmem:[#allocation6 + $0x50] sm:$0xff] %v4468_v12  ;;  %4601 = vst [vmem:[#allocation6 + $0x100] sm:$0xff] %v4534_v17 }
 0x881   :  { %4580 = vst.msk [vmem:[#allocation6 + $0x58] sm:$0xff] %vm4569_vm11, %v4470_v8  ;;  %4602 = vst.msk [vmem:[#allocation6 + $0x108] sm:$0xff] %vm4569_vm11, %v4536_v63  ;;  %v4473_v15 = vpop.f32.mrb[12].mxu0  ;;  %v4539_v3 = vpop.f32.mrb[12].mxu1 }
 0x882   :  { %v4474_v43 = vadd.f32 %v4473_v15, %v8499_v61  ;;  %v4540_v10 = vadd.f32 %v4539_v3, %v4084_v26  ;;  %v4475_v6 = vpop.f32.mrb[13].mxu0  ;;  %v4541_v57 = vpop.f32.mrb[13].mxu1 }
 0x883   :  { %v4476_v2 = vadd.f32 %v4475_v6, %v8499_v61  ;;  %v4542_v47 = vadd.f32 %v4541_v57, %v4084_v26 }
 0x884   :  { %4581 = vst [vmem:[#allocation6 + $0x60] sm:$0xff] %v4474_v43  ;;  %4603 = vst [vmem:[#allocation6 + $0x110] sm:$0xff] %v4540_v10 }
 0x885   :  { %4582 = vst.msk [vmem:[#allocation6 + $0x68] sm:$0xff] %vm4569_vm11, %v4476_v2  ;;  %4604 = vst.msk [vmem:[#allocation6 + $0x118] sm:$0xff] %vm4569_vm11, %v4542_v47  ;;  %v4479_v62 = vpop.f32.mrb[14].mxu0  ;;  %v4545_v7 = vpop.f32.mrb[14].mxu1 }
 0x886   :  { %v4480_v41 = vadd.f32 %v4479_v62, %v8501_v19  ;;  %v4546_v4 = vadd.f32 %v4545_v7, %v4089_v50  ;;  %v4481_v34 = vpop.f32.mrb[15].mxu0  ;;  %v4547_v13 = vpop.f32.mrb[15].mxu1 }
 0x887   :  { %v4482_v16 = vadd.f32 %v4481_v34, %v8501_v19  ;;  %v4548_v18 = vadd.f32 %v4547_v13, %v4089_v50 }
 0x888   :  { %4583 = vst [vmem:[#allocation6 + $0x70] sm:$0xff] %v4480_v41  ;;  %4605 = vst [vmem:[#allocation6 + $0x120] sm:$0xff] %v4546_v4 }
 0x889   :  { %4584 = vst.msk [vmem:[#allocation6 + $0x78] sm:$0xff] %vm4569_vm11, %v4482_v16  ;;  %4606 = vst.msk [vmem:[#allocation6 + $0x128] sm:$0xff] %vm4569_vm11, %v4548_v18  ;;  %v4485_v61 = vpop.f32.mrb[16].mxu0  ;;  %v4551_v11 = vpop.f32.mrb[16].mxu1 }
 0x88a   :  { %v4486_v24 = vadd.f32 %v4485_v61, %v8503_v35  ;;  %v4552_v36 = vadd.f32 %v4551_v11, %v4094_v58  ;;  %v4487_v52 = vpop.f32.mrb[17].mxu0  ;;  %v4553_v49 = vpop.f32.mrb[17].mxu1 }
 0x88b   :  { %v4488_v42 = vadd.f32 %v4487_v52, %v8503_v35  ;;  %v4554_v44 = vadd.f32 %v4553_v49, %v4094_v58 }
 0x88c   :  { %4585 = vst [vmem:[#allocation6 + $0x80] sm:$0xff] %v4486_v24  ;;  %4607 = vst [vmem:[#allocation6 + $0x130] sm:$0xff] %v4552_v36 }
 0x88d   :  { %4586 = vst.msk [vmem:[#allocation6 + $0x88] sm:$0xff] %vm4569_vm11, %v4488_v42  ;;  %4608 = vst.msk [vmem:[#allocation6 + $0x138] sm:$0xff] %vm4569_vm11, %v4554_v44  ;;  %v4491_v19 = vpop.f32.mrb[18].mxu0  ;;  %v4557_v54 = vpop.f32.mrb[18].mxu1 }
 0x88e   :  { %v4492_v46 = vadd.f32 %v4491_v19, %v8505_v20  ;;  %v4558_v27 = vadd.f32 %v4557_v54, %v4099_v30  ;;  %v4493_v23 = vpop.f32.mrb[19].mxu0  ;;  %v4559_v25 = vpop.f32.mrb[19].mxu1 }
 0x88f   :  { %v4494_v37 = vadd.f32 %v4493_v23, %v8505_v20  ;;  %v4560_v5 = vadd.f32 %v4559_v25, %v4099_v30 }
 0x890   :  { %4587 = vst [vmem:[#allocation6 + $0x90] sm:$0xff] %v4492_v46  ;;  %4609 = vst [vmem:[#allocation6 + $0x140] sm:$0xff] %v4558_v27 }
 0x891   :  { %4588 = vst.msk [vmem:[#allocation6 + $0x98] sm:$0xff] %vm4569_vm11, %v4494_v37  ;;  %4610 = vst.msk [vmem:[#allocation6 + $0x148] sm:$0xff] %vm4569_vm11, %v4560_v5  ;;  %v4497_v35 = vpop.f32.mrb[20].mxu0  ;;  %v4563_v45 = vpop.f32.mrb[20].mxu1 }
 0x892   :  { %v4498_v40 = vadd.f32 %v4497_v35, %v8507_v60  ;;  %v4564_v31 = vadd.f32 %v4563_v45, %v4104_v38  ;;  %v4499_v48 = vpop.f32.mrb[21].mxu0  ;;  %v4565_v55 = vpop.f32.mrb[21].mxu1 }
 0x893   :  { %v4500_v32 = vadd.f32 %v4499_v48, %v8507_v60  ;;  %v4566_v20 = vadd.f32 %v4565_v55, %v4104_v38 }
 0x894   :  { %4589 = vst [vmem:[#allocation6 + $0xa0] sm:$0xff] %v4498_v40  ;;  %4611 = vst [vmem:[#allocation6 + $0x150] sm:$0xff] %v4564_v31 }
 0x895   :  { %4590 = vst.msk [vmem:[#allocation6 + $0xa8] sm:$0xff] %vm4569_vm11, %v4500_v32  ;;  %4612 = vst.msk [vmem:[#allocation6 + $0x158] sm:$0xff] %vm4569_vm11, %v4566_v20 }
 0x896   :  { %5073 = shalt.err (!%p5070_p12)
}
 0x897   :  { %s5074_s15 = scalar_lea.hbm %s8565_s5, 5632 }
 0x898   :  { %p5075_p13 = scmp.ne.s32.totalorder %s8565_s5, %s5074_s15  ;;  %p5078_p0 = scmp.lt.u32.totalorder %s5074_s15, %s8565_s5 }
 0x89a   :  { %p5080_p1 = pnand %p5078_p0, %p5075_p13 }
 0x89c   :  { %5083 = shalt.err (!%p5080_p1)
}
 0x89d   :  { %4624 = dma.vmem_to_hbm [thread:$0]  %s4619_s11, 5632, %s8565_s5, [#allocation5], %s5089_s28, %s5089_s28, %s5090_s29  }
 0x89e   :  { %5086 = dma.done.wait [#allocation5], 5632  }
 0x89f   :  { %5087 = vsyncadd [#allocation5], 4294961664 }
 0x8a0   :  { %4628 = vsyncpa [#allocation4], 1 }
 0x8a1   :  { %4629 = vsyncpa [#allocation5], 1 }

</bundles_post_ra>
